<compile_context>
chip_gen: v7x
topology: tpu7x:2x2x1
jax: 0.10.0
libtpu: 0.0.40
codegen_flags: <defaults>
</compile_context>

<pallas_src>
import functools

import jax
import jax.numpy as jnp
from jax.experimental import pallas as pl
from jax.experimental.pallas import tpu as pltpu

_LN_EPS = 1e-5


# ------------------------------------------------------------ device setup ----

def _vmem_limit_bytes():
    """Per-device scoped-VMEM limit (~7/8 of physical, capped at 112 MiB)."""
    try:
        cap = int(getattr(pltpu.get_tpu_info(), "vmem_capacity_bytes", 0))
    except Exception:
        cap = 0
    if cap <= 0:
        cap = 64 * 1024 * 1024          # conservative fallback (v7x-sized)
    return min(cap * 7 // 8, 112 * 1024 * 1024)


_VMEM_LIMIT = _vmem_limit_bytes()


def _probe_buffered():
    """Check whether BlockSpec(pipeline_mode=pl.Buffered(1)) lowers on this jax."""
    try:
        const_spec = pl.BlockSpec((8, 128), lambda i: (0, 0),
                                  pipeline_mode=pl.Buffered(1))

        def k(c_ref, x_ref, o_ref):
            o_ref[...] = x_ref[...] + c_ref[...]

        out = pl.pallas_call(
            k,
            out_shape=jax.ShapeDtypeStruct((16, 128), jnp.float32),
            grid=(2,),
            in_specs=[const_spec, pl.BlockSpec((8, 128), lambda i: (i, 0))],
            out_specs=pl.BlockSpec((8, 128), lambda i: (i, 0)),
        )(jnp.ones((8, 128), jnp.float32), jnp.ones((16, 128), jnp.float32))
        jax.block_until_ready(out)
        return True
    except Exception:
        return False


_HAS_BUFFERED = _probe_buffered()


def _const_spec(shape):
    """BlockSpec for operands whose block never changes across grid steps
    (weights / biases / LN params): single-buffer when supported so they do not
    pay double-buffered VMEM."""
    ndim = len(shape)
    index_map = lambda *_: (0,) * ndim
    if _HAS_BUFFERED:
        return pl.BlockSpec(shape, index_map, pipeline_mode=pl.Buffered(1))
    return pl.BlockSpec(shape, index_map)


def _mosaic_params(dims):
    return pltpu.CompilerParams(dimension_semantics=dims,
                                vmem_limit_bytes=_VMEM_LIMIT)


def _tile(n, max_tile=512):
    """Largest 8-aligned divisor of n that is <= max_tile and gives >= 2 grid
    steps when possible (so v7x's two TensorCores both get work)."""
    if n % 8 != 0:
        return n  # TODO(synk): pad to a multiple of 8 for large unaligned extents
    for t in (max_tile, 256, 128, 64, 32, 16, 8):
        if t < n and n % t == 0:
            return t
    return n


def _ffn_tile(f):
    if f <= 2048:
        return f
    for t in (2048, 1024, 512, 256, 128):
        if f % t == 0:
            return t
    return f


# ------------------------------------------------------------------ kernels ----

def _qkv_proj_kernel(x_ref, wq_ref, bq_ref, wk_ref, bk_ref, wv_ref, bv_ref,
                     q_ref, k_ref, v_ref):
    # One read of the activation tile, three MXU matmuls (self-attention QKV).
    x = x_ref[...].astype(wq_ref.dtype)
    q = jnp.dot(x, wq_ref[...], preferred_element_type=jnp.float32) + bq_ref[...]
    k = jnp.dot(x, wk_ref[...], preferred_element_type=jnp.float32) + bk_ref[...]
    v = jnp.dot(x, wv_ref[...], preferred_element_type=jnp.float32) + bv_ref[...]
    q_ref[...] = q.astype(q_ref.dtype)
    k_ref[...] = k.astype(k_ref.dtype)
    v_ref[...] = v.astype(v_ref.dtype)


def _kv_proj_kernel(x_ref, wk_ref, bk_ref, wv_ref, bv_ref, k_ref, v_ref):
    x = x_ref[...].astype(wk_ref.dtype)
    k = jnp.dot(x, wk_ref[...], preferred_element_type=jnp.float32) + bk_ref[...]
    v = jnp.dot(x, wv_ref[...], preferred_element_type=jnp.float32) + bv_ref[...]
    k_ref[...] = k.astype(k_ref.dtype)
    v_ref[...] = v.astype(v_ref.dtype)


def _linear_kernel(x_ref, w_ref, b_ref, o_ref):
    x = x_ref[...].astype(w_ref.dtype)
    acc = jnp.dot(x, w_ref[...], preferred_element_type=jnp.float32)
    o_ref[...] = (acc + b_ref[...]).astype(o_ref.dtype)


def _attention_kernel(q_ref, k_ref, v_ref, o_ref, w_ref, *,
                      num_heads, head_dim, average_weights):
    # One query-row tile per grid step; all batches and heads handled here so
    # the attention-output store is a full-width lane-dense (tq, B, D) slab.
    # q_ref: (tq, B, D), k_ref/v_ref: (S, B, D).  Scaling already folded into Wq.
    batch = q_ref.shape[1]
    for b in range(batch):                       # static unroll (B is small/static)
        q_b = q_ref[:, b, :].astype(jnp.float32)     # (tq, D)
        k_b = k_ref[:, b, :].astype(jnp.float32)     # (S,  D)
        v_b = v_ref[:, b, :]                         # (S,  D)
        outs = []
        w_sum = None
        for h in range(num_heads):               # static unroll
            sl = slice(h * head_dim, (h + 1) * head_dim)
            s = jax.lax.dot_general(q_b[:, sl], k_b[:, sl],
                                    (((1,), (1,)), ((), ())),
                                    preferred_element_type=jnp.float32)   # (tq, S)
            m = jnp.max(s, axis=-1, keepdims=True)
            e = jnp.exp(s - m)
            denom = jnp.sum(e, axis=-1, keepdims=True)
            probs = e * pl.reciprocal(denom, approx=True)
            if average_weights:
                w_sum = probs if w_sum is None else w_sum + probs
            else:
                w_ref[b, h, :, :] = probs.astype(w_ref.dtype)
            outs.append(jnp.dot(probs.astype(v_b.dtype), v_b[:, sl],
                                preferred_element_type=jnp.float32))
        o_ref[:, b, :] = jnp.concatenate(outs, axis=-1).astype(o_ref.dtype)
        if average_weights:
            w_ref[b, :, :] = (w_sum * (1.0 / num_heads)).astype(w_ref.dtype)


def _proj_res_ln_kernel(x_ref, w_ref, b_ref, res_ref, g_ref, beta_ref, o_ref, *, eps):
    # out_proj + residual add + LayerNorm, fused.
    x = x_ref[...].astype(w_ref.dtype)
    y = jnp.dot(x, w_ref[...], preferred_element_type=jnp.float32) + b_ref[...]
    y = y + res_ref[...].astype(jnp.float32)
    mu = jnp.mean(y, axis=-1, keepdims=True)
    var = jnp.mean(jnp.square(y - mu), axis=-1, keepdims=True)
    yn = (y - mu) * jax.lax.rsqrt(var + eps)
    o_ref[...] = (yn * g_ref[...] + beta_ref[...]).astype(o_ref.dtype)


def _ffn_res_ln_kernel(x_ref, w1_ref, b1_ref, w2_ref, b2_ref, g_ref, beta_ref,
                       o_ref, acc_ref, *, eps):
    # linear1 -> relu -> linear2 accumulated over ffn_dim tiles, then
    # + residual(x) -> LayerNorm at the last tile.
    f = pl.program_id(1)

    @pl.when(f == 0)
    def _():
        acc_ref[...] = jnp.zeros_like(acc_ref)

    x = x_ref[...]
    h = jnp.dot(x.astype(w1_ref.dtype), w1_ref[...],
                preferred_element_type=jnp.float32) + b1_ref[...]
    h = jnp.maximum(h, 0.0)
    acc_ref[...] += jnp.dot(h.astype(w2_ref.dtype), w2_ref[...],
                            preferred_element_type=jnp.float32)

    @pl.when(f == pl.num_programs(1) - 1)
    def _():
        y = acc_ref[...] + b2_ref[...] + x.astype(jnp.float32)
        mu = jnp.mean(y, axis=-1, keepdims=True)
        var = jnp.mean(jnp.square(y - mu), axis=-1, keepdims=True)
        yn = (y - mu) * jax.lax.rsqrt(var + eps)
        o_ref[...] = (yn * g_ref[...] + beta_ref[...]).astype(o_ref.dtype)


# --------------------------------------------------------- pallas wrappers ----

def _pallas_qkv_proj(x2d, wq, bq, wk, bk, wv, bv):
    R, Din = x2d.shape
    Dout = wq.shape[1]
    tr = _tile(R)
    row = lambda i: (i, 0)
    return pl.pallas_call(
        _qkv_proj_kernel,
        out_shape=tuple(jax.ShapeDtypeStruct((R, Dout), x2d.dtype) for _ in range(3)),
        grid=(pl.cdiv(R, tr),),
        in_specs=[pl.BlockSpec((tr, Din), row),
                  _const_spec((Din, Dout)), _const_spec((1, Dout)),
                  _const_spec((Din, Dout)), _const_spec((1, Dout)),
                  _const_spec((Din, Dout)), _const_spec((1, Dout))],
        out_specs=tuple(pl.BlockSpec((tr, Dout), row) for _ in range(3)),
        compiler_params=_mosaic_params(("parallel",)),
    )(x2d, wq, bq, wk, bk, wv, bv)


def _pallas_kv_proj(x2d, wk, bk, wv, bv):
    R, Din = x2d.shape
    Dout = wk.shape[1]
    tr = _tile(R)
    row = lambda i: (i, 0)
    return pl.pallas_call(
        _kv_proj_kernel,
        out_shape=tuple(jax.ShapeDtypeStruct((R, Dout), x2d.dtype) for _ in range(2)),
        grid=(pl.cdiv(R, tr),),
        in_specs=[pl.BlockSpec((tr, Din), row),
                  _const_spec((Din, Dout)), _const_spec((1, Dout)),
                  _const_spec((Din, Dout)), _const_spec((1, Dout))],
        out_specs=tuple(pl.BlockSpec((tr, Dout), row) for _ in range(2)),
        compiler_params=_mosaic_params(("parallel",)),
    )(x2d, wk, bk, wv, bv)


def _pallas_linear(x2d, w, b):
    R, Din = x2d.shape
    Dout = w.shape[1]
    tr = _tile(R)
    row = lambda i: (i, 0)
    return pl.pallas_call(
        _linear_kernel,
        out_shape=jax.ShapeDtypeStruct((R, Dout), x2d.dtype),
        grid=(pl.cdiv(R, tr),),
        in_specs=[pl.BlockSpec((tr, Din), row),
                  _const_spec((Din, Dout)), _const_spec((1, Dout))],
        out_specs=pl.BlockSpec((tr, Dout), row),
        compiler_params=_mosaic_params(("parallel",)),
    )(x2d, w, b)


def _pallas_attention(q3, k3, v3, num_heads, average_weights):
    T, B, D = q3.shape
    S = k3.shape[0]
    hd = D // num_heads
    tq = _tile(T, max_tile=256)
    kernel = functools.partial(_attention_kernel, num_heads=num_heads,
                               head_dim=hd, average_weights=average_weights)
    if average_weights:
        w_shape = jax.ShapeDtypeStruct((B, T, S), q3.dtype)
        w_spec = pl.BlockSpec((B, tq, S), lambda i: (0, i, 0))
    else:
        w_shape = jax.ShapeDtypeStruct((B, num_heads, T, S), q3.dtype)
        w_spec = pl.BlockSpec((B, num_heads, tq, S), lambda i: (0, 0, i, 0))
    return pl.pallas_call(
        kernel,
        out_shape=(jax.ShapeDtypeStruct((T, B, D), q3.dtype), w_shape),
        grid=(pl.cdiv(T, tq),),
        in_specs=[pl.BlockSpec((tq, B, D), lambda i: (i, 0, 0)),
                  _const_spec((S, B, D)),
                  _const_spec((S, B, D))],
        out_specs=(pl.BlockSpec((tq, B, D), lambda i: (i, 0, 0)), w_spec),
        compiler_params=_mosaic_params(("parallel",)),
    )(q3, k3, v3)


def _pallas_proj_res_ln(x2d, w, b, res2d, g, beta):
    R, Din = x2d.shape
    Dout = w.shape[1]
    tr = _tile(R)
    row = lambda i: (i, 0)
    kernel = functools.partial(_proj_res_ln_kernel, eps=_LN_EPS)
    return pl.pallas_call(
        kernel,
        out_shape=jax.ShapeDtypeStruct((R, Dout), x2d.dtype),
        grid=(pl.cdiv(R, tr),),
        in_specs=[pl.BlockSpec((tr, Din), row),
                  _const_spec((Din, Dout)), _const_spec((1, Dout)),
                  pl.BlockSpec((tr, Dout), row),
                  _const_spec((1, Dout)), _const_spec((1, Dout))],
        out_specs=pl.BlockSpec((tr, Dout), row),
        compiler_params=_mosaic_params(("parallel",)),
    )(x2d, w, b, res2d, g, beta)


def _pallas_ffn_res_ln(x2d, w1, b1, w2, b2, g, beta):
    R, D = x2d.shape
    F = w1.shape[1]
    tr = _tile(R)
    tf = _ffn_tile(F)
    kernel = functools.partial(_ffn_res_ln_kernel, eps=_LN_EPS)
    return pl.pallas_call(
        kernel,
        out_shape=jax.ShapeDtypeStruct((R, D), x2d.dtype),
        grid=(pl.cdiv(R, tr), pl.cdiv(F, tf)),
        in_specs=[pl.BlockSpec((tr, D), lambda i, f: (i, 0)),
                  pl.BlockSpec((D, tf), lambda i, f: (0, f)),
                  pl.BlockSpec((1, tf), lambda i, f: (0, f)),
                  pl.BlockSpec((tf, D), lambda i, f: (f, 0)),
                  _const_spec((1, D)), _const_spec((1, D)), _const_spec((1, D))],
        out_specs=pl.BlockSpec((tr, D), lambda i, f: (i, 0)),
        scratch_shapes=[pltpu.VMEM((tr, D), jnp.float32)],
        compiler_params=_mosaic_params(("parallel", "arbitrary")),
    )(x2d, w1, b1, w2, b2, g, beta)


# ------------------------------------------------------------- param prep ----

def prepare_params(raw, num_heads, param_dtype=jnp.float32):
    """One-time weight prep (call OUTSIDE the jitted forward):
      * transpose Linear weights from PyTorch (out,in) to matmul-ready (in,out),
      * fold the 1/sqrt(head_dim) attention scaling into the Q projection,
      * reshape biases / LayerNorm params to (1, dim) rows,
      * optionally cast weights to bf16 (param_dtype) for half the DMA bytes.
    """
    D = raw["self_q_w"].shape[0]
    assert D % num_heads == 0, "hidden_size must be divisible by num_heads"
    scaling = float(D // num_heads) ** -0.5

    def w_t(name, scale=1.0):
        return (jnp.asarray(raw[name]).T * scale).astype(param_dtype)

    def row(name, scale=1.0):
        return (jnp.asarray(raw[name]) * scale).reshape(1, -1).astype(jnp.float32)

    p = {}
    for pre in ("self", "cross"):
        p[pre + "_q_w"] = w_t(pre + "_q_w", scaling)
        p[pre + "_q_b"] = row(pre + "_q_b", scaling)
        for n in ("k", "v", "o"):
            p[f"{pre}_{n}_w"] = w_t(f"{pre}_{n}_w")
            p[f"{pre}_{n}_b"] = row(f"{pre}_{n}_b")
    p["ffn_w1"], p["ffn_b1"] = w_t("ffn_w1"), row("ffn_b1")
    p["ffn_w2"], p["ffn_b2"] = w_t("ffn_w2"), row("ffn_b2")
    for n in ("ln1", "ln2", "ln3"):
        p[n + "_g"], p[n + "_b"] = row(n + "_g"), row(n + "_b")
    return p


# ----------------------------------------------------------- layer forward ----

@functools.partial(jax.jit, static_argnames=("num_heads",))
def transformer_decoder_layer_forward(params, tgt, memory, num_heads):
    """Pallas forward of TransformerDecoderLayer (inference: dropout = identity).

    tgt:    (tgt_len, batch, hidden)   memory: (src_len, batch, hidden)
    returns (x, self_attn_weights_all_heads, cross_attn_weights_avg)
    """
    # TODO(synk): attn_mask / key_padding_mask support (module defaults are None).
    T, B, D = tgt.shape
    S = memory.shape[0]
    p = params

    tgt2d = tgt.reshape(T * B, D)
    mem2d = memory.reshape(S * B, D)

    # --- self-attention (prev_states is None -> keys/values = tgt) -----------
    q2d, k2d, v2d = _pallas_qkv_proj(tgt2d, p["self_q_w"], p["self_q_b"],
                                     p["self_k_w"], p["self_k_b"],
                                     p["self_v_w"], p["self_v_b"])
    sa3, self_w_all = _pallas_attention(q2d.reshape(T, B, D), k2d.reshape(T, B, D),
                                        v2d.reshape(T, B, D), num_heads,
                                        average_weights=False)
    x2d = _pallas_proj_res_ln(sa3.reshape(T * B, D), p["self_o_w"], p["self_o_b"],
                              tgt2d, p["ln1_g"], p["ln1_b"])

    # --- cross-attention ------------------------------------------------------
    cq2d = _pallas_linear(x2d, p["cross_q_w"], p["cross_q_b"])
    ck2d, cv2d = _pallas_kv_proj(mem2d, p["cross_k_w"], p["cross_k_b"],
                                 p["cross_v_w"], p["cross_v_b"])
    ca3, cross_w_avg = _pallas_attention(cq2d.reshape(T, B, D), ck2d.reshape(S, B, D),
                                         cv2d.reshape(S, B, D), num_heads,
                                         average_weights=True)
    x2d = _pallas_proj_res_ln(ca3.reshape(T * B, D), p["cross_o_w"], p["cross_o_b"],
                              x2d, p["ln2_g"], p["ln2_b"])

    # --- feed-forward: linear1 -> relu -> linear2 -> +res -> norm3 ------------
    x2d = _pallas_ffn_res_ln(x2d, p["ffn_w1"], p["ffn_b1"],
                             p["ffn_w2"], p["ffn_b2"], p["ln3_g"], p["ln3_b"])

    return x2d.reshape(T, B, D), self_w_all, cross_w_avg


# ----------------------------------------------------------- JAX reference ----

def _ref_layernorm(x, g, b, eps=_LN_EPS):
    mu = jnp.mean(x, axis=-1, keepdims=True)
    var = jnp.mean(jnp.square(x - mu), axis=-1, keepdims=True)
    return (x - mu) / jnp.sqrt(var + eps) * g + b


def _ref_mha(p, prefix, query, key, value, num_heads):
    T, B, D = query.shape
    S = key.shape[0]
    hd = D // num_heads
    scaling = float(hd) ** -0.5
    hp = jax.lax.Precision.HIGHEST
    q = jnp.einsum("tbi,oi->tbo", query, p[prefix + "_q_w"], precision=hp) + p[prefix + "_q_b"]
    q = q * scaling
    k = jnp.einsum("sbi,oi->sbo", key, p[prefix + "_k_w"], precision=hp) + p[prefix + "_k_b"]
    v = jnp.einsum("sbi,oi->sbo", value, p[prefix + "_v_w"], precision=hp) + p[prefix + "_v_b"]
    q = q.reshape(T, B * num_heads, hd).transpose(1, 0, 2)
    k = k.reshape(S, B * num_heads, hd).transpose(1, 0, 2)
    v = v.reshape(S, B * num_heads, hd).transpose(1, 0, 2)
    w = jnp.einsum("bth,bsh->bts", q, k, precision=hp)
    wf = jax.nn.softmax(w.astype(jnp.float32), axis=-1)
    attn = jnp.einsum("bts,bsh->bth", wf.astype(v.dtype), v, precision=hp)
    attn = attn.transpose(1, 0, 2).reshape(T, B, D)
    attn = jnp.einsum("tbi,oi->tbo", attn, p[prefix + "_o_w"], precision=hp) + p[prefix + "_o_b"]
    w_all = wf.reshape(B, num_heads, T, S)
    return attn, jnp.sum(w_all, axis=1) / num_heads, w_all


def _ref_decoder_layer(p, tgt, memory, num_heads):
    hp = jax.lax.Precision.HIGHEST
    x = tgt
    residual = x
    sa, _, sa_all = _ref_mha(p, "self", x, x, x, num_heads)
    x = _ref_layernorm(residual + sa, p["ln1_g"], p["ln1_b"])
    residual = x
    ca, ca_avg, _ = _ref_mha(p, "cross", x, memory, memory, num_heads)
    x = _ref_layernorm(residual + ca, p["ln2_g"], p["ln2_b"])
    residual = x
    h = jnp.maximum(jnp.einsum("tbd,fd->tbf", x, p["ffn_w1"], precision=hp) + p["ffn_b1"], 0.0)
    y = jnp.einsum("tbf,df->tbd", h, p["ffn_w2"], precision=hp) + p["ffn_b2"]
    x = _ref_layernorm(residual + y, p["ln3_g"], p["ln3_b"])
    return x, sa_all, ca_avg


# -------------------------------------------------------------------- main ----

if __name__ == "__main__":
    hidden = 32
    num_heads = 4
    ffn_dim = 64
    tgt_len = 8
    src_len = 12
    batch = 2

    key = jax.random.PRNGKey(0)
    keys = jax.random.split(key, 16)

    def _linear_init(k, dout, din):
        kw, kb = jax.random.split(k)
        w = jax.random.normal(kw, (dout, din), jnp.float32) / jnp.sqrt(float(din))
        b = 0.02 * jax.random.normal(kb, (dout,), jnp.float32)
        return w, b

    raw = {}
    names = ["self_q", "self_k", "self_v", "self_o",
             "cross_q", "cross_k", "cross_v", "cross_o"]
    for i, n in enumerate(names):
        w, b = _linear_init(keys[i], hidden, hidden)
        raw[n + "_w"], raw[n + "_b"] = w, b
    raw["ffn_w1"], raw["ffn_b1"] = _linear_init(keys[8], ffn_dim, hidden)
    raw["ffn_w2"], raw["ffn_b2"] = _linear_init(keys[9], hidden, ffn_dim)
    for j, n in enumerate(["ln1", "ln2", "ln3"]):
        kg, kb = jax.random.split(keys[10 + j])
        raw[n + "_g"] = 1.0 + 0.1 * jax.random.normal(kg, (hidden,), jnp.float32)
        raw[n + "_b"] = 0.1 * jax.random.normal(kb, (hidden,), jnp.float32)

    k_t, k_m = jax.random.split(keys[13])
    tgt = jax.random.normal(k_t, (tgt_len, batch, hidden), jnp.float32)
    memory = jax.random.normal(k_m, (src_len, batch, hidden), jnp.float32)

    # One-time weight prep (transpose + scaling fold). Pass
    # param_dtype=jnp.bfloat16 to run the matmuls on bf16 weights.
    params = prepare_params(raw, num_heads, param_dtype=jnp.float32)

    out, self_w_all, cross_w_avg = transformer_decoder_layer_forward(
        params, tgt, memory, num_heads=num_heads)
    out = jax.block_until_ready(out)
    self_w_all = jax.block_until_ready(self_w_all)
    cross_w_avg = jax.block_until_ready(cross_w_avg)

    ref_out, ref_self_w_all, ref_cross_w_avg = _ref_decoder_layer(
        raw, tgt, memory, num_heads)

    assert out.shape == (tgt_len, batch, hidden)
    assert self_w_all.shape == (batch, num_heads, tgt_len, tgt_len)
    assert cross_w_avg.shape == (batch, tgt_len, src_len)
    assert jnp.allclose(out, ref_out, atol=3e-3, rtol=3e-3), \
        f"output mismatch, max err {jnp.max(jnp.abs(out - ref_out))}"
    assert jnp.allclose(self_w_all, ref_self_w_all, atol=3e-3, rtol=3e-3), \
        "self-attn weights mismatch"
    assert jnp.allclose(cross_w_avg, ref_cross_w_avg, atol=3e-3, rtol=3e-3), \
        "cross-attn avg weights mismatch"

    print("KERNEL_OK")
</pallas_src>

<mosaic_0001>
module attributes {stable_mosaic.version = 11 : i64} {
  func.func @k(%arg0: i32, %arg1: memref<8x128xf32, #tpu.memory_space<vmem>>, %arg2: memref<8x128xf32, #tpu.memory_space<vmem>>, %arg3: memref<8x128xf32, #tpu.memory_space<vmem>>) attributes {dimension_semantics = [#tpu.dimension_semantics<arbitrary>], iteration_bounds = array<i64: 2>, scalar_prefetch = 0 : i64, scratch_operands = 0 : i64, tpu.core_type = #tpu.core_type<tc>, window_params = [{pipeline_mode = #tpu.pipeline_mode<synchronous>, transform_indices = @transform_0, window_bounds = array<i64: 8, 128>}, {transform_indices = @transform_1, window_bounds = array<i64: 8, 128>}, {transform_indices = @transform_2, window_bounds = array<i64: 8, 128>}]} {
    %c0 = arith.constant 0 : index
    %c0_0 = arith.constant 0 : index
    %0 = vector.load %arg2[%c0, %c0_0] : memref<8x128xf32, #tpu.memory_space<vmem>>, vector<8x128xf32>
    %c0_1 = arith.constant 0 : index
    %c0_2 = arith.constant 0 : index
    %1 = vector.load %arg1[%c0_1, %c0_2] : memref<8x128xf32, #tpu.memory_space<vmem>>, vector<8x128xf32>
    %2 = arith.addf %0, %1 : vector<8x128xf32>
    %c0_3 = arith.constant 0 : index
    %c0_4 = arith.constant 0 : index
    %3 = vector.load %arg3[%c0_3, %c0_4] : memref<8x128xf32, #tpu.memory_space<vmem>>, vector<8x128xf32>
    tpu.vector_store %arg3[%c0_3, %c0_4], %2 {strides = array<i32>} : memref<8x128xf32, #tpu.memory_space<vmem>>, vector<8x128xf32>,
    return
  }
  func.func @transform_0(%arg0: i32) -> (i32, i32) {
    %c0_i32 = arith.constant 0 : i32
    %c0_i32_0 = arith.constant 0 : i32
    %c0_i32_1 = arith.constant 0 : i32
    return %c0_i32, %c0_i32_0 : i32, i32
  }
  func.func @transform_1(%arg0: i32) -> (i32, i32) {
    %c0_i32 = arith.constant 0 : i32
    %c0_i32_0 = arith.constant 0 : i32
    return %arg0, %c0_i32 : i32, i32
  }
  func.func @transform_2(%arg0: i32) -> (i32, i32) {
    %c0_i32 = arith.constant 0 : i32
    %c0_i32_0 = arith.constant 0 : i32
    return %arg0, %c0_i32 : i32, i32
  }
}

module attributes {stable_mosaic.version = 11 : i64} {
  func.func @_linear_kernel(%arg0: i32, %arg1: memref<8x32xf32, #tpu.memory_space<vmem>>, %arg2: memref<32x32xf32, #tpu.memory_space<vmem>>, %arg3: memref<1x32xf32, #tpu.memory_space<vmem>>, %arg4: memref<8x32xf32, #tpu.memory_space<vmem>>) attributes {dimension_semantics = [#tpu.dimension_semantics<parallel>], iteration_bounds = array<i64: 2>, scalar_prefetch = 0 : i64, scratch_operands = 0 : i64, tpu.core_type = #tpu.core_type<tc>, window_params = [{transform_indices = @transform_0, window_bounds = array<i64: 8, 32>}, {pipeline_mode = #tpu.pipeline_mode<synchronous>, transform_indices = @transform_1, window_bounds = array<i64: 32, 32>}, {pipeline_mode = #tpu.pipeline_mode<synchronous>, transform_indices = @transform_2, window_bounds = array<i64: 1, 32>}, {transform_indices = @transform_3, window_bounds = array<i64: 8, 32>}]} {
    %c0 = arith.constant 0 : index
    %c0_0 = arith.constant 0 : index
    %0 = vector.load %arg1[%c0, %c0_0] : memref<8x32xf32, #tpu.memory_space<vmem>>, vector<8x32xf32>
    %c0_1 = arith.constant 0 : index
    %c0_2 = arith.constant 0 : index
    %1 = vector.load %arg2[%c0_1, %c0_2] : memref<32x32xf32, #tpu.memory_space<vmem>>, vector<32x32xf32>
    %cst = arith.constant dense<0.000000e+00> : vector<8x32xf32>
    %2 = tpu.matmul %0, %1, %cst {dimension_numbers = #tpu.dot_dimension_numbers<[1], [0], [0], [1], [0, 0, 1, 1], [], []>} : vector<8x32xf32>, vector<32x32xf32>, vector<8x32xf32> -> vector<8x32xf32>
    %c0_3 = arith.constant 0 : index
    %c0_4 = arith.constant 0 : index
    %3 = vector.load %arg3[%c0_3, %c0_4] : memref<1x32xf32, #tpu.memory_space<vmem>>, vector<1x32xf32>
    %4 = vector.broadcast %3 : vector<1x32xf32> to vector<8x32xf32>
    %5 = arith.addf %2, %4 : vector<8x32xf32>
    %c0_5 = arith.constant 0 : index
    %c0_6 = arith.constant 0 : index
    %6 = vector.load %arg4[%c0_5, %c0_6] : memref<8x32xf32, #tpu.memory_space<vmem>>, vector<8x32xf32>
    tpu.vector_store %arg4[%c0_5, %c0_6], %5 {strides = array<i32>} : memref<8x32xf32, #tpu.memory_space<vmem>>, vector<8x32xf32>,
    return
  }
  func.func @transform_0(%arg0: i32) -> (i32, i32) {
    %c0_i32 = arith.constant 0 : i32
    %c0_i32_0 = arith.constant 0 : i32
    return %arg0, %c0_i32 : i32, i32
  }
  func.func @transform_1(%arg0: i32) -> (i32, i32) {
    %c0_i32 = arith.constant 0 : i32
    %c0_i32_0 = arith.constant 0 : i32
    %c0_i32_1 = arith.constant 0 : i32
    return %c0_i32, %c0_i32_0 : i32, i32
  }
  func.func @transform_2(%arg0: i32) -> (i32, i32) {
    %c0_i32 = arith.constant 0 : i32
    %c0_i32_0 = arith.constant 0 : i32
    %c0_i32_1 = arith.constant 0 : i32
    return %c0_i32, %c0_i32_0 : i32, i32
  }
  func.func @transform_3(%arg0: i32) -> (i32, i32) {
    %c0_i32 = arith.constant 0 : i32
    %c0_i32_0 = arith.constant 0 : i32
    return %arg0, %c0_i32 : i32, i32
  }
}

module attributes {stable_mosaic.version = 11 : i64} {
  func.func @_qkv_proj_kernel(%arg0: i32, %arg1: memref<8x32xf32, #tpu.memory_space<vmem>>, %arg2: memref<32x32xf32, #tpu.memory_space<vmem>>, %arg3: memref<1x32xf32, #tpu.memory_space<vmem>>, %arg4: memref<32x32xf32, #tpu.memory_space<vmem>>, %arg5: memref<1x32xf32, #tpu.memory_space<vmem>>, %arg6: memref<32x32xf32, #tpu.memory_space<vmem>>, %arg7: memref<1x32xf32, #tpu.memory_space<vmem>>, %arg8: memref<8x32xf32, #tpu.memory_space<vmem>>, %arg9: memref<8x32xf32, #tpu.memory_space<vmem>>, %arg10: memref<8x32xf32, #tpu.memory_space<vmem>>) attributes {dimension_semantics = [#tpu.dimension_semantics<parallel>], iteration_bounds = array<i64: 2>, scalar_prefetch = 0 : i64, scratch_operands = 0 : i64, tpu.core_type = #tpu.core_type<tc>, window_params = [{transform_indices = @transform_0, window_bounds = array<i64: 8, 32>}, {pipeline_mode = #tpu.pipeline_mode<synchronous>, transform_indices = @transform_1, window_bounds = array<i64: 32, 32>}, {pipeline_mode = #tpu.pipeline_mode<synchronous>, transform_indices = @transform_2, window_bounds = array<i64: 1, 32>}, {pipeline_mode = #tpu.pipeline_mode<synchronous>, transform_indices = @transform_3, window_bounds = array<i64: 32, 32>}, {pipeline_mode = #tpu.pipeline_mode<synchronous>, transform_indices = @transform_4, window_bounds = array<i64: 1, 32>}, {pipeline_mode = #tpu.pipeline_mode<synchronous>, transform_indices = @transform_5, window_bounds = array<i64: 32, 32>}, {pipeline_mode = #tpu.pipeline_mode<synchronous>, transform_indices = @transform_6, window_bounds = array<i64: 1, 32>}, {transform_indices = @transform_7, window_bounds = array<i64: 8, 32>}, {transform_indices = @transform_8, window_bounds = array<i64: 8, 32>}, {transform_indices = @transform_9, window_bounds = array<i64: 8, 32>}]} {
    %c0 = arith.constant 0 : index
    %c0_0 = arith.constant 0 : index
    %0 = vector.load %arg1[%c0, %c0_0] : memref<8x32xf32, #tpu.memory_space<vmem>>, vector<8x32xf32>
    %c0_1 = arith.constant 0 : index
    %c0_2 = arith.constant 0 : index
    %1 = vector.load %arg2[%c0_1, %c0_2] : memref<32x32xf32, #tpu.memory_space<vmem>>, vector<32x32xf32>
    %cst = arith.constant dense<0.000000e+00> : vector<8x32xf32>
    %2 = tpu.matmul %0, %1, %cst {dimension_numbers = #tpu.dot_dimension_numbers<[1], [0], [0], [1], [0, 0, 1, 1], [], []>} : vector<8x32xf32>, vector<32x32xf32>, vector<8x32xf32> -> vector<8x32xf32>
    %c0_3 = arith.constant 0 : index
    %c0_4 = arith.constant 0 : index
    %3 = vector.load %arg3[%c0_3, %c0_4] : memref<1x32xf32, #tpu.memory_space<vmem>>, vector<1x32xf32>
    %4 = vector.broadcast %3 : vector<1x32xf32> to vector<8x32xf32>
    %5 = arith.addf %2, %4 : vector<8x32xf32>
    %c0_5 = arith.constant 0 : index
    %c0_6 = arith.constant 0 : index
    %6 = vector.load %arg4[%c0_5, %c0_6] : memref<32x32xf32, #tpu.memory_space<vmem>>, vector<32x32xf32>
    %cst_7 = arith.constant dense<0.000000e+00> : vector<8x32xf32>
    %7 = tpu.matmul %0, %6, %cst_7 {dimension_numbers = #tpu.dot_dimension_numbers<[1], [0], [0], [1], [0, 0, 1, 1], [], []>} : vector<8x32xf32>, vector<32x32xf32>, vector<8x32xf32> -> vector<8x32xf32>
    %c0_8 = arith.constant 0 : index
    %c0_9 = arith.constant 0 : index
    %8 = vector.load %arg5[%c0_8, %c0_9] : memref<1x32xf32, #tpu.memory_space<vmem>>, vector<1x32xf32>
    %9 = vector.broadcast %8 : vector<1x32xf32> to vector<8x32xf32>
    %10 = arith.addf %7, %9 : vector<8x32xf32>
    %c0_10 = arith.constant 0 : index
    %c0_11 = arith.constant 0 : index
    %11 = vector.load %arg6[%c0_10, %c0_11] : memref<32x32xf32, #tpu.memory_space<vmem>>, vector<32x32xf32>
    %cst_12 = arith.constant dense<0.000000e+00> : vector<8x32xf32>
    %12 = tpu.matmul %0, %11, %cst_12 {dimension_numbers = #tpu.dot_dimension_numbers<[1], [0], [0], [1], [0, 0, 1, 1], [], []>} : vector<8x32xf32>, vector<32x32xf32>, vector<8x32xf32> -> vector<8x32xf32>
    %c0_13 = arith.constant 0 : index
    %c0_14 = arith.constant 0 : index
    %13 = vector.load %arg7[%c0_13, %c0_14] : memref<1x32xf32, #tpu.memory_space<vmem>>, vector<1x32xf32>
    %14 = vector.broadcast %13 : vector<1x32xf32> to vector<8x32xf32>
    %15 = arith.addf %12, %14 : vector<8x32xf32>
    %c0_15 = arith.constant 0 : index
    %c0_16 = arith.constant 0 : index
    %16 = vector.load %arg8[%c0_15, %c0_16] : memref<8x32xf32, #tpu.memory_space<vmem>>, vector<8x32xf32>
    tpu.vector_store %arg8[%c0_15, %c0_16], %5 {strides = array<i32>} : memref<8x32xf32, #tpu.memory_space<vmem>>, vector<8x32xf32>,
    %c0_17 = arith.constant 0 : index
    %c0_18 = arith.constant 0 : index
    %17 = vector.load %arg9[%c0_17, %c0_18] : memref<8x32xf32, #tpu.memory_space<vmem>>, vector<8x32xf32>
    tpu.vector_store %arg9[%c0_17, %c0_18], %10 {strides = array<i32>} : memref<8x32xf32, #tpu.memory_space<vmem>>, vector<8x32xf32>,
    %c0_19 = arith.constant 0 : index
    %c0_20 = arith.constant 0 : index
    %18 = vector.load %arg10[%c0_19, %c0_20] : memref<8x32xf32, #tpu.memory_space<vmem>>, vector<8x32xf32>
    tpu.vector_store %arg10[%c0_19, %c0_20], %15 {strides = array<i32>} : memref<8x32xf32, #tpu.memory_space<vmem>>, vector<8x32xf32>,
    return
  }
  func.func @transform_0(%arg0: i32) -> (i32, i32) {
    %c0_i32 = arith.constant 0 : i32
    %c0_i32_0 = arith.constant 0 : i32
    return %arg0, %c0_i32 : i32, i32
  }
  func.func @transform_1(%arg0: i32) -> (i32, i32) {
    %c0_i32 = arith.constant 0 : i32
    %c0_i32_0 = arith.constant 0 : i32
    %c0_i32_1 = arith.constant 0 : i32
    return %c0_i32, %c0_i32_0 : i32, i32
  }
  func.func @transform_2(%arg0: i32) -> (i32, i32) {
    %c0_i32 = arith.constant 0 : i32
    %c0_i32_0 = arith.constant 0 : i32
    %c0_i32_1 = arith.constant 0 : i32
    return %c0_i32, %c0_i32_0 : i32, i32
  }
  func.func @transform_3(%arg0: i32) -> (i32, i32) {
    %c0_i32 = arith.constant 0 : i32
    %c0_i32_0 = arith.constant 0 : i32
    %c0_i32_1 = arith.constant 0 : i32
    return %c0_i32, %c0_i32_0 : i32, i32
  }
  func.func @transform_4(%arg0: i32) -> (i32, i32) {
    %c0_i32 = arith.constant 0 : i32
    %c0_i32_0 = arith.constant 0 : i32
    %c0_i32_1 = arith.constant 0 : i32
    return %c0_i32, %c0_i32_0 : i32, i32
  }
  func.func @transform_5(%arg0: i32) -> (i32, i32) {
    %c0_i32 = arith.constant 0 : i32
    %c0_i32_0 = arith.constant 0 : i32
    %c0_i32_1 = arith.constant 0 : i32
    return %c0_i32, %c0_i32_0 : i32, i32
  }
  func.func @transform_6(%arg0: i32) -> (i32, i32) {
    %c0_i32 = arith.constant 0 : i32
    %c0_i32_0 = arith.constant 0 : i32
    %c0_i32_1 = arith.constant 0 : i32
    return %c0_i32, %c0_i32_0 : i32, i32
  }
  func.func @transform_7(%arg0: i32) -> (i32, i32) {
    %c0_i32 = arith.constant 0 : i32
    %c0_i32_0 = arith.constant 0 : i32
    return %arg0, %c0_i32 : i32, i32
  }
  func.func @transform_8(%arg0: i32) -> (i32, i32) {
    %c0_i32 = arith.constant 0 : i32
    %c0_i32_0 = arith.constant 0 : i32
    return %arg0, %c0_i32 : i32, i32
  }
  func.func @transform_9(%arg0: i32) -> (i32, i32) {
    %c0_i32 = arith.constant 0 : i32
    %c0_i32_0 = arith.constant 0 : i32
    return %arg0, %c0_i32 : i32, i32
  }
}

module attributes {stable_mosaic.version = 11 : i64} {
  func.func @_proj_res_ln_kernel(%arg0: i32, %arg1: memref<8x32xf32, #tpu.memory_space<vmem>>, %arg2: memref<32x32xf32, #tpu.memory_space<vmem>>, %arg3: memref<1x32xf32, #tpu.memory_space<vmem>>, %arg4: memref<8x32xf32, #tpu.memory_space<vmem>>, %arg5: memref<1x32xf32, #tpu.memory_space<vmem>>, %arg6: memref<1x32xf32, #tpu.memory_space<vmem>>, %arg7: memref<8x32xf32, #tpu.memory_space<vmem>>) attributes {dimension_semantics = [#tpu.dimension_semantics<parallel>], iteration_bounds = array<i64: 2>, scalar_prefetch = 0 : i64, scratch_operands = 0 : i64, tpu.core_type = #tpu.core_type<tc>, window_params = [{transform_indices = @transform_0, window_bounds = array<i64: 8, 32>}, {pipeline_mode = #tpu.pipeline_mode<synchronous>, transform_indices = @transform_1, window_bounds = array<i64: 32, 32>}, {pipeline_mode = #tpu.pipeline_mode<synchronous>, transform_indices = @transform_2, window_bounds = array<i64: 1, 32>}, {transform_indices = @transform_3, window_bounds = array<i64: 8, 32>}, {pipeline_mode = #tpu.pipeline_mode<synchronous>, transform_indices = @transform_4, window_bounds = array<i64: 1, 32>}, {pipeline_mode = #tpu.pipeline_mode<synchronous>, transform_indices = @transform_5, window_bounds = array<i64: 1, 32>}, {transform_indices = @transform_6, window_bounds = array<i64: 8, 32>}]} {
    %c0 = arith.constant 0 : index
    %c0_0 = arith.constant 0 : index
    %0 = vector.load %arg1[%c0, %c0_0] : memref<8x32xf32, #tpu.memory_space<vmem>>, vector<8x32xf32>
    %c0_1 = arith.constant 0 : index
    %c0_2 = arith.constant 0 : index
    %1 = vector.load %arg2[%c0_1, %c0_2] : memref<32x32xf32, #tpu.memory_space<vmem>>, vector<32x32xf32>
    %cst = arith.constant dense<0.000000e+00> : vector<8x32xf32>
    %2 = tpu.matmul %0, %1, %cst {dimension_numbers = #tpu.dot_dimension_numbers<[1], [0], [0], [1], [0, 0, 1, 1], [], []>} : vector<8x32xf32>, vector<32x32xf32>, vector<8x32xf32> -> vector<8x32xf32>
    %c0_3 = arith.constant 0 : index
    %c0_4 = arith.constant 0 : index
    %3 = vector.load %arg3[%c0_3, %c0_4] : memref<1x32xf32, #tpu.memory_space<vmem>>, vector<1x32xf32>
    %4 = vector.broadcast %3 : vector<1x32xf32> to vector<8x32xf32>
    %5 = arith.addf %2, %4 : vector<8x32xf32>
    %c0_5 = arith.constant 0 : index
    %c0_6 = arith.constant 0 : index
    %6 = vector.load %arg4[%c0_5, %c0_6] : memref<8x32xf32, #tpu.memory_space<vmem>>, vector<8x32xf32>
    %7 = arith.addf %5, %6 : vector<8x32xf32>
    %cst_7 = arith.constant dense<0.000000e+00> : vector<8xf32>
    %8 = vector.multi_reduction <add>, %7, %cst_7 [1] : vector<8x32xf32> to vector<8xf32>
    %9 = vector.shape_cast %8 : vector<8xf32> to vector<8x1xf32>
    %cst_8 = arith.constant 3.200000e+01 : f32
    %10 = vector.broadcast %cst_8 : f32 to vector<8x1xf32>
    %11 = arith.divf %9, %10 : vector<8x1xf32>
    %12 = vector.broadcast %11 : vector<8x1xf32> to vector<8x32xf32>
    %13 = arith.subf %7, %12 : vector<8x32xf32>
    %14 = arith.mulf %13, %13 : vector<8x32xf32>
    %cst_9 = arith.constant dense<0.000000e+00> : vector<8xf32>
    %15 = vector.multi_reduction <add>, %14, %cst_9 [1] : vector<8x32xf32> to vector<8xf32>
    %16 = vector.shape_cast %15 : vector<8xf32> to vector<8x1xf32>
    %cst_10 = arith.constant 3.200000e+01 : f32
    %17 = vector.broadcast %cst_10 : f32 to vector<8x1xf32>
    %18 = arith.divf %16, %17 : vector<8x1xf32>
    %19 = vector.broadcast %11 : vector<8x1xf32> to vector<8x32xf32>
    %20 = arith.subf %7, %19 : vector<8x32xf32>
    %cst_11 = arith.constant 9.99999974E-6 : f32
    %21 = vector.broadcast %cst_11 : f32 to vector<8x1xf32>
    %22 = arith.addf %18, %21 : vector<8x1xf32>
    %23 = math.rsqrt %22 : vector<8x1xf32>
    %24 = vector.broadcast %23 : vector<8x1xf32> to vector<8x32xf32>
    %25 = arith.mulf %20, %24 : vector<8x32xf32>
    %c0_12 = arith.constant 0 : index
    %c0_13 = arith.constant 0 : index
    %26 = vector.load %arg5[%c0_12, %c0_13] : memref<1x32xf32, #tpu.memory_space<vmem>>, vector<1x32xf32>
    %27 = vector.broadcast %26 : vector<1x32xf32> to vector<8x32xf32>
    %28 = arith.mulf %25, %27 : vector<8x32xf32>
    %c0_14 = arith.constant 0 : index
    %c0_15 = arith.constant 0 : index
    %29 = vector.load %arg6[%c0_14, %c0_15] : memref<1x32xf32, #tpu.memory_space<vmem>>, vector<1x32xf32>
    %30 = vector.broadcast %29 : vector<1x32xf32> to vector<8x32xf32>
    %31 = arith.addf %28, %30 : vector<8x32xf32>
    %c0_16 = arith.constant 0 : index
    %c0_17 = arith.constant 0 : index
    %32 = vector.load %arg7[%c0_16, %c0_17] : memref<8x32xf32, #tpu.memory_space<vmem>>, vector<8x32xf32>
    tpu.vector_store %arg7[%c0_16, %c0_17], %31 {strides = array<i32>} : memref<8x32xf32, #tpu.memory_space<vmem>>, vector<8x32xf32>,
    return
  }
  func.func @transform_0(%arg0: i32) -> (i32, i32) {
    %c0_i32 = arith.constant 0 : i32
    %c0_i32_0 = arith.constant 0 : i32
    return %arg0, %c0_i32 : i32, i32
  }
  func.func @transform_1(%arg0: i32) -> (i32, i32) {
    %c0_i32 = arith.constant 0 : i32
    %c0_i32_0 = arith.constant 0 : i32
    %c0_i32_1 = arith.constant 0 : i32
    return %c0_i32, %c0_i32_0 : i32, i32
  }
  func.func @transform_2(%arg0: i32) -> (i32, i32) {
    %c0_i32 = arith.constant 0 : i32
    %c0_i32_0 = arith.constant 0 : i32
    %c0_i32_1 = arith.constant 0 : i32
    return %c0_i32, %c0_i32_0 : i32, i32
  }
  func.func @transform_3(%arg0: i32) -> (i32, i32) {
    %c0_i32 = arith.constant 0 : i32
    %c0_i32_0 = arith.constant 0 : i32
    return %arg0, %c0_i32 : i32, i32
  }
  func.func @transform_4(%arg0: i32) -> (i32, i32) {
    %c0_i32 = arith.constant 0 : i32
    %c0_i32_0 = arith.constant 0 : i32
    %c0_i32_1 = arith.constant 0 : i32
    return %c0_i32, %c0_i32_0 : i32, i32
  }
  func.func @transform_5(%arg0: i32) -> (i32, i32) {
    %c0_i32 = arith.constant 0 : i32
    %c0_i32_0 = arith.constant 0 : i32
    %c0_i32_1 = arith.constant 0 : i32
    return %c0_i32, %c0_i32_0 : i32, i32
  }
  func.func @transform_6(%arg0: i32) -> (i32, i32) {
    %c0_i32 = arith.constant 0 : i32
    %c0_i32_0 = arith.constant 0 : i32
    return %arg0, %c0_i32 : i32, i32
  }
}

module attributes {stable_mosaic.version = 11 : i64} {
  func.func @_attention_kernel(%arg0: i32, %arg1: memref<8x2x32xf32, #tpu.memory_space<vmem>>, %arg2: memref<8x2x32xf32, #tpu.memory_space<vmem>>, %arg3: memref<8x2x32xf32, #tpu.memory_space<vmem>>, %arg4: memref<8x2x32xf32, #tpu.memory_space<vmem>>, %arg5: memref<2x4x8x8xf32, #tpu.memory_space<vmem>>) attributes {dimension_semantics = [#tpu.dimension_semantics<parallel>], iteration_bounds = array<i64: 1>, scalar_prefetch = 0 : i64, scratch_operands = 0 : i64, tpu.core_type = #tpu.core_type<tc>, window_params = [{transform_indices = @transform_0, window_bounds = array<i64: 8, 2, 32>}, {pipeline_mode = #tpu.pipeline_mode<synchronous>, transform_indices = @transform_1, window_bounds = array<i64: 8, 2, 32>}, {pipeline_mode = #tpu.pipeline_mode<synchronous>, transform_indices = @transform_2, window_bounds = array<i64: 8, 2, 32>}, {transform_indices = @transform_3, window_bounds = array<i64: 8, 2, 32>}, {transform_indices = @transform_4, window_bounds = array<i64: 2, 4, 8, 8>}]} {
    %c0 = arith.constant 0 : index
    %c0_0 = arith.constant 0 : index
    %c0_1 = arith.constant 0 : index
    %0 = vector.load %arg1[%c0, %c0_0, %c0_1] : memref<8x2x32xf32, #tpu.memory_space<vmem>>, vector<8x1x32xf32>
    %1 = vector.shape_cast %0 : vector<8x1x32xf32> to vector<8x32xf32>
    %c0_2 = arith.constant 0 : index
    %c0_3 = arith.constant 0 : index
    %c0_4 = arith.constant 0 : index
    %2 = vector.load %arg2[%c0_2, %c0_3, %c0_4] : memref<8x2x32xf32, #tpu.memory_space<vmem>>, vector<8x1x32xf32>
    %3 = vector.shape_cast %2 : vector<8x1x32xf32> to vector<8x32xf32>
    %c0_5 = arith.constant 0 : index
    %c0_6 = arith.constant 0 : index
    %c0_7 = arith.constant 0 : index
    %4 = vector.load %arg3[%c0_5, %c0_6, %c0_7] : memref<8x2x32xf32, #tpu.memory_space<vmem>>, vector<8x1x32xf32>
    %5 = vector.shape_cast %4 : vector<8x1x32xf32> to vector<8x32xf32>
    %6 = vector.extract_strided_slice %1 {offsets = [0, 0], sizes = [8, 8], strides = [1, 1]} : vector<8x32xf32> to vector<8x8xf32>
    %7 = vector.extract_strided_slice %3 {offsets = [0, 0], sizes = [8, 8], strides = [1, 1]} : vector<8x32xf32> to vector<8x8xf32>
    %cst = arith.constant dense<0.000000e+00> : vector<8x8xf32>
    %8 = tpu.matmul %6, %7, %cst {dimension_numbers = #tpu.dot_dimension_numbers<[1], [1], [0], [0], [0, 0, 1, 0], [], []>} : vector<8x8xf32>, vector<8x8xf32>, vector<8x8xf32> -> vector<8x8xf32>
    %cst_8 = arith.constant dense<0xFF800000> : vector<8xf32>
    %9 = vector.multi_reduction <maximumf>, %8, %cst_8 [1] : vector<8x8xf32> to vector<8xf32>
    %10 = vector.shape_cast %9 : vector<8xf32> to vector<8x1xf32>
    %11 = vector.broadcast %10 : vector<8x1xf32> to vector<8x8xf32>
    %12 = arith.subf %8, %11 : vector<8x8xf32>
    %13 = math.exp %12 : vector<8x8xf32>
    %cst_9 = arith.constant dense<0.000000e+00> : vector<8xf32>
    %14 = vector.multi_reduction <add>, %13, %cst_9 [1] : vector<8x8xf32> to vector<8xf32>
    %15 = vector.shape_cast %14 : vector<8xf32> to vector<8x1xf32>
    %16 = tpu.reciprocal %15 {approx = true} : vector<8x1xf32> -> vector<8x1xf32>
    %17 = vector.broadcast %16 : vector<8x1xf32> to vector<8x8xf32>
    %18 = arith.mulf %13, %17 : vector<8x8xf32>
    %c0_10 = arith.constant 0 : index
    %c0_11 = arith.constant 0 : index
    %c0_12 = arith.constant 0 : index
    %c0_13 = arith.constant 0 : index
    %19 = vector.load %arg5[%c0_10, %c0_11, %c0_12, %c0_13] : memref<2x4x8x8xf32, #tpu.memory_space<vmem>>, vector<1x1x8x8xf32>
    %20 = vector.shape_cast %19 : vector<1x1x8x8xf32> to vector<8x8xf32>
    %21 = vector.shape_cast %18 : vector<8x8xf32> to vector<1x1x8x8xf32>
    tpu.vector_store %arg5[%c0_10, %c0_11, %c0_12, %c0_13], %21 {strides = array<i32>} : memref<2x4x8x8xf32, #tpu.memory_space<vmem>>, vector<1x1x8x8xf32>,
    %22 = vector.extract_strided_slice %5 {offsets = [0, 0], sizes = [8, 8], strides = [1, 1]} : vector<8x32xf32> to vector<8x8xf32>
    %cst_14 = arith.constant dense<0.000000e+00> : vector<8x8xf32>
    %23 = tpu.matmul %18, %22, %cst_14 {dimension_numbers = #tpu.dot_dimension_numbers<[1], [0], [0], [1], [0, 0, 1, 1], [], []>} : vector<8x8xf32>, vector<8x8xf32>, vector<8x8xf32> -> vector<8x8xf32>
    %24 = vector.extract_strided_slice %1 {offsets = [0, 8], sizes = [8, 8], strides = [1, 1]} : vector<8x32xf32> to vector<8x8xf32>
    %25 = vector.extract_strided_slice %3 {offsets = [0, 8], sizes = [8, 8], strides = [1, 1]} : vector<8x32xf32> to vector<8x8xf32>
    %cst_15 = arith.constant dense<0.000000e+00> : vector<8x8xf32>
    %26 = tpu.matmul %24, %25, %cst_15 {dimension_numbers = #tpu.dot_dimension_numbers<[1], [1], [0], [0], [0, 0, 1, 0], [], []>} : vector<8x8xf32>, vector<8x8xf32>, vector<8x8xf32> -> vector<8x8xf32>
    %cst_16 = arith.constant dense<0xFF800000> : vector<8xf32>
    %27 = vector.multi_reduction <maximumf>, %26, %cst_16 [1] : vector<8x8xf32> to vector<8xf32>
    %28 = vector.shape_cast %27 : vector<8xf32> to vector<8x1xf32>
    %29 = vector.broadcast %28 : vector<8x1xf32> to vector<8x8xf32>
    %30 = arith.subf %26, %29 : vector<8x8xf32>
    %31 = math.exp %30 : vector<8x8xf32>
    %cst_17 = arith.constant dense<0.000000e+00> : vector<8xf32>
    %32 = vector.multi_reduction <add>, %31, %cst_17 [1] : vector<8x8xf32> to vector<8xf32>
    %33 = vector.shape_cast %32 : vector<8xf32> to vector<8x1xf32>
    %34 = tpu.reciprocal %33 {approx = true} : vector<8x1xf32> -> vector<8x1xf32>
    %35 = vector.broadcast %34 : vector<8x1xf32> to vector<8x8xf32>
    %36 = arith.mulf %31, %35 : vector<8x8xf32>
    %c0_18 = arith.constant 0 : index
    %c1 = arith.constant 1 : index
    %c0_19 = arith.constant 0 : index
    %c0_20 = arith.constant 0 : index
    %37 = vector.load %arg5[%c0_18, %c1, %c0_19, %c0_20] : memref<2x4x8x8xf32, #tpu.memory_space<vmem>>, vector<1x1x8x8xf32>
    %38 = vector.shape_cast %37 : vector<1x1x8x8xf32> to vector<8x8xf32>
    %39 = vector.shape_cast %36 : vector<8x8xf32> to vector<1x1x8x8xf32>
    tpu.vector_store %arg5[%c0_18, %c1, %c0_19, %c0_20], %39 {strides = array<i32>} : memref<2x4x8x8xf32, #tpu.memory_space<vmem>>, vector<1x1x8x8xf32>,
    %40 = vector.extract_strided_slice %5 {offsets = [0, 8], sizes = [8, 8], strides = [1, 1]} : vector<8x32xf32> to vector<8x8xf32>
    %cst_21 = arith.constant dense<0.000000e+00> : vector<8x8xf32>
    %41 = tpu.matmul %36, %40, %cst_21 {dimension_numbers = #tpu.dot_dimension_numbers<[1], [0], [0], [1], [0, 0, 1, 1], [], []>} : vector<8x8xf32>, vector<8x8xf32>, vector<8x8xf32> -> vector<8x8xf32>
    %42 = vector.extract_strided_slice %1 {offsets = [0, 16], sizes = [8, 8], strides = [1, 1]} : vector<8x32xf32> to vector<8x8xf32>
    %43 = vector.extract_strided_slice %3 {offsets = [0, 16], sizes = [8, 8], strides = [1, 1]} : vector<8x32xf32> to vector<8x8xf32>
    %cst_22 = arith.constant dense<0.000000e+00> : vector<8x8xf32>
    %44 = tpu.matmul %42, %43, %cst_22 {dimension_numbers = #tpu.dot_dimension_numbers<[1], [1], [0], [0], [0, 0, 1, 0], [], []>} : vector<8x8xf32>, vector<8x8xf32>, vector<8x8xf32> -> vector<8x8xf32>
    %cst_23 = arith.constant dense<0xFF800000> : vector<8xf32>
    %45 = vector.multi_reduction <maximumf>, %44, %cst_23 [1] : vector<8x8xf32> to vector<8xf32>
    %46 = vector.shape_cast %45 : vector<8xf32> to vector<8x1xf32>
    %47 = vector.broadcast %46 : vector<8x1xf32> to vector<8x8xf32>
    %48 = arith.subf %44, %47 : vector<8x8xf32>
    %49 = math.exp %48 : vector<8x8xf32>
    %cst_24 = arith.constant dense<0.000000e+00> : vector<8xf32>
    %50 = vector.multi_reduction <add>, %49, %cst_24 [1] : vector<8x8xf32> to vector<8xf32>
    %51 = vector.shape_cast %50 : vector<8xf32> to vector<8x1xf32>
    %52 = tpu.reciprocal %51 {approx = true} : vector<8x1xf32> -> vector<8x1xf32>
    %53 = vector.broadcast %52 : vector<8x1xf32> to vector<8x8xf32>
    %54 = arith.mulf %49, %53 : vector<8x8xf32>
    %c0_25 = arith.constant 0 : index
    %c2 = arith.constant 2 : index
    %c0_26 = arith.constant 0 : index
    %c0_27 = arith.constant 0 : index
    %55 = vector.load %arg5[%c0_25, %c2, %c0_26, %c0_27] : memref<2x4x8x8xf32, #tpu.memory_space<vmem>>, vector<1x1x8x8xf32>
    %56 = vector.shape_cast %55 : vector<1x1x8x8xf32> to vector<8x8xf32>
    %57 = vector.shape_cast %54 : vector<8x8xf32> to vector<1x1x8x8xf32>
    tpu.vector_store %arg5[%c0_25, %c2, %c0_26, %c0_27], %57 {strides = array<i32>} : memref<2x4x8x8xf32, #tpu.memory_space<vmem>>, vector<1x1x8x8xf32>,
    %58 = vector.extract_strided_slice %5 {offsets = [0, 16], sizes = [8, 8], strides = [1, 1]} : vector<8x32xf32> to vector<8x8xf32>
    %cst_28 = arith.constant dense<0.000000e+00> : vector<8x8xf32>
    %59 = tpu.matmul %54, %58, %cst_28 {dimension_numbers = #tpu.dot_dimension_numbers<[1], [0], [0], [1], [0, 0, 1, 1], [], []>} : vector<8x8xf32>, vector<8x8xf32>, vector<8x8xf32> -> vector<8x8xf32>
    %60 = vector.extract_strided_slice %1 {offsets = [0, 24], sizes = [8, 8], strides = [1, 1]} : vector<8x32xf32> to vector<8x8xf32>
    %61 = vector.extract_strided_slice %3 {offsets = [0, 24], sizes = [8, 8], strides = [1, 1]} : vector<8x32xf32> to vector<8x8xf32>
    %cst_29 = arith.constant dense<0.000000e+00> : vector<8x8xf32>
    %62 = tpu.matmul %60, %61, %cst_29 {dimension_numbers = #tpu.dot_dimension_numbers<[1], [1], [0], [0], [0, 0, 1, 0], [], []>} : vector<8x8xf32>, vector<8x8xf32>, vector<8x8xf32> -> vector<8x8xf32>
    %cst_30 = arith.constant dense<0xFF800000> : vector<8xf32>
    %63 = vector.multi_reduction <maximumf>, %62, %cst_30 [1] : vector<8x8xf32> to vector<8xf32>
    %64 = vector.shape_cast %63 : vector<8xf32> to vector<8x1xf32>
    %65 = vector.broadcast %64 : vector<8x1xf32> to vector<8x8xf32>
    %66 = arith.subf %62, %65 : vector<8x8xf32>
    %67 = math.exp %66 : vector<8x8xf32>
    %cst_31 = arith.constant dense<0.000000e+00> : vector<8xf32>
    %68 = vector.multi_reduction <add>, %67, %cst_31 [1] : vector<8x8xf32> to vector<8xf32>
    %69 = vector.shape_cast %68 : vector<8xf32> to vector<8x1xf32>
    %70 = tpu.reciprocal %69 {approx = true} : vector<8x1xf32> -> vector<8x1xf32>
    %71 = vector.broadcast %70 : vector<8x1xf32> to vector<8x8xf32>
    %72 = arith.mulf %67, %71 : vector<8x8xf32>
    %c0_32 = arith.constant 0 : index
    %c3 = arith.constant 3 : index
    %c0_33 = arith.constant 0 : index
    %c0_34 = arith.constant 0 : index
    %73 = vector.load %arg5[%c0_32, %c3, %c0_33, %c0_34] : memref<2x4x8x8xf32, #tpu.memory_space<vmem>>, vector<1x1x8x8xf32>
    %74 = vector.shape_cast %73 : vector<1x1x8x8xf32> to vector<8x8xf32>
    %75 = vector.shape_cast %72 : vector<8x8xf32> to vector<1x1x8x8xf32>
    tpu.vector_store %arg5[%c0_32, %c3, %c0_33, %c0_34], %75 {strides = array<i32>} : memref<2x4x8x8xf32, #tpu.memory_space<vmem>>, vector<1x1x8x8xf32>,
    %76 = vector.extract_strided_slice %5 {offsets = [0, 24], sizes = [8, 8], strides = [1, 1]} : vector<8x32xf32> to vector<8x8xf32>
    %cst_35 = arith.constant dense<0.000000e+00> : vector<8x8xf32>
    %77 = tpu.matmul %72, %76, %cst_35 {dimension_numbers = #tpu.dot_dimension_numbers<[1], [0], [0], [1], [0, 0, 1, 1], [], []>} : vector<8x8xf32>, vector<8x8xf32>, vector<8x8xf32> -> vector<8x8xf32>
    %78 = tpu.concatenate %23, %41, %59, %77 in 1 : vector<8x8xf32>, vector<8x8xf32>, vector<8x8xf32>, vector<8x8xf32> -> vector<8x32xf32>
    %c0_36 = arith.constant 0 : index
    %c0_37 = arith.constant 0 : index
    %c0_38 = arith.constant 0 : index
    %79 = vector.load %arg4[%c0_36, %c0_37, %c0_38] : memref<8x2x32xf32, #tpu.memory_space<vmem>>, vector<8x1x32xf32>
    %80 = vector.shape_cast %79 : vector<8x1x32xf32> to vector<8x32xf32>
    %81 = vector.shape_cast %78 : vector<8x32xf32> to vector<8x1x32xf32>
    tpu.vector_store %arg4[%c0_36, %c0_37, %c0_38], %81 {strides = array<i32>} : memref<8x2x32xf32, #tpu.memory_space<vmem>>, vector<8x1x32xf32>,
    %c0_39 = arith.constant 0 : index
    %c1_40 = arith.constant 1 : index
    %c0_41 = arith.constant 0 : index
    %82 = vector.load %arg1[%c0_39, %c1_40, %c0_41] : memref<8x2x32xf32, #tpu.memory_space<vmem>>, vector<8x1x32xf32>
    %83 = vector.shape_cast %82 : vector<8x1x32xf32> to vector<8x32xf32>
    %c0_42 = arith.constant 0 : index
    %c1_43 = arith.constant 1 : index
    %c0_44 = arith.constant 0 : index
    %84 = vector.load %arg2[%c0_42, %c1_43, %c0_44] : memref<8x2x32xf32, #tpu.memory_space<vmem>>, vector<8x1x32xf32>
    %85 = vector.shape_cast %84 : vector<8x1x32xf32> to vector<8x32xf32>
    %c0_45 = arith.constant 0 : index
    %c1_46 = arith.constant 1 : index
    %c0_47 = arith.constant 0 : index
    %86 = vector.load %arg3[%c0_45, %c1_46, %c0_47] : memref<8x2x32xf32, #tpu.memory_space<vmem>>, vector<8x1x32xf32>
    %87 = vector.shape_cast %86 : vector<8x1x32xf32> to vector<8x32xf32>
    %88 = vector.extract_strided_slice %83 {offsets = [0, 0], sizes = [8, 8], strides = [1, 1]} : vector<8x32xf32> to vector<8x8xf32>
    %89 = vector.extract_strided_slice %85 {offsets = [0, 0], sizes = [8, 8], strides = [1, 1]} : vector<8x32xf32> to vector<8x8xf32>
    %cst_48 = arith.constant dense<0.000000e+00> : vector<8x8xf32>
    %90 = tpu.matmul %88, %89, %cst_48 {dimension_numbers = #tpu.dot_dimension_numbers<[1], [1], [0], [0], [0, 0, 1, 0], [], []>} : vector<8x8xf32>, vector<8x8xf32>, vector<8x8xf32> -> vector<8x8xf32>
    %cst_49 = arith.constant dense<0xFF800000> : vector<8xf32>
    %91 = vector.multi_reduction <maximumf>, %90, %cst_49 [1] : vector<8x8xf32> to vector<8xf32>
    %92 = vector.shape_cast %91 : vector<8xf32> to vector<8x1xf32>
    %93 = vector.broadcast %92 : vector<8x1xf32> to vector<8x8xf32>
    %94 = arith.subf %90, %93 : vector<8x8xf32>
    %95 = math.exp %94 : vector<8x8xf32>
    %cst_50 = arith.constant dense<0.000000e+00> : vector<8xf32>
    %96 = vector.multi_reduction <add>, %95, %cst_50 [1] : vector<8x8xf32> to vector<8xf32>
    %97 = vector.shape_cast %96 : vector<8xf32> to vector<8x1xf32>
    %98 = tpu.reciprocal %97 {approx = true} : vector<8x1xf32> -> vector<8x1xf32>
    %99 = vector.broadcast %98 : vector<8x1xf32> to vector<8x8xf32>
    %100 = arith.mulf %95, %99 : vector<8x8xf32>
    %c1_51 = arith.constant 1 : index
    %c0_52 = arith.constant 0 : index
    %c0_53 = arith.constant 0 : index
    %c0_54 = arith.constant 0 : index
    %101 = vector.load %arg5[%c1_51, %c0_52, %c0_53, %c0_54] : memref<2x4x8x8xf32, #tpu.memory_space<vmem>>, vector<1x1x8x8xf32>
    %102 = vector.shape_cast %101 : vector<1x1x8x8xf32> to vector<8x8xf32>
    %103 = vector.shape_cast %100 : vector<8x8xf32> to vector<1x1x8x8xf32>
    tpu.vector_store %arg5[%c1_51, %c0_52, %c0_53, %c0_54], %103 {strides = array<i32>} : memref<2x4x8x8xf32, #tpu.memory_space<vmem>>, vector<1x1x8x8xf32>,
    %104 = vector.extract_strided_slice %87 {offsets = [0, 0], sizes = [8, 8], strides = [1, 1]} : vector<8x32xf32> to vector<8x8xf32>
    %cst_55 = arith.constant dense<0.000000e+00> : vector<8x8xf32>
    %105 = tpu.matmul %100, %104, %cst_55 {dimension_numbers = #tpu.dot_dimension_numbers<[1], [0], [0], [1], [0, 0, 1, 1], [], []>} : vector<8x8xf32>, vector<8x8xf32>, vector<8x8xf32> -> vector<8x8xf32>
    %106 = vector.extract_strided_slice %83 {offsets = [0, 8], sizes = [8, 8], strides = [1, 1]} : vector<8x32xf32> to vector<8x8xf32>
    %107 = vector.extract_strided_slice %85 {offsets = [0, 8], sizes = [8, 8], strides = [1, 1]} : vector<8x32xf32> to vector<8x8xf32>
    %cst_56 = arith.constant dense<0.000000e+00> : vector<8x8xf32>
    %108 = tpu.matmul %106, %107, %cst_56 {dimension_numbers = #tpu.dot_dimension_numbers<[1], [1], [0], [0], [0, 0, 1, 0], [], []>} : vector<8x8xf32>, vector<8x8xf32>, vector<8x8xf32> -> vector<8x8xf32>
    %cst_57 = arith.constant dense<0xFF800000> : vector<8xf32>
    %109 = vector.multi_reduction <maximumf>, %108, %cst_57 [1] : vector<8x8xf32> to vector<8xf32>
    %110 = vector.shape_cast %109 : vector<8xf32> to vector<8x1xf32>
    %111 = vector.broadcast %110 : vector<8x1xf32> to vector<8x8xf32>
    %112 = arith.subf %108, %111 : vector<8x8xf32>
    %113 = math.exp %112 : vector<8x8xf32>
    %cst_58 = arith.constant dense<0.000000e+00> : vector<8xf32>
    %114 = vector.multi_reduction <add>, %113, %cst_58 [1] : vector<8x8xf32> to vector<8xf32>
    %115 = vector.shape_cast %114 : vector<8xf32> to vector<8x1xf32>
    %116 = tpu.reciprocal %115 {approx = true} : vector<8x1xf32> -> vector<8x1xf32>
    %117 = vector.broadcast %116 : vector<8x1xf32> to vector<8x8xf32>
    %118 = arith.mulf %113, %117 : vector<8x8xf32>
    %c1_59 = arith.constant 1 : index
    %c1_60 = arith.constant 1 : index
    %c0_61 = arith.constant 0 : index
    %c0_62 = arith.constant 0 : index
    %119 = vector.load %arg5[%c1_59, %c1_60, %c0_61, %c0_62] : memref<2x4x8x8xf32, #tpu.memory_space<vmem>>, vector<1x1x8x8xf32>
    %120 = vector.shape_cast %119 : vector<1x1x8x8xf32> to vector<8x8xf32>
    %121 = vector.shape_cast %118 : vector<8x8xf32> to vector<1x1x8x8xf32>
    tpu.vector_store %arg5[%c1_59, %c1_60, %c0_61, %c0_62], %121 {strides = array<i32>} : memref<2x4x8x8xf32, #tpu.memory_space<vmem>>, vector<1x1x8x8xf32>,
    %122 = vector.extract_strided_slice %87 {offsets = [0, 8], sizes = [8, 8], strides = [1, 1]} : vector<8x32xf32> to vector<8x8xf32>
    %cst_63 = arith.constant dense<0.000000e+00> : vector<8x8xf32>
    %123 = tpu.matmul %118, %122, %cst_63 {dimension_numbers = #tpu.dot_dimension_numbers<[1], [0], [0], [1], [0, 0, 1, 1], [], []>} : vector<8x8xf32>, vector<8x8xf32>, vector<8x8xf32> -> vector<8x8xf32>
    %124 = vector.extract_strided_slice %83 {offsets = [0, 16], sizes = [8, 8], strides = [1, 1]} : vector<8x32xf32> to vector<8x8xf32>
    %125 = vector.extract_strided_slice %85 {offsets = [0, 16], sizes = [8, 8], strides = [1, 1]} : vector<8x32xf32> to vector<8x8xf32>
    %cst_64 = arith.constant dense<0.000000e+00> : vector<8x8xf32>
    %126 = tpu.matmul %124, %125, %cst_64 {dimension_numbers = #tpu.dot_dimension_numbers<[1], [1], [0], [0], [0, 0, 1, 0], [], []>} : vector<8x8xf32>, vector<8x8xf32>, vector<8x8xf32> -> vector<8x8xf32>
    %cst_65 = arith.constant dense<0xFF800000> : vector<8xf32>
    %127 = vector.multi_reduction <maximumf>, %126, %cst_65 [1] : vector<8x8xf32> to vector<8xf32>
    %128 = vector.shape_cast %127 : vector<8xf32> to vector<8x1xf32>
    %129 = vector.broadcast %128 : vector<8x1xf32> to vector<8x8xf32>
    %130 = arith.subf %126, %129 : vector<8x8xf32>
    %131 = math.exp %130 : vector<8x8xf32>
    %cst_66 = arith.constant dense<0.000000e+00> : vector<8xf32>
    %132 = vector.multi_reduction <add>, %131, %cst_66 [1] : vector<8x8xf32> to vector<8xf32>
    %133 = vector.shape_cast %132 : vector<8xf32> to vector<8x1xf32>
    %134 = tpu.reciprocal %133 {approx = true} : vector<8x1xf32> -> vector<8x1xf32>
    %135 = vector.broadcast %134 : vector<8x1xf32> to vector<8x8xf32>
    %136 = arith.mulf %131, %135 : vector<8x8xf32>
    %c1_67 = arith.constant 1 : index
    %c2_68 = arith.constant 2 : index
    %c0_69 = arith.constant 0 : index
    %c0_70 = arith.constant 0 : index
    %137 = vector.load %arg5[%c1_67, %c2_68, %c0_69, %c0_70] : memref<2x4x8x8xf32, #tpu.memory_space<vmem>>, vector<1x1x8x8xf32>
    %138 = vector.shape_cast %137 : vector<1x1x8x8xf32> to vector<8x8xf32>
    %139 = vector.shape_cast %136 : vector<8x8xf32> to vector<1x1x8x8xf32>
    tpu.vector_store %arg5[%c1_67, %c2_68, %c0_69, %c0_70], %139 {strides = array<i32>} : memref<2x4x8x8xf32, #tpu.memory_space<vmem>>, vector<1x1x8x8xf32>,
    %140 = vector.extract_strided_slice %87 {offsets = [0, 16], sizes = [8, 8], strides = [1, 1]} : vector<8x32xf32> to vector<8x8xf32>
    %cst_71 = arith.constant dense<0.000000e+00> : vector<8x8xf32>
    %141 = tpu.matmul %136, %140, %cst_71 {dimension_numbers = #tpu.dot_dimension_numbers<[1], [0], [0], [1], [0, 0, 1, 1], [], []>} : vector<8x8xf32>, vector<8x8xf32>, vector<8x8xf32> -> vector<8x8xf32>
    %142 = vector.extract_strided_slice %83 {offsets = [0, 24], sizes = [8, 8], strides = [1, 1]} : vector<8x32xf32> to vector<8x8xf32>
    %143 = vector.extract_strided_slice %85 {offsets = [0, 24], sizes = [8, 8], strides = [1, 1]} : vector<8x32xf32> to vector<8x8xf32>
    %cst_72 = arith.constant dense<0.000000e+00> : vector<8x8xf32>
    %144 = tpu.matmul %142, %143, %cst_72 {dimension_numbers = #tpu.dot_dimension_numbers<[1], [1], [0], [0], [0, 0, 1, 0], [], []>} : vector<8x8xf32>, vector<8x8xf32>, vector<8x8xf32> -> vector<8x8xf32>
    %cst_73 = arith.constant dense<0xFF800000> : vector<8xf32>
    %145 = vector.multi_reduction <maximumf>, %144, %cst_73 [1] : vector<8x8xf32> to vector<8xf32>
    %146 = vector.shape_cast %145 : vector<8xf32> to vector<8x1xf32>
    %147 = vector.broadcast %146 : vector<8x1xf32> to vector<8x8xf32>
    %148 = arith.subf %144, %147 : vector<8x8xf32>
    %149 = math.exp %148 : vector<8x8xf32>
    %cst_74 = arith.constant dense<0.000000e+00> : vector<8xf32>
    %150 = vector.multi_reduction <add>, %149, %cst_74 [1] : vector<8x8xf32> to vector<8xf32>
    %151 = vector.shape_cast %150 : vector<8xf32> to vector<8x1xf32>
    %152 = tpu.reciprocal %151 {approx = true} : vector<8x1xf32> -> vector<8x1xf32>
    %153 = vector.broadcast %152 : vector<8x1xf32> to vector<8x8xf32>
    %154 = arith.mulf %149, %153 : vector<8x8xf32>
    %c1_75 = arith.constant 1 : index
    %c3_76 = arith.constant 3 : index
    %c0_77 = arith.constant 0 : index
    %c0_78 = arith.constant 0 : index
    %155 = vector.load %arg5[%c1_75, %c3_76, %c0_77, %c0_78] : memref<2x4x8x8xf32, #tpu.memory_space<vmem>>, vector<1x1x8x8xf32>
    %156 = vector.shape_cast %155 : vector<1x1x8x8xf32> to vector<8x8xf32>
    %157 = vector.shape_cast %154 : vector<8x8xf32> to vector<1x1x8x8xf32>
    tpu.vector_store %arg5[%c1_75, %c3_76, %c0_77, %c0_78], %157 {strides = array<i32>} : memref<2x4x8x8xf32, #tpu.memory_space<vmem>>, vector<1x1x8x8xf32>,
    %158 = vector.extract_strided_slice %87 {offsets = [0, 24], sizes = [8, 8], strides = [1, 1]} : vector<8x32xf32> to vector<8x8xf32>
    %cst_79 = arith.constant dense<0.000000e+00> : vector<8x8xf32>
    %159 = tpu.matmul %154, %158, %cst_79 {dimension_numbers = #tpu.dot_dimension_numbers<[1], [0], [0], [1], [0, 0, 1, 1], [], []>} : vector<8x8xf32>, vector<8x8xf32>, vector<8x8xf32> -> vector<8x8xf32>
    %160 = tpu.concatenate %105, %123, %141, %159 in 1 : vector<8x8xf32>, vector<8x8xf32>, vector<8x8xf32>, vector<8x8xf32> -> vector<8x32xf32>
    %c0_80 = arith.constant 0 : index
    %c1_81 = arith.constant 1 : index
    %c0_82 = arith.constant 0 : index
    %161 = vector.load %arg4[%c0_80, %c1_81, %c0_82] : memref<8x2x32xf32, #tpu.memory_space<vmem>>, vector<8x1x32xf32>
    %162 = vector.shape_cast %161 : vector<8x1x32xf32> to vector<8x32xf32>
    %163 = vector.shape_cast %160 : vector<8x32xf32> to vector<8x1x32xf32>
    tpu.vector_store %arg4[%c0_80, %c1_81, %c0_82], %163 {strides = array<i32>} : memref<8x2x32xf32, #tpu.memory_space<vmem>>, vector<8x1x32xf32>,
    return
  }
  func.func @transform_0(%arg0: i32) -> (i32, i32, i32) {
    %c0_i32 = arith.constant 0 : i32
    %c0_i32_0 = arith.constant 0 : i32
    %c0_i32_1 = arith.constant 0 : i32
    return %arg0, %c0_i32, %c0_i32_0 : i32, i32, i32
  }
  func.func @transform_1(%arg0: i32) -> (i32, i32, i32) {
    %c0_i32 = arith.constant 0 : i32
    %c0_i32_0 = arith.constant 0 : i32
    %c0_i32_1 = arith.constant 0 : i32
    %c0_i32_2 = arith.constant 0 : i32
    return %c0_i32, %c0_i32_0, %c0_i32_1 : i32, i32, i32
  }
  func.func @transform_2(%arg0: i32) -> (i32, i32, i32) {
    %c0_i32 = arith.constant 0 : i32
    %c0_i32_0 = arith.constant 0 : i32
    %c0_i32_1 = arith.constant 0 : i32
    %c0_i32_2 = arith.constant 0 : i32
    return %c0_i32, %c0_i32_0, %c0_i32_1 : i32, i32, i32
  }
  func.func @transform_3(%arg0: i32) -> (i32, i32, i32) {
    %c0_i32 = arith.constant 0 : i32
    %c0_i32_0 = arith.constant 0 : i32
    %c0_i32_1 = arith.constant 0 : i32
    return %arg0, %c0_i32, %c0_i32_0 : i32, i32, i32
  }
  func.func @transform_4(%arg0: i32) -> (i32, i32, i32, i32) {
    %c0_i32 = arith.constant 0 : i32
    %c0_i32_0 = arith.constant 0 : i32
    %c0_i32_1 = arith.constant 0 : i32
    %c0_i32_2 = arith.constant 0 : i32
    return %c0_i32, %c0_i32_0, %arg0, %c0_i32_1 : i32, i32, i32, i32
  }
}

module attributes {stable_mosaic.version = 11 : i64} {
  func.func @_kv_proj_kernel(%arg0: i32, %arg1: memref<8x32xf32, #tpu.memory_space<vmem>>, %arg2: memref<32x32xf32, #tpu.memory_space<vmem>>, %arg3: memref<1x32xf32, #tpu.memory_space<vmem>>, %arg4: memref<32x32xf32, #tpu.memory_space<vmem>>, %arg5: memref<1x32xf32, #tpu.memory_space<vmem>>, %arg6: memref<8x32xf32, #tpu.memory_space<vmem>>, %arg7: memref<8x32xf32, #tpu.memory_space<vmem>>) attributes {dimension_semantics = [#tpu.dimension_semantics<parallel>], iteration_bounds = array<i64: 3>, scalar_prefetch = 0 : i64, scratch_operands = 0 : i64, tpu.core_type = #tpu.core_type<tc>, window_params = [{transform_indices = @transform_0, window_bounds = array<i64: 8, 32>}, {pipeline_mode = #tpu.pipeline_mode<synchronous>, transform_indices = @transform_1, window_bounds = array<i64: 32, 32>}, {pipeline_mode = #tpu.pipeline_mode<synchronous>, transform_indices = @transform_2, window_bounds = array<i64: 1, 32>}, {pipeline_mode = #tpu.pipeline_mode<synchronous>, transform_indices = @transform_3, window_bounds = array<i64: 32, 32>}, {pipeline_mode = #tpu.pipeline_mode<synchronous>, transform_indices = @transform_4, window_bounds = array<i64: 1, 32>}, {transform_indices = @transform_5, window_bounds = array<i64: 8, 32>}, {transform_indices = @transform_6, window_bounds = array<i64: 8, 32>}]} {
    %c0 = arith.constant 0 : index
    %c0_0 = arith.constant 0 : index
    %0 = vector.load %arg1[%c0, %c0_0] : memref<8x32xf32, #tpu.memory_space<vmem>>, vector<8x32xf32>
    %c0_1 = arith.constant 0 : index
    %c0_2 = arith.constant 0 : index
    %1 = vector.load %arg2[%c0_1, %c0_2] : memref<32x32xf32, #tpu.memory_space<vmem>>, vector<32x32xf32>
    %cst = arith.constant dense<0.000000e+00> : vector<8x32xf32>
    %2 = tpu.matmul %0, %1, %cst {dimension_numbers = #tpu.dot_dimension_numbers<[1], [0], [0], [1], [0, 0, 1, 1], [], []>} : vector<8x32xf32>, vector<32x32xf32>, vector<8x32xf32> -> vector<8x32xf32>
    %c0_3 = arith.constant 0 : index
    %c0_4 = arith.constant 0 : index
    %3 = vector.load %arg3[%c0_3, %c0_4] : memref<1x32xf32, #tpu.memory_space<vmem>>, vector<1x32xf32>
    %4 = vector.broadcast %3 : vector<1x32xf32> to vector<8x32xf32>
    %5 = arith.addf %2, %4 : vector<8x32xf32>
    %c0_5 = arith.constant 0 : index
    %c0_6 = arith.constant 0 : index
    %6 = vector.load %arg4[%c0_5, %c0_6] : memref<32x32xf32, #tpu.memory_space<vmem>>, vector<32x32xf32>
    %cst_7 = arith.constant dense<0.000000e+00> : vector<8x32xf32>
    %7 = tpu.matmul %0, %6, %cst_7 {dimension_numbers = #tpu.dot_dimension_numbers<[1], [0], [0], [1], [0, 0, 1, 1], [], []>} : vector<8x32xf32>, vector<32x32xf32>, vector<8x32xf32> -> vector<8x32xf32>
    %c0_8 = arith.constant 0 : index
    %c0_9 = arith.constant 0 : index
    %8 = vector.load %arg5[%c0_8, %c0_9] : memref<1x32xf32, #tpu.memory_space<vmem>>, vector<1x32xf32>
    %9 = vector.broadcast %8 : vector<1x32xf32> to vector<8x32xf32>
    %10 = arith.addf %7, %9 : vector<8x32xf32>
    %c0_10 = arith.constant 0 : index
    %c0_11 = arith.constant 0 : index
    %11 = vector.load %arg6[%c0_10, %c0_11] : memref<8x32xf32, #tpu.memory_space<vmem>>, vector<8x32xf32>
    tpu.vector_store %arg6[%c0_10, %c0_11], %5 {strides = array<i32>} : memref<8x32xf32, #tpu.memory_space<vmem>>, vector<8x32xf32>,
    %c0_12 = arith.constant 0 : index
    %c0_13 = arith.constant 0 : index
    %12 = vector.load %arg7[%c0_12, %c0_13] : memref<8x32xf32, #tpu.memory_space<vmem>>, vector<8x32xf32>
    tpu.vector_store %arg7[%c0_12, %c0_13], %10 {strides = array<i32>} : memref<8x32xf32, #tpu.memory_space<vmem>>, vector<8x32xf32>,
    return
  }
  func.func @transform_0(%arg0: i32) -> (i32, i32) {
    %c0_i32 = arith.constant 0 : i32
    %c0_i32_0 = arith.constant 0 : i32
    return %arg0, %c0_i32 : i32, i32
  }
  func.func @transform_1(%arg0: i32) -> (i32, i32) {
    %c0_i32 = arith.constant 0 : i32
    %c0_i32_0 = arith.constant 0 : i32
    %c0_i32_1 = arith.constant 0 : i32
    return %c0_i32, %c0_i32_0 : i32, i32
  }
  func.func @transform_2(%arg0: i32) -> (i32, i32) {
    %c0_i32 = arith.constant 0 : i32
    %c0_i32_0 = arith.constant 0 : i32
    %c0_i32_1 = arith.constant 0 : i32
    return %c0_i32, %c0_i32_0 : i32, i32
  }
  func.func @transform_3(%arg0: i32) -> (i32, i32) {
    %c0_i32 = arith.constant 0 : i32
    %c0_i32_0 = arith.constant 0 : i32
    %c0_i32_1 = arith.constant 0 : i32
    return %c0_i32, %c0_i32_0 : i32, i32
  }
  func.func @transform_4(%arg0: i32) -> (i32, i32) {
    %c0_i32 = arith.constant 0 : i32
    %c0_i32_0 = arith.constant 0 : i32
    %c0_i32_1 = arith.constant 0 : i32
    return %c0_i32, %c0_i32_0 : i32, i32
  }
  func.func @transform_5(%arg0: i32) -> (i32, i32) {
    %c0_i32 = arith.constant 0 : i32
    %c0_i32_0 = arith.constant 0 : i32
    return %arg0, %c0_i32 : i32, i32
  }
  func.func @transform_6(%arg0: i32) -> (i32, i32) {
    %c0_i32 = arith.constant 0 : i32
    %c0_i32_0 = arith.constant 0 : i32
    return %arg0, %c0_i32 : i32, i32
  }
}

module attributes {stable_mosaic.version = 11 : i64} {
  func.func @_attention_kernel(%arg0: i32, %arg1: memref<8x2x32xf32, #tpu.memory_space<vmem>>, %arg2: memref<12x2x32xf32, #tpu.memory_space<vmem>>, %arg3: memref<12x2x32xf32, #tpu.memory_space<vmem>>, %arg4: memref<8x2x32xf32, #tpu.memory_space<vmem>>, %arg5: memref<2x8x12xf32, #tpu.memory_space<vmem>>) attributes {dimension_semantics = [#tpu.dimension_semantics<parallel>], iteration_bounds = array<i64: 1>, scalar_prefetch = 0 : i64, scratch_operands = 0 : i64, tpu.core_type = #tpu.core_type<tc>, window_params = [{transform_indices = @transform_0, window_bounds = array<i64: 8, 2, 32>}, {pipeline_mode = #tpu.pipeline_mode<synchronous>, transform_indices = @transform_1, window_bounds = array<i64: 12, 2, 32>}, {pipeline_mode = #tpu.pipeline_mode<synchronous>, transform_indices = @transform_2, window_bounds = array<i64: 12, 2, 32>}, {transform_indices = @transform_3, window_bounds = array<i64: 8, 2, 32>}, {transform_indices = @transform_4, window_bounds = array<i64: 2, 8, 12>}]} {
    %c0 = arith.constant 0 : index
    %c0_0 = arith.constant 0 : index
    %c0_1 = arith.constant 0 : index
    %0 = vector.load %arg1[%c0, %c0_0, %c0_1] : memref<8x2x32xf32, #tpu.memory_space<vmem>>, vector<8x1x32xf32>
    %1 = vector.shape_cast %0 : vector<8x1x32xf32> to vector<8x32xf32>
    %c0_2 = arith.constant 0 : index
    %c0_3 = arith.constant 0 : index
    %c0_4 = arith.constant 0 : index
    %2 = vector.load %arg2[%c0_2, %c0_3, %c0_4] : memref<12x2x32xf32, #tpu.memory_space<vmem>>, vector<12x1x32xf32>
    %3 = vector.shape_cast %2 : vector<12x1x32xf32> to vector<12x32xf32>
    %c0_5 = arith.constant 0 : index
    %c0_6 = arith.constant 0 : index
    %c0_7 = arith.constant 0 : index
    %4 = vector.load %arg3[%c0_5, %c0_6, %c0_7] : memref<12x2x32xf32, #tpu.memory_space<vmem>>, vector<12x1x32xf32>
    %5 = vector.shape_cast %4 : vector<12x1x32xf32> to vector<12x32xf32>
    %6 = vector.extract_strided_slice %1 {offsets = [0, 0], sizes = [8, 8], strides = [1, 1]} : vector<8x32xf32> to vector<8x8xf32>
    %7 = vector.extract_strided_slice %3 {offsets = [0, 0], sizes = [12, 8], strides = [1, 1]} : vector<12x32xf32> to vector<12x8xf32>
    %cst = arith.constant dense<0.000000e+00> : vector<8x12xf32>
    %8 = tpu.matmul %6, %7, %cst {dimension_numbers = #tpu.dot_dimension_numbers<[1], [1], [0], [0], [0, 0, 1, 0], [], []>} : vector<8x8xf32>, vector<12x8xf32>, vector<8x12xf32> -> vector<8x12xf32>
    %cst_8 = arith.constant dense<0xFF800000> : vector<8xf32>
    %9 = vector.multi_reduction <maximumf>, %8, %cst_8 [1] : vector<8x12xf32> to vector<8xf32>
    %10 = vector.shape_cast %9 : vector<8xf32> to vector<8x1xf32>
    %11 = vector.broadcast %10 : vector<8x1xf32> to vector<8x12xf32>
    %12 = arith.subf %8, %11 : vector<8x12xf32>
    %13 = math.exp %12 : vector<8x12xf32>
    %cst_9 = arith.constant dense<0.000000e+00> : vector<8xf32>
    %14 = vector.multi_reduction <add>, %13, %cst_9 [1] : vector<8x12xf32> to vector<8xf32>
    %15 = vector.shape_cast %14 : vector<8xf32> to vector<8x1xf32>
    %16 = tpu.reciprocal %15 {approx = true} : vector<8x1xf32> -> vector<8x1xf32>
    %17 = vector.broadcast %16 : vector<8x1xf32> to vector<8x12xf32>
    %18 = arith.mulf %13, %17 : vector<8x12xf32>
    %19 = vector.extract_strided_slice %5 {offsets = [0, 0], sizes = [12, 8], strides = [1, 1]} : vector<12x32xf32> to vector<12x8xf32>
    %cst_10 = arith.constant dense<0.000000e+00> : vector<8x8xf32>
    %20 = tpu.matmul %18, %19, %cst_10 {dimension_numbers = #tpu.dot_dimension_numbers<[1], [0], [0], [1], [0, 0, 1, 1], [], []>} : vector<8x12xf32>, vector<12x8xf32>, vector<8x8xf32> -> vector<8x8xf32>
    %21 = vector.extract_strided_slice %1 {offsets = [0, 8], sizes = [8, 8], strides = [1, 1]} : vector<8x32xf32> to vector<8x8xf32>
    %22 = vector.extract_strided_slice %3 {offsets = [0, 8], sizes = [12, 8], strides = [1, 1]} : vector<12x32xf32> to vector<12x8xf32>
    %cst_11 = arith.constant dense<0.000000e+00> : vector<8x12xf32>
    %23 = tpu.matmul %21, %22, %cst_11 {dimension_numbers = #tpu.dot_dimension_numbers<[1], [1], [0], [0], [0, 0, 1, 0], [], []>} : vector<8x8xf32>, vector<12x8xf32>, vector<8x12xf32> -> vector<8x12xf32>
    %cst_12 = arith.constant dense<0xFF800000> : vector<8xf32>
    %24 = vector.multi_reduction <maximumf>, %23, %cst_12 [1] : vector<8x12xf32> to vector<8xf32>
    %25 = vector.shape_cast %24 : vector<8xf32> to vector<8x1xf32>
    %26 = vector.broadcast %25 : vector<8x1xf32> to vector<8x12xf32>
    %27 = arith.subf %23, %26 : vector<8x12xf32>
    %28 = math.exp %27 : vector<8x12xf32>
    %cst_13 = arith.constant dense<0.000000e+00> : vector<8xf32>
    %29 = vector.multi_reduction <add>, %28, %cst_13 [1] : vector<8x12xf32> to vector<8xf32>
    %30 = vector.shape_cast %29 : vector<8xf32> to vector<8x1xf32>
    %31 = tpu.reciprocal %30 {approx = true} : vector<8x1xf32> -> vector<8x1xf32>
    %32 = vector.broadcast %31 : vector<8x1xf32> to vector<8x12xf32>
    %33 = arith.mulf %28, %32 : vector<8x12xf32>
    %34 = arith.addf %18, %33 : vector<8x12xf32>
    %35 = vector.extract_strided_slice %5 {offsets = [0, 8], sizes = [12, 8], strides = [1, 1]} : vector<12x32xf32> to vector<12x8xf32>
    %cst_14 = arith.constant dense<0.000000e+00> : vector<8x8xf32>
    %36 = tpu.matmul %33, %35, %cst_14 {dimension_numbers = #tpu.dot_dimension_numbers<[1], [0], [0], [1], [0, 0, 1, 1], [], []>} : vector<8x12xf32>, vector<12x8xf32>, vector<8x8xf32> -> vector<8x8xf32>
    %37 = vector.extract_strided_slice %1 {offsets = [0, 16], sizes = [8, 8], strides = [1, 1]} : vector<8x32xf32> to vector<8x8xf32>
    %38 = vector.extract_strided_slice %3 {offsets = [0, 16], sizes = [12, 8], strides = [1, 1]} : vector<12x32xf32> to vector<12x8xf32>
    %cst_15 = arith.constant dense<0.000000e+00> : vector<8x12xf32>
    %39 = tpu.matmul %37, %38, %cst_15 {dimension_numbers = #tpu.dot_dimension_numbers<[1], [1], [0], [0], [0, 0, 1, 0], [], []>} : vector<8x8xf32>, vector<12x8xf32>, vector<8x12xf32> -> vector<8x12xf32>
    %cst_16 = arith.constant dense<0xFF800000> : vector<8xf32>
    %40 = vector.multi_reduction <maximumf>, %39, %cst_16 [1] : vector<8x12xf32> to vector<8xf32>
    %41 = vector.shape_cast %40 : vector<8xf32> to vector<8x1xf32>
    %42 = vector.broadcast %41 : vector<8x1xf32> to vector<8x12xf32>
    %43 = arith.subf %39, %42 : vector<8x12xf32>
    %44 = math.exp %43 : vector<8x12xf32>
    %cst_17 = arith.constant dense<0.000000e+00> : vector<8xf32>
    %45 = vector.multi_reduction <add>, %44, %cst_17 [1] : vector<8x12xf32> to vector<8xf32>
    %46 = vector.shape_cast %45 : vector<8xf32> to vector<8x1xf32>
    %47 = tpu.reciprocal %46 {approx = true} : vector<8x1xf32> -> vector<8x1xf32>
    %48 = vector.broadcast %47 : vector<8x1xf32> to vector<8x12xf32>
    %49 = arith.mulf %44, %48 : vector<8x12xf32>
    %50 = arith.addf %34, %49 : vector<8x12xf32>
    %51 = vector.extract_strided_slice %5 {offsets = [0, 16], sizes = [12, 8], strides = [1, 1]} : vector<12x32xf32> to vector<12x8xf32>
    %cst_18 = arith.constant dense<0.000000e+00> : vector<8x8xf32>
    %52 = tpu.matmul %49, %51, %cst_18 {dimension_numbers = #tpu.dot_dimension_numbers<[1], [0], [0], [1], [0, 0, 1, 1], [], []>} : vector<8x12xf32>, vector<12x8xf32>, vector<8x8xf32> -> vector<8x8xf32>
    %53 = vector.extract_strided_slice %1 {offsets = [0, 24], sizes = [8, 8], strides = [1, 1]} : vector<8x32xf32> to vector<8x8xf32>
    %54 = vector.extract_strided_slice %3 {offsets = [0, 24], sizes = [12, 8], strides = [1, 1]} : vector<12x32xf32> to vector<12x8xf32>
    %cst_19 = arith.constant dense<0.000000e+00> : vector<8x12xf32>
    %55 = tpu.matmul %53, %54, %cst_19 {dimension_numbers = #tpu.dot_dimension_numbers<[1], [1], [0], [0], [0, 0, 1, 0], [], []>} : vector<8x8xf32>, vector<12x8xf32>, vector<8x12xf32> -> vector<8x12xf32>
    %cst_20 = arith.constant dense<0xFF800000> : vector<8xf32>
    %56 = vector.multi_reduction <maximumf>, %55, %cst_20 [1] : vector<8x12xf32> to vector<8xf32>
    %57 = vector.shape_cast %56 : vector<8xf32> to vector<8x1xf32>
    %58 = vector.broadcast %57 : vector<8x1xf32> to vector<8x12xf32>
    %59 = arith.subf %55, %58 : vector<8x12xf32>
    %60 = math.exp %59 : vector<8x12xf32>
    %cst_21 = arith.constant dense<0.000000e+00> : vector<8xf32>
    %61 = vector.multi_reduction <add>, %60, %cst_21 [1] : vector<8x12xf32> to vector<8xf32>
    %62 = vector.shape_cast %61 : vector<8xf32> to vector<8x1xf32>
    %63 = tpu.reciprocal %62 {approx = true} : vector<8x1xf32> -> vector<8x1xf32>
    %64 = vector.broadcast %63 : vector<8x1xf32> to vector<8x12xf32>
    %65 = arith.mulf %60, %64 : vector<8x12xf32>
    %66 = arith.addf %50, %65 : vector<8x12xf32>
    %67 = vector.extract_strided_slice %5 {offsets = [0, 24], sizes = [12, 8], strides = [1, 1]} : vector<12x32xf32> to vector<12x8xf32>
    %cst_22 = arith.constant dense<0.000000e+00> : vector<8x8xf32>
    %68 = tpu.matmul %65, %67, %cst_22 {dimension_numbers = #tpu.dot_dimension_numbers<[1], [0], [0], [1], [0, 0, 1, 1], [], []>} : vector<8x12xf32>, vector<12x8xf32>, vector<8x8xf32> -> vector<8x8xf32>
    %69 = tpu.concatenate %20, %36, %52, %68 in 1 : vector<8x8xf32>, vector<8x8xf32>, vector<8x8xf32>, vector<8x8xf32> -> vector<8x32xf32>
    %c0_23 = arith.constant 0 : index
    %c0_24 = arith.constant 0 : index
    %c0_25 = arith.constant 0 : index
    %70 = vector.load %arg4[%c0_23, %c0_24, %c0_25] : memref<8x2x32xf32, #tpu.memory_space<vmem>>, vector<8x1x32xf32>
    %71 = vector.shape_cast %70 : vector<8x1x32xf32> to vector<8x32xf32>
    %72 = vector.shape_cast %69 : vector<8x32xf32> to vector<8x1x32xf32>
    tpu.vector_store %arg4[%c0_23, %c0_24, %c0_25], %72 {strides = array<i32>} : memref<8x2x32xf32, #tpu.memory_space<vmem>>, vector<8x1x32xf32>,
    %cst_26 = arith.constant 2.500000e-01 : f32
    %73 = vector.broadcast %cst_26 : f32 to vector<8x12xf32>
    %74 = arith.mulf %66, %73 : vector<8x12xf32>
    %c0_27 = arith.constant 0 : index
    %c0_28 = arith.constant 0 : index
    %c0_29 = arith.constant 0 : index
    %75 = vector.load %arg5[%c0_27, %c0_28, %c0_29] : memref<2x8x12xf32, #tpu.memory_space<vmem>>, vector<1x8x12xf32>
    %76 = vector.shape_cast %75 : vector<1x8x12xf32> to vector<8x12xf32>
    %77 = vector.shape_cast %74 : vector<8x12xf32> to vector<1x8x12xf32>
    tpu.vector_store %arg5[%c0_27, %c0_28, %c0_29], %77 {strides = array<i32>} : memref<2x8x12xf32, #tpu.memory_space<vmem>>, vector<1x8x12xf32>,
    %c0_30 = arith.constant 0 : index
    %c1 = arith.constant 1 : index
    %c0_31 = arith.constant 0 : index
    %78 = vector.load %arg1[%c0_30, %c1, %c0_31] : memref<8x2x32xf32, #tpu.memory_space<vmem>>, vector<8x1x32xf32>
    %79 = vector.shape_cast %78 : vector<8x1x32xf32> to vector<8x32xf32>
    %c0_32 = arith.constant 0 : index
    %c1_33 = arith.constant 1 : index
    %c0_34 = arith.constant 0 : index
    %80 = vector.load %arg2[%c0_32, %c1_33, %c0_34] : memref<12x2x32xf32, #tpu.memory_space<vmem>>, vector<12x1x32xf32>
    %81 = vector.shape_cast %80 : vector<12x1x32xf32> to vector<12x32xf32>
    %c0_35 = arith.constant 0 : index
    %c1_36 = arith.constant 1 : index
    %c0_37 = arith.constant 0 : index
    %82 = vector.load %arg3[%c0_35, %c1_36, %c0_37] : memref<12x2x32xf32, #tpu.memory_space<vmem>>, vector<12x1x32xf32>
    %83 = vector.shape_cast %82 : vector<12x1x32xf32> to vector<12x32xf32>
    %84 = vector.extract_strided_slice %79 {offsets = [0, 0], sizes = [8, 8], strides = [1, 1]} : vector<8x32xf32> to vector<8x8xf32>
    %85 = vector.extract_strided_slice %81 {offsets = [0, 0], sizes = [12, 8], strides = [1, 1]} : vector<12x32xf32> to vector<12x8xf32>
    %cst_38 = arith.constant dense<0.000000e+00> : vector<8x12xf32>
    %86 = tpu.matmul %84, %85, %cst_38 {dimension_numbers = #tpu.dot_dimension_numbers<[1], [1], [0], [0], [0, 0, 1, 0], [], []>} : vector<8x8xf32>, vector<12x8xf32>, vector<8x12xf32> -> vector<8x12xf32>
    %cst_39 = arith.constant dense<0xFF800000> : vector<8xf32>
    %87 = vector.multi_reduction <maximumf>, %86, %cst_39 [1] : vector<8x12xf32> to vector<8xf32>
    %88 = vector.shape_cast %87 : vector<8xf32> to vector<8x1xf32>
    %89 = vector.broadcast %88 : vector<8x1xf32> to vector<8x12xf32>
    %90 = arith.subf %86, %89 : vector<8x12xf32>
    %91 = math.exp %90 : vector<8x12xf32>
    %cst_40 = arith.constant dense<0.000000e+00> : vector<8xf32>
    %92 = vector.multi_reduction <add>, %91, %cst_40 [1] : vector<8x12xf32> to vector<8xf32>
    %93 = vector.shape_cast %92 : vector<8xf32> to vector<8x1xf32>
    %94 = tpu.reciprocal %93 {approx = true} : vector<8x1xf32> -> vector<8x1xf32>
    %95 = vector.broadcast %94 : vector<8x1xf32> to vector<8x12xf32>
    %96 = arith.mulf %91, %95 : vector<8x12xf32>
    %97 = vector.extract_strided_slice %83 {offsets = [0, 0], sizes = [12, 8], strides = [1, 1]} : vector<12x32xf32> to vector<12x8xf32>
    %cst_41 = arith.constant dense<0.000000e+00> : vector<8x8xf32>
    %98 = tpu.matmul %96, %97, %cst_41 {dimension_numbers = #tpu.dot_dimension_numbers<[1], [0], [0], [1], [0, 0, 1, 1], [], []>} : vector<8x12xf32>, vector<12x8xf32>, vector<8x8xf32> -> vector<8x8xf32>
    %99 = vector.extract_strided_slice %79 {offsets = [0, 8], sizes = [8, 8], strides = [1, 1]} : vector<8x32xf32> to vector<8x8xf32>
    %100 = vector.extract_strided_slice %81 {offsets = [0, 8], sizes = [12, 8], strides = [1, 1]} : vector<12x32xf32> to vector<12x8xf32>
    %cst_42 = arith.constant dense<0.000000e+00> : vector<8x12xf32>
    %101 = tpu.matmul %99, %100, %cst_42 {dimension_numbers = #tpu.dot_dimension_numbers<[1], [1], [0], [0], [0, 0, 1, 0], [], []>} : vector<8x8xf32>, vector<12x8xf32>, vector<8x12xf32> -> vector<8x12xf32>
    %cst_43 = arith.constant dense<0xFF800000> : vector<8xf32>
    %102 = vector.multi_reduction <maximumf>, %101, %cst_43 [1] : vector<8x12xf32> to vector<8xf32>
    %103 = vector.shape_cast %102 : vector<8xf32> to vector<8x1xf32>
    %104 = vector.broadcast %103 : vector<8x1xf32> to vector<8x12xf32>
    %105 = arith.subf %101, %104 : vector<8x12xf32>
    %106 = math.exp %105 : vector<8x12xf32>
    %cst_44 = arith.constant dense<0.000000e+00> : vector<8xf32>
    %107 = vector.multi_reduction <add>, %106, %cst_44 [1] : vector<8x12xf32> to vector<8xf32>
    %108 = vector.shape_cast %107 : vector<8xf32> to vector<8x1xf32>
    %109 = tpu.reciprocal %108 {approx = true} : vector<8x1xf32> -> vector<8x1xf32>
    %110 = vector.broadcast %109 : vector<8x1xf32> to vector<8x12xf32>
    %111 = arith.mulf %106, %110 : vector<8x12xf32>
    %112 = arith.addf %96, %111 : vector<8x12xf32>
    %113 = vector.extract_strided_slice %83 {offsets = [0, 8], sizes = [12, 8], strides = [1, 1]} : vector<12x32xf32> to vector<12x8xf32>
    %cst_45 = arith.constant dense<0.000000e+00> : vector<8x8xf32>
    %114 = tpu.matmul %111, %113, %cst_45 {dimension_numbers = #tpu.dot_dimension_numbers<[1], [0], [0], [1], [0, 0, 1, 1], [], []>} : vector<8x12xf32>, vector<12x8xf32>, vector<8x8xf32> -> vector<8x8xf32>
    %115 = vector.extract_strided_slice %79 {offsets = [0, 16], sizes = [8, 8], strides = [1, 1]} : vector<8x32xf32> to vector<8x8xf32>
    %116 = vector.extract_strided_slice %81 {offsets = [0, 16], sizes = [12, 8], strides = [1, 1]} : vector<12x32xf32> to vector<12x8xf32>
    %cst_46 = arith.constant dense<0.000000e+00> : vector<8x12xf32>
    %117 = tpu.matmul %115, %116, %cst_46 {dimension_numbers = #tpu.dot_dimension_numbers<[1], [1], [0], [0], [0, 0, 1, 0], [], []>} : vector<8x8xf32>, vector<12x8xf32>, vector<8x12xf32> -> vector<8x12xf32>
    %cst_47 = arith.constant dense<0xFF800000> : vector<8xf32>
    %118 = vector.multi_reduction <maximumf>, %117, %cst_47 [1] : vector<8x12xf32> to vector<8xf32>
    %119 = vector.shape_cast %118 : vector<8xf32> to vector<8x1xf32>
    %120 = vector.broadcast %119 : vector<8x1xf32> to vector<8x12xf32>
    %121 = arith.subf %117, %120 : vector<8x12xf32>
    %122 = math.exp %121 : vector<8x12xf32>
    %cst_48 = arith.constant dense<0.000000e+00> : vector<8xf32>
    %123 = vector.multi_reduction <add>, %122, %cst_48 [1] : vector<8x12xf32> to vector<8xf32>
    %124 = vector.shape_cast %123 : vector<8xf32> to vector<8x1xf32>
    %125 = tpu.reciprocal %124 {approx = true} : vector<8x1xf32> -> vector<8x1xf32>
    %126 = vector.broadcast %125 : vector<8x1xf32> to vector<8x12xf32>
    %127 = arith.mulf %122, %126 : vector<8x12xf32>
    %128 = arith.addf %112, %127 : vector<8x12xf32>
    %129 = vector.extract_strided_slice %83 {offsets = [0, 16], sizes = [12, 8], strides = [1, 1]} : vector<12x32xf32> to vector<12x8xf32>
    %cst_49 = arith.constant dense<0.000000e+00> : vector<8x8xf32>
    %130 = tpu.matmul %127, %129, %cst_49 {dimension_numbers = #tpu.dot_dimension_numbers<[1], [0], [0], [1], [0, 0, 1, 1], [], []>} : vector<8x12xf32>, vector<12x8xf32>, vector<8x8xf32> -> vector<8x8xf32>
    %131 = vector.extract_strided_slice %79 {offsets = [0, 24], sizes = [8, 8], strides = [1, 1]} : vector<8x32xf32> to vector<8x8xf32>
    %132 = vector.extract_strided_slice %81 {offsets = [0, 24], sizes = [12, 8], strides = [1, 1]} : vector<12x32xf32> to vector<12x8xf32>
    %cst_50 = arith.constant dense<0.000000e+00> : vector<8x12xf32>
    %133 = tpu.matmul %131, %132, %cst_50 {dimension_numbers = #tpu.dot_dimension_numbers<[1], [1], [0], [0], [0, 0, 1, 0], [], []>} : vector<8x8xf32>, vector<12x8xf32>, vector<8x12xf32> -> vector<8x12xf32>
    %cst_51 = arith.constant dense<0xFF800000> : vector<8xf32>
    %134 = vector.multi_reduction <maximumf>, %133, %cst_51 [1] : vector<8x12xf32> to vector<8xf32>
    %135 = vector.shape_cast %134 : vector<8xf32> to vector<8x1xf32>
    %136 = vector.broadcast %135 : vector<8x1xf32> to vector<8x12xf32>
    %137 = arith.subf %133, %136 : vector<8x12xf32>
    %138 = math.exp %137 : vector<8x12xf32>
    %cst_52 = arith.constant dense<0.000000e+00> : vector<8xf32>
    %139 = vector.multi_reduction <add>, %138, %cst_52 [1] : vector<8x12xf32> to vector<8xf32>
    %140 = vector.shape_cast %139 : vector<8xf32> to vector<8x1xf32>
    %141 = tpu.reciprocal %140 {approx = true} : vector<8x1xf32> -> vector<8x1xf32>
    %142 = vector.broadcast %141 : vector<8x1xf32> to vector<8x12xf32>
    %143 = arith.mulf %138, %142 : vector<8x12xf32>
    %144 = arith.addf %128, %143 : vector<8x12xf32>
    %145 = vector.extract_strided_slice %83 {offsets = [0, 24], sizes = [12, 8], strides = [1, 1]} : vector<12x32xf32> to vector<12x8xf32>
    %cst_53 = arith.constant dense<0.000000e+00> : vector<8x8xf32>
    %146 = tpu.matmul %143, %145, %cst_53 {dimension_numbers = #tpu.dot_dimension_numbers<[1], [0], [0], [1], [0, 0, 1, 1], [], []>} : vector<8x12xf32>, vector<12x8xf32>, vector<8x8xf32> -> vector<8x8xf32>
    %147 = tpu.concatenate %98, %114, %130, %146 in 1 : vector<8x8xf32>, vector<8x8xf32>, vector<8x8xf32>, vector<8x8xf32> -> vector<8x32xf32>
    %c0_54 = arith.constant 0 : index
    %c1_55 = arith.constant 1 : index
    %c0_56 = arith.constant 0 : index
    %148 = vector.load %arg4[%c0_54, %c1_55, %c0_56] : memref<8x2x32xf32, #tpu.memory_space<vmem>>, vector<8x1x32xf32>
    %149 = vector.shape_cast %148 : vector<8x1x32xf32> to vector<8x32xf32>
    %150 = vector.shape_cast %147 : vector<8x32xf32> to vector<8x1x32xf32>
    tpu.vector_store %arg4[%c0_54, %c1_55, %c0_56], %150 {strides = array<i32>} : memref<8x2x32xf32, #tpu.memory_space<vmem>>, vector<8x1x32xf32>,
    %cst_57 = arith.constant 2.500000e-01 : f32
    %151 = vector.broadcast %cst_57 : f32 to vector<8x12xf32>
    %152 = arith.mulf %144, %151 : vector<8x12xf32>
    %c1_58 = arith.constant 1 : index
    %c0_59 = arith.constant 0 : index
    %c0_60 = arith.constant 0 : index
    %153 = vector.load %arg5[%c1_58, %c0_59, %c0_60] : memref<2x8x12xf32, #tpu.memory_space<vmem>>, vector<1x8x12xf32>
    %154 = vector.shape_cast %153 : vector<1x8x12xf32> to vector<8x12xf32>
    %155 = vector.shape_cast %152 : vector<8x12xf32> to vector<1x8x12xf32>
    tpu.vector_store %arg5[%c1_58, %c0_59, %c0_60], %155 {strides = array<i32>} : memref<2x8x12xf32, #tpu.memory_space<vmem>>, vector<1x8x12xf32>,
    return
  }
  func.func @transform_0(%arg0: i32) -> (i32, i32, i32) {
    %c0_i32 = arith.constant 0 : i32
    %c0_i32_0 = arith.constant 0 : i32
    %c0_i32_1 = arith.constant 0 : i32
    return %arg0, %c0_i32, %c0_i32_0 : i32, i32, i32
  }
  func.func @transform_1(%arg0: i32) -> (i32, i32, i32) {
    %c0_i32 = arith.constant 0 : i32
    %c0_i32_0 = arith.constant 0 : i32
    %c0_i32_1 = arith.constant 0 : i32
    %c0_i32_2 = arith.constant 0 : i32
    return %c0_i32, %c0_i32_0, %c0_i32_1 : i32, i32, i32
  }
  func.func @transform_2(%arg0: i32) -> (i32, i32, i32) {
    %c0_i32 = arith.constant 0 : i32
    %c0_i32_0 = arith.constant 0 : i32
    %c0_i32_1 = arith.constant 0 : i32
    %c0_i32_2 = arith.constant 0 : i32
    return %c0_i32, %c0_i32_0, %c0_i32_1 : i32, i32, i32
  }
  func.func @transform_3(%arg0: i32) -> (i32, i32, i32) {
    %c0_i32 = arith.constant 0 : i32
    %c0_i32_0 = arith.constant 0 : i32
    %c0_i32_1 = arith.constant 0 : i32
    return %arg0, %c0_i32, %c0_i32_0 : i32, i32, i32
  }
  func.func @transform_4(%arg0: i32) -> (i32, i32, i32) {
    %c0_i32 = arith.constant 0 : i32
    %c0_i32_0 = arith.constant 0 : i32
    %c0_i32_1 = arith.constant 0 : i32
    return %c0_i32, %arg0, %c0_i32_0 : i32, i32, i32
  }
}

module attributes {stable_mosaic.version = 11 : i64} {
  func.func @_ffn_res_ln_kernel(%arg0: i32, %arg1: i32, %arg2: memref<8x32xf32, #tpu.memory_space<vmem>>, %arg3: memref<32x64xf32, #tpu.memory_space<vmem>>, %arg4: memref<1x64xf32, #tpu.memory_space<vmem>>, %arg5: memref<64x32xf32, #tpu.memory_space<vmem>>, %arg6: memref<1x32xf32, #tpu.memory_space<vmem>>, %arg7: memref<1x32xf32, #tpu.memory_space<vmem>>, %arg8: memref<1x32xf32, #tpu.memory_space<vmem>>, %arg9: memref<8x32xf32, #tpu.memory_space<vmem>>, %arg10: memref<8x32xf32, #tpu.memory_space<vmem>>) attributes {dimension_semantics = [#tpu.dimension_semantics<parallel>, #tpu.dimension_semantics<arbitrary>], iteration_bounds = array<i64: 2, 1>, scalar_prefetch = 0 : i64, scratch_operands = 1 : i64, tpu.core_type = #tpu.core_type<tc>, window_params = [{transform_indices = @transform_0, window_bounds = array<i64: 8, 32>}, {transform_indices = @transform_1, window_bounds = array<i64: 32, 64>}, {transform_indices = @transform_2, window_bounds = array<i64: 1, 64>}, {transform_indices = @transform_3, window_bounds = array<i64: 64, 32>}, {pipeline_mode = #tpu.pipeline_mode<synchronous>, transform_indices = @transform_4, window_bounds = array<i64: 1, 32>}, {pipeline_mode = #tpu.pipeline_mode<synchronous>, transform_indices = @transform_5, window_bounds = array<i64: 1, 32>}, {pipeline_mode = #tpu.pipeline_mode<synchronous>, transform_indices = @transform_6, window_bounds = array<i64: 1, 32>}, {transform_indices = @transform_7, window_bounds = array<i64: 8, 32>}]} {
    %c0_i32 = arith.constant 0 : i32
    %0 = arith.cmpi eq, %arg1, %c0_i32 : i32
    %1 = arith.extui %0 : i1 to i32
    %c0_i32_0 = arith.constant 0 : i32
    %2 = arith.cmpi ne, %1, %c0_i32_0 : i32
    scf.if %2 {
      %cst_16 = arith.constant 0.000000e+00 : f32
      %19 = vector.broadcast %cst_16 : f32 to vector<8x32xf32>
      %c0_17 = arith.constant 0 : index
      %c0_18 = arith.constant 0 : index
      %20 = vector.load %arg10[%c0_17, %c0_18] : memref<8x32xf32, #tpu.memory_space<vmem>>, vector<8x32xf32>
      tpu.vector_store %arg10[%c0_17, %c0_18], %19 {strides = array<i32>} : memref<8x32xf32, #tpu.memory_space<vmem>>, vector<8x32xf32>,
    } else {
    }
    %c0 = arith.constant 0 : index
    %c0_1 = arith.constant 0 : index
    %3 = vector.load %arg2[%c0, %c0_1] : memref<8x32xf32, #tpu.memory_space<vmem>>, vector<8x32xf32>
    %c0_2 = arith.constant 0 : index
    %c0_3 = arith.constant 0 : index
    %4 = vector.load %arg3[%c0_2, %c0_3] : memref<32x64xf32, #tpu.memory_space<vmem>>, vector<32x64xf32>
    %cst = arith.constant dense<0.000000e+00> : vector<8x64xf32>
    %5 = tpu.matmul %3, %4, %cst {dimension_numbers = #tpu.dot_dimension_numbers<[1], [0], [0], [1], [0, 0, 1, 1], [], []>} : vector<8x32xf32>, vector<32x64xf32>, vector<8x64xf32> -> vector<8x64xf32>
    %c0_4 = arith.constant 0 : index
    %c0_5 = arith.constant 0 : index
    %6 = vector.load %arg4[%c0_4, %c0_5] : memref<1x64xf32, #tpu.memory_space<vmem>>, vector<1x64xf32>
    %7 = vector.broadcast %6 : vector<1x64xf32> to vector<8x64xf32>
    %8 = arith.addf %5, %7 : vector<8x64xf32>
    %cst_6 = arith.constant 0.000000e+00 : f32
    %9 = vector.broadcast %cst_6 : f32 to vector<8x64xf32>
    %10 = arith.maximumf %8, %9 : vector<8x64xf32>
    %c0_7 = arith.constant 0 : index
    %c0_8 = arith.constant 0 : index
    %11 = vector.load %arg10[%c0_7, %c0_8] : memref<8x32xf32, #tpu.memory_space<vmem>>, vector<8x32xf32>
    %c0_9 = arith.constant 0 : index
    %c0_10 = arith.constant 0 : index
    %12 = vector.load %arg5[%c0_9, %c0_10] : memref<64x32xf32, #tpu.memory_space<vmem>>, vector<64x32xf32>
    %cst_11 = arith.constant dense<0.000000e+00> : vector<8x32xf32>
    %13 = tpu.matmul %10, %12, %cst_11 {dimension_numbers = #tpu.dot_dimension_numbers<[1], [0], [0], [1], [0, 0, 1, 1], [], []>} : vector<8x64xf32>, vector<64x32xf32>, vector<8x32xf32> -> vector<8x32xf32>
    %14 = arith.addf %11, %13 : vector<8x32xf32>
    %c0_12 = arith.constant 0 : index
    %c0_13 = arith.constant 0 : index
    %15 = vector.load %arg10[%c0_12, %c0_13] : memref<8x32xf32, #tpu.memory_space<vmem>>, vector<8x32xf32>
    tpu.vector_store %arg10[%c0_12, %c0_13], %14 {strides = array<i32>} : memref<8x32xf32, #tpu.memory_space<vmem>>, vector<8x32xf32>,
    %c0_i32_14 = arith.constant 0 : i32
    %16 = arith.cmpi eq, %arg1, %c0_i32_14 : i32
    %17 = arith.extui %16 : i1 to i32
    %c0_i32_15 = arith.constant 0 : i32
    %18 = arith.cmpi ne, %17, %c0_i32_15 : i32
    scf.if %18 {
      %c0_16 = arith.constant 0 : index
      %c0_17 = arith.constant 0 : index
      %19 = vector.load %arg10[%c0_16, %c0_17] : memref<8x32xf32, #tpu.memory_space<vmem>>, vector<8x32xf32>
      %c0_18 = arith.constant 0 : index
      %c0_19 = arith.constant 0 : index
      %20 = vector.load %arg6[%c0_18, %c0_19] : memref<1x32xf32, #tpu.memory_space<vmem>>, vector<1x32xf32>
      %21 = vector.broadcast %20 : vector<1x32xf32> to vector<8x32xf32>
      %22 = arith.addf %19, %21 : vector<8x32xf32>
      %23 = arith.addf %22, %3 : vector<8x32xf32>
      %cst_20 = arith.constant dense<0.000000e+00> : vector<8xf32>
      %24 = vector.multi_reduction <add>, %23, %cst_20 [1] : vector<8x32xf32> to vector<8xf32>
      %25 = vector.shape_cast %24 : vector<8xf32> to vector<8x1xf32>
      %cst_21 = arith.constant 3.200000e+01 : f32
      %26 = vector.broadcast %cst_21 : f32 to vector<8x1xf32>
      %27 = arith.divf %25, %26 : vector<8x1xf32>
      %28 = vector.broadcast %27 : vector<8x1xf32> to vector<8x32xf32>
      %29 = arith.subf %23, %28 : vector<8x32xf32>
      %30 = arith.mulf %29, %29 : vector<8x32xf32>
      %cst_22 = arith.constant dense<0.000000e+00> : vector<8xf32>
      %31 = vector.multi_reduction <add>, %30, %cst_22 [1] : vector<8x32xf32> to vector<8xf32>
      %32 = vector.shape_cast %31 : vector<8xf32> to vector<8x1xf32>
      %cst_23 = arith.constant 3.200000e+01 : f32
      %33 = vector.broadcast %cst_23 : f32 to vector<8x1xf32>
      %34 = arith.divf %32, %33 : vector<8x1xf32>
      %35 = vector.broadcast %27 : vector<8x1xf32> to vector<8x32xf32>
      %36 = arith.subf %23, %35 : vector<8x32xf32>
      %cst_24 = arith.constant 9.99999974E-6 : f32
      %37 = vector.broadcast %cst_24 : f32 to vector<8x1xf32>
      %38 = arith.addf %34, %37 : vector<8x1xf32>
      %39 = math.rsqrt %38 : vector<8x1xf32>
      %40 = vector.broadcast %39 : vector<8x1xf32> to vector<8x32xf32>
      %41 = arith.mulf %36, %40 : vector<8x32xf32>
      %c0_25 = arith.constant 0 : index
      %c0_26 = arith.constant 0 : index
      %42 = vector.load %arg7[%c0_25, %c0_26] : memref<1x32xf32, #tpu.memory_space<vmem>>, vector<1x32xf32>
      %43 = vector.broadcast %42 : vector<1x32xf32> to vector<8x32xf32>
      %44 = arith.mulf %41, %43 : vector<8x32xf32>
      %c0_27 = arith.constant 0 : index
      %c0_28 = arith.constant 0 : index
      %45 = vector.load %arg8[%c0_27, %c0_28] : memref<1x32xf32, #tpu.memory_space<vmem>>, vector<1x32xf32>
      %46 = vector.broadcast %45 : vector<1x32xf32> to vector<8x32xf32>
      %47 = arith.addf %44, %46 : vector<8x32xf32>
      %c0_29 = arith.constant 0 : index
      %c0_30 = arith.constant 0 : index
      %48 = vector.load %arg9[%c0_29, %c0_30] : memref<8x32xf32, #tpu.memory_space<vmem>>, vector<8x32xf32>
      tpu.vector_store %arg9[%c0_29, %c0_30], %47 {strides = array<i32>} : memref<8x32xf32, #tpu.memory_space<vmem>>, vector<8x32xf32>,
    } else {
    }
    return
  }
  func.func @transform_0(%arg0: i32, %arg1: i32) -> (i32, i32) {
    %c0_i32 = arith.constant 0 : i32
    %c0_i32_0 = arith.constant 0 : i32
    return %arg0, %c0_i32 : i32, i32
  }
  func.func @transform_1(%arg0: i32, %arg1: i32) -> (i32, i32) {
    %c0_i32 = arith.constant 0 : i32
    %c0_i32_0 = arith.constant 0 : i32
    return %c0_i32, %arg1 : i32, i32
  }
  func.func @transform_2(%arg0: i32, %arg1: i32) -> (i32, i32) {
    %c0_i32 = arith.constant 0 : i32
    %c0_i32_0 = arith.constant 0 : i32
    return %c0_i32, %arg1 : i32, i32
  }
  func.func @transform_3(%arg0: i32, %arg1: i32) -> (i32, i32) {
    %c0_i32 = arith.constant 0 : i32
    %c0_i32_0 = arith.constant 0 : i32
    return %arg1, %c0_i32 : i32, i32
  }
  func.func @transform_4(%arg0: i32, %arg1: i32) -> (i32, i32) {
    %c0_i32 = arith.constant 0 : i32
    %c0_i32_0 = arith.constant 0 : i32
    %c0_i32_1 = arith.constant 0 : i32
    return %c0_i32, %c0_i32_0 : i32, i32
  }
  func.func @transform_5(%arg0: i32, %arg1: i32) -> (i32, i32) {
    %c0_i32 = arith.constant 0 : i32
    %c0_i32_0 = arith.constant 0 : i32
    %c0_i32_1 = arith.constant 0 : i32
    return %c0_i32, %c0_i32_0 : i32, i32
  }
  func.func @transform_6(%arg0: i32, %arg1: i32) -> (i32, i32) {
    %c0_i32 = arith.constant 0 : i32
    %c0_i32_0 = arith.constant 0 : i32
    %c0_i32_1 = arith.constant 0 : i32
    return %c0_i32, %c0_i32_0 : i32, i32
  }
  func.func @transform_7(%arg0: i32, %arg1: i32) -> (i32, i32) {
    %c0_i32 = arith.constant 0 : i32
    %c0_i32_0 = arith.constant 0 : i32
    return %arg0, %c0_i32 : i32, i32
  }
}

</mosaic_0001>

<bundles_post_ra>
// kernel: tpu_custom_call.1
= control target key start
LH: loop header
LB: loop body
LE: loop exit
PB: predicated region body
PF: predicated region fallthrough
CT: control target
= control target key end

     0   :  { %7 = vsyncpa [#allocation3], 0  ;;  %s692_s0 = inlined_call_operand.hbm [shape: f32[8,128], index: 0, kind: input, shape index: {}]   ;;  %s693_s1 = inlined_call_operand.hbm [shape: f32[16,128], index: 1, kind: input, shape index: {}]   ;;  %s694_s2 = inlined_call_operand.hbm [shape: f32[16,128], index: 2, kind: output, shape index: {}]  }
   0x1   :  { %8 = vsyncpa [#allocation6], 0 }
   0x2   :  { %10 = vsyncpa [#allocation6 + $0x1], 0 }
   0x3   :  { %11 = vsyncpa [#allocation4], 0 }
   0x4   :  { %13 = vsyncpa [#allocation4 + $0x1], 0  ;;  %s491_s9 = smov 0   ;;  %s493_s10 = smov 0  }
   0x5   :  { %s495_s11 = smov 0   ;;  %s497_s12 = smov 0  }
   0x6 LB: > { %s512_s13 = sadd.s32 4294967295, %s471_s12   ;;  %s272_s14 = sadd.s32 4294967294, %s471_s12   ;;  %s471_s12 = sphi %s497_s12, %s718_s12   ;;  %s467_s11 = sphi %s495_s11, %s717_s11   ;;  %s463_s10 = sphi %s493_s10, %s716_s10   ;;  %s459_s9 = sphi %s491_s9, %s715_s9  }
   0x7   : > { %p60_p0 = scmp.ne.s32.totalorder %s463_s10, %s459_s9  ;;  %p695_p1 = scmp.eq.s32.totalorder %s512_s13, 0 }
   0x8   : > { %p90_p3 = scmp.eq.s32.totalorder %s272_s14, 1  ;;  %p273_p5 = scmp.ge.s32.totalorder %s471_s12, 1 }
   0x9   : > { %p521_p4 = por %p695_p1, %p60_p0  ;;  %p97_p7 = scmp.lt.s32.totalorder %s471_s12, 3 }
   0xa   : > { %p526_p6 = por %p90_p3, %p60_p0  ;;  %s473_s18 = smov [#allocation2]  }
   0xb   : > { %s698_s15 = scalar_select %p521_p4, 1, 0 }
   0xc   : > { %s699_s16 = scalar_select %p526_p6, 1, 0 }
   0xd   : > { %p531_p8 = pnand %p273_p5, %p97_p7  ;;  %s110_s19 = sshll.u32 %s473_s18, 4  ;;  %s111_s19 = int_to_ptr.vmem [resolvable:$true] %s110_s19 }
   0xe   : > { %s539_s20 = sadd.s32 1, %s471_s12   ;;  %s47_s24 = sadd.s32 1, %s467_s11 }
   0xf   : > { %s700_s17 = scalar_select %p531_p8, 1, 0 }
  0x10   : > { %p294_p10 = pneg %p531_p8  ;;  %s44_s22 = ssub.s32 %s471_s12, %s539_s20 }
  0x11   : > { %p549_p12 = scmp.eq.s32.totalorder %s44_s22, 0  ;;  %s343_s27 = scalar_lea.hbm %s692_s0, 128 }
  0x12   : > { %p543_p11 = pnand %p294_p10, %p695_p1  ;;  %p344_p0 = scmp.ne.s32.totalorder %s692_s0, %s343_s27 }
  0x13   : > { %s702_s23 = scalar_select %p549_p12, 1, 0 }
  0x14   : > { %p345_p3 = pneg %p543_p11  ;;  %p350_p10 = scmp.lt.u32.totalorder %s343_s27, %s692_s0 }
  0x16   : > { %p346_p5 = pnand %p345_p3, %p344_p0 }
  0x18   : > { %p347_p7 = pneg %p346_p5 }
  0x1a   : > { %p352_p9 = pnand %p350_p10, %p347_p7 }
  0x1c   : > { %355 = shalt.err (!%p352_p9)
}
  0x1d   : > { %s356_s4 = scalar_lea.vmem %s111_s19, 128  ;;  %p364_p6 = scmp.lt.s32.totalorder %s111_s19, %s111_s19 }
  0x1e   : > { %p357_p1 = scmp.ne.s32.totalorder %s111_s19, %s356_s4  ;;  %p365_p4 = scmp.lt.s32.totalorder %s356_s4, %s356_s4 }
  0x20   : > { %p359_p2 = pnand %p357_p1, %p345_p3  ;;  %p366_p8 = por %p365_p4, %p364_p6 }
  0x22   : > { %p360_p13 = pneg %p359_p2 }
  0x24   : > { %p367_p12 = pnand %p366_p8, %p360_p13 }
  0x26   : > { %370 = shalt.err (!%p367_p12)
}
  0x27   : > { %297 = dma.hbm_to_vmem [thread:$0]  (!%p543_p11), %s692_s0, 128, %s111_s19, [#allocation3]  }
  0x28   : > { %p703_p1 = scmp.ne.s32.totalorder %s702_s23, 0  ;;  %p55_p2 = scmp.eq.s32.totalorder %s471_s12, 0 }
  0x29   : > { %p704_p4 = scmp.ne.s32.totalorder %s467_s11, %s463_s10  ;;  %p705_p6 = scmp.eq.s32.totalorder %s512_s13, 1 }
  0x2a   : > { %s575_s7 = scalar_select %p703_p1, %s467_s11, %s47_s24  }
  0x2b   : > { %p583_p8 = por %p705_p6, %p704_p4  ;;  %p307_p9 = scmp.lt.s32.totalorder %s471_s12, 2 }
  0x2c   : > { %s121_s14 = sand.u32 1, %s467_s11   ;;  %p707_p12 = pmov %p704_p4 }
  0x2d   : > { %s276_s18 = sshll.u32 %s121_s14, 3  ;;  %s277_s21 = sshll.u32 %s471_s12, 7 }
  0x2e   : > { %p56_p13 = por %p55_p2, %p707_p12  ;;  %s596_s19 = scalar_lea.hbm %s693_s1, %s277_s21 }
  0x2f   : > { %s125_s23 = scalar_lea.vmem [#allocation5], %s276_s18  ;;  %s122_s27 = scalar_lea.sflag [#allocation6], %s121_s14 }
  0x30   : > { %s132_s24 = sshll.u32 %s125_s23, 4  ;;  %p598_p11 = pnand %p307_p9, %p56_p13  ;;  %s602_s24 = int_to_ptr.vmem [resolvable:$true] %s132_s24 }
  0x31   : > { %s371_s28 = scalar_lea.hbm %s596_s19, 128  ;;  %s376_s3 = scalar_lea.hbm %s693_s1, 256 }
  0x32   : > { %p372_p0 = scmp.ne.s32.totalorder %s596_s19, %s371_s28  ;;  %p373_p3 = pneg %p598_p11 }
  0x33   : > { %p377_p10 = scmp.lt.u32.totalorder %s596_s19, %s693_s1  ;;  %p378_p1 = scmp.lt.u32.totalorder %s376_s3, %s371_s28 }
  0x34   : > { %p374_p5 = pnand %p373_p3, %p372_p0  ;;  %p380_p4 = scmp.lt.u32.totalorder %s371_s28, %s596_s19 }
  0x35   : > { %p379_p2 = por %p378_p1, %p377_p10 }
  0x36   : > { %p375_p7 = pneg %p374_p5 }
  0x37   : > { %p381_p6 = por %p380_p4, %p379_p2 }
  0x39   : > { %p382_p9 = pnand %p381_p6, %p375_p7 }
  0x3b   : > { %385 = shalt.err (!%p382_p9)
}
  0x3c   : > { %s386_s6 = scalar_lea.vmem %s602_s24, 128  ;;  %s474_s14 = smov [#allocation5]  }
  0x3d   : > { %p387_p12 = scmp.ne.s32.totalorder %s602_s24, %s386_s6  ;;  %s391_s18 = sshll.u32 %s474_s14, 4  ;;  %s392_s18 = int_to_ptr.vmem [resolvable:$false] %s391_s18 }
  0x3e   : > { %s393_s21 = scalar_lea.vmem %s392_s18, 256  ;;  %p394_p5 = scmp.lt.s32.totalorder %s602_s24, %s392_s18 }
  0x3f   : > { %p389_p13 = pnand %p387_p12, %p373_p3  ;;  %p395_p10 = scmp.lt.s32.totalorder %s393_s21, %s386_s6 }
  0x41   : > { %p390_p0 = pneg %p389_p13  ;;  %p396_p1 = por %p395_p10, %p394_p5 }
  0x43   : > { %p397_p2 = pnand %p396_p1, %p390_p0 }
  0x45   : > { %400 = shalt.err (!%p397_p2)
}
  0x46   : > { %301 = dma.hbm_to_vmem [thread:$0]  (!%p598_p11), %s596_s19, 128, %s602_s24, %s122_s27  }
  0x47   : > { %p709_p7 = scmp.ne.s32.totalorder %s700_s17, 0 }
  0x48   : > { %p710_p3 = scmp.eq.s32.totalorder (!%p709_p7), %s512_s13, 0 }
  0x49   : > { %141 = sbr.rel (%p709_p7) target bundleno = 110 (0x6e), region = 28 }
  0x50   : > { %446 = dma.done.wait (%p710_p3), [#allocation3], 128   ;;  %p711_p4 = pmov %p710_p3 }
  0x51   : > { %s636_s22 = sand.u32 1, %s463_s10   ;;  %p712_p6 = scmp.ne.s32.totalorder %s698_s15, 0 }
  0x52   : > { %448 = vsyncadd (%p711_p4), [#allocation3], 4294967168  ;;  %s280_s25 = sshll.u32 %s636_s22, 3  ;;  %s148_s23 = scalar_lea.sflag [#allocation6], %s636_s22 }
  0x53   : > { %s151_s26 = scalar_lea.vmem [#allocation5], %s280_s25 }
  0x54   : > { %450 = dma.done.wait (%p712_p6), %s148_s23, 128  }
  0x55   : > { %452 = vsyncadd (%p712_p6), %s148_s23, 4294967168  ;;  %s171_s17 = scalar_lea.vmem [#allocation7], %s280_s25  ;;  %s283_s24 = sshll.u32 %s512_s13, 7  ;;  %v172_v0 = vld [vmem:[%s151_s26] sm:$0xff]  ;;  %v173_v1 = vld [vmem:[#allocation2] sm:$0xff] }
  0x56   : > { %s190_s19 = sshll.u32 %s171_s17, 4  ;;  %v174_v2 = vadd.f32 %v173_v1, %v172_v0  ;;  %s650_s29 = scalar_lea.hbm %s694_s2, %s283_s24  ;;  %s645_s19 = int_to_ptr.vmem [resolvable:$true] %s190_s19 }
  0x57   : > { %s177_s15 = scalar_lea.sflag [#allocation4], %s636_s22  ;;  %s401_s30 = scalar_lea.vmem %s645_s19, 128 }
  0x58   : > { %175 = vst [vmem:[%s171_s17] sm:$0xff] %v174_v2  ;;  %p402_p11 = scmp.ne.s32.totalorder %s645_s19, %s401_s30  ;;  %s475_s13 = smov [#allocation7]  }
  0x59   : > { %s405_s3 = sshll.u32 %s475_s13, 4  ;;  %s406_s3 = int_to_ptr.vmem [resolvable:$false] %s405_s3 }
  0x5a   : > { %p403_p9 = pnand %p402_p11, %p583_p8  ;;  %s407_s4 = scalar_lea.vmem %s406_s3, 256 }
  0x5b   : > { %p408_p13 = scmp.lt.s32.totalorder %s645_s19, %s406_s3  ;;  %p409_p0 = scmp.lt.s32.totalorder %s407_s4, %s401_s30 }
  0x5c   : > { %p404_p12 = pneg %p403_p9 }
  0x5d   : > { %p410_p5 = por %p409_p0, %p408_p13 }
  0x5f   : > { %p411_p10 = pnand %p410_p5, %p404_p12 }
  0x61   : > { %414 = shalt.err (!%p411_p10)
}
  0x62   : > { %s415_s5 = scalar_lea.hbm %s650_s29, 128  ;;  %s419_s18 = scalar_lea.hbm %s694_s2, 256 }
  0x63   : > { %p416_p1 = scmp.ne.s32.totalorder %s650_s29, %s415_s5  ;;  %p420_p3 = scmp.lt.u32.totalorder %s650_s29, %s694_s2 }
  0x64   : > { %p421_p4 = scmp.lt.u32.totalorder %s419_s18, %s415_s5  ;;  %p423_p11 = scmp.lt.u32.totalorder %s415_s5, %s650_s29 }
  0x65   : > { %p417_p2 = pnand %p416_p1, %p583_p8 }
  0x66   : > { %p422_p6 = por %p421_p4, %p420_p3 }
  0x67   : > { %p418_p7 = pneg %p417_p2 }
  0x68   : > { %p424_p9 = por %p423_p11, %p422_p6 }
  0x6a   : > { %p425_p12 = pnand %p424_p9, %p418_p7 }
  0x6c   : > { %428 = shalt.err (!%p425_p12)
}
  0x6d   : > { %292 = dma.vmem_to_hbm [thread:$0]  (%p583_p8), %s645_s19, 128, %s650_s29, %s177_s15  }
  0x6e PF: > { %s202_s25 = sand.u32 1, %s459_s9   ;;  %p713_p13 = scmp.ne.s32.totalorder %s699_s16, 0 }
  0x6f   : > { %p714_p0 = scmp.ge.s32.totalorder %s471_s12, 2  ;;  %s203_s23 = scalar_lea.sflag [#allocation4], %s202_s25 }
  0x71   : > { %p303_p5 = pnand %p714_p0, %p713_p13 }
  0x73   : > { %454 = dma.done.wait (!%p303_p5), %s203_s23, 128  }
  0x74   : > { %456 = vsyncadd (!%p303_p5), %s203_s23, 4294967168  ;;  %p16_p10 = scmp.ge.s32.totalorder %s539_s20, 4   ;;  %s715_s9 = smov %s463_s10 }
  0x75   : > { %s716_s10 = smov %s467_s11  ;;  %s717_s11 = smov %s575_s7 }
  0x76   : > { %s718_s12 = smov %s539_s20  ;;  %18 = sbr.rel (!%p16_p10) target bundleno = 6 (0x6), region = 78 }
  0x7d   :  { %208 = vsyncpa [#allocation3], 1 }
  0x7e   :  { %210 = vsyncpa [#allocation3 + $0x1], 1 }
  0x7f   :  { %211 = vsyncpa [#allocation6], 1 }
  0x80   :  { %213 = vsyncpa [#allocation6 + $0x1], 1 }
  0x81   :  { %214 = vsyncpa [#allocation4], 1 }
  0x82   :  { %216 = vsyncpa [#allocation4 + $0x1], 1 }

// kernel: transformer_decoder_layer_forward.11
= control target key start
LH: loop header
LB: loop body
LE: loop exit
PB: predicated region body
PF: predicated region fallthrough
CT: control target
= control target key end

     0   :  { %s381_s12 = smov 0   ;;  %s413_s0 = inlined_call_operand.vmem [shape: f32[16,32], index: 0, kind: input, shape index: {}]   ;;  %s414_s1 = inlined_call_operand.vmem [shape: f32[32,32], index: 1, kind: input, shape index: {}]   ;;  %s415_s2 = inlined_call_operand.vmem [shape: f32[1,32], index: 2, kind: input, shape index: {}]   ;;  %s416_s3 = inlined_call_operand.vmem [shape: f32[16,32], index: 3, kind: output, shape index: {}]  }
   0x1 LB: > { %s306_s13 = sadd.s32 4294967295, %s356_s12   ;;  %p310_p0 = scmp.ge.s32.totalorder %s356_s12, 1  ;;  %s356_s12 = sphi %s381_s12, %s13_s12  }
   0x2   : > { %p136_p1 = scmp.lt.s32.totalorder %s356_s12, 3 }
   0x4   : > { %p137_p2 = pnand %p310_p0, %p136_p1 }
   0x5   : > { %v167_v0 = vld [vmem:[%s414_s1] sm:$0xff] (!%p137_p2)  ;;  %v168_v1 = vld [vmem:[%s414_s1 + $0x8] sm:$0xff] (!%p137_p2)  ;;  %v169_v2 = vld [vmem:[%s414_s1 + $0x10] sm:$0xff] (!%p137_p2)  ;;  %v358_v3 = vmov (!%p137_p2), 0.0|0.0   ;;  %vm359_vm0 = vmmov (!%p137_p2), 0   ;;  %v360_v6 = vmov (!%p137_p2), 0.0  }
   0x6   : > { %140 = sbr.rel (%p137_p2) target bundleno = 232 (0xe8), region = 32  ;;  %333 = vmatprep.subr.bf16.mxu0 (!%p137_p2), %v358_v3  ;;  %v334_v4 = vpack.c.bf16 (!%p137_p2), %v168_v1, %v167_v0  ;;  %v170_v5 = vld [vmem:[%s414_s1 + $0x18] sm:$0xff] (!%p137_p2)  ;;  %330 = vmatprep.mubr.msk.f32.mxu0 (!%p137_p2), %vm359_vm0, %v360_v6  ;;  %p158_p3 = scmp.lt.s32.totalorder (!%p137_p2), %s306_s13, 1  ;;  %vm178_vm1 = vcmask (!%p137_p2), 261120   ;;  %v313_v9 = vld [vmem:[%s415_s2] ss:$0 sm:$0xff] (!%p137_p2) }
   0x7   : > { %v337_v7 = vpack.c.bf16 (!%p137_p2), %v170_v5, %v169_v2 }
   0x8   : > { %335 = vmatpush3.bf16.msra.mxu0 (!%p137_p2), %v334_v4 }
   0x9   : > { %336 = vmatprep.subr.bf16.mxu0 (!%p137_p2), %v358_v3 }
   0xc   : > { %338 = vmatpush3.bf16.msra.mxu0 (!%p137_p2), %v337_v7 }
   0xd   : > { %s418_s13 = smov (!%p158_p3, %s306_s13), 1 }
   0xe   : > { %s311_s22 = sshll.u32 %s418_s13, 3 }
   0xf   : > { %s161_s25 = scalar_lea.vmem %s413_s0, %s311_s22  ;;  %s165_s30 = scalar_lea.vmem %s416_s3, %s311_s22 }
  0x10   : > { %v166_v8 = vld [vmem:[%s161_s25] sm:$0xff] }
  0x11   : > { %331 = vmatmul.mubr.msk.f32.vlgmr.msra.gmra.mrb[0].mxu0 %vm178_vm1, %v166_v8 }
  0xe4   : > { %v248_v10 = vpop.f32.mrb[0].mxu0 }
  0xe5   : > { %v249_v11 = vadd.f32 %v313_v9, %v248_v10  ;;  %v332_v12 = vpop.f32.mrb[1].mxu0 }
  0xe7   : > { %252 = vst.msk [vmem:[%s165_s30] sm:$0xff] %vm178_vm1, %v249_v11 }
  0xe8 PF: > { %s13_s12 = sadd.s32 1, %s356_s12  }
  0xe9   : > { %p10_p4 = scmp.ge.s32.totalorder %s13_s12, 4  }
  0xeb   :  { %12 = sbr.rel (!%p10_p4) target bundleno = 1 (0x1), region = 62 }

// kernel: transformer_decoder_layer_forward.10
= control target key start
LH: loop header
LB: loop body
LE: loop exit
PB: predicated region body
PF: predicated region fallthrough
CT: control target
= control target key end

     0   :  { %s543_s21 = smov 0   ;;  %s593_s0 = inlined_call_operand.vmem [shape: f32[16,32], index: 0, kind: input, shape index: {}]   ;;  %s594_s1 = inlined_call_operand.vmem [shape: f32[32,32], index: 1, kind: input, shape index: {}]   ;;  %s595_s2 = inlined_call_operand.vmem [shape: f32[1,32], index: 2, kind: input, shape index: {}]   ;;  %s596_s3 = inlined_call_operand.vmem [shape: f32[16,32], index: 3, kind: input, shape index: {}]   ;;  %s597_s4 = inlined_call_operand.vmem [shape: f32[1,32], index: 4, kind: input, shape index: {}]   ;;  %s598_s5 = inlined_call_operand.vmem [shape: f32[1,32], index: 5, kind: input, shape index: {}]   ;;  %s599_s6 = inlined_call_operand.vmem [shape: f32[16,32], index: 6, kind: output, shape index: {}]  }
   0x1 LB: > { %s448_s22 = sadd.s32 4294967295, %s503_s21   ;;  %p452_p0 = scmp.ge.s32.totalorder %s503_s21, 1  ;;  %s503_s21 = sphi %s543_s21, %s16_s21  }
   0x2   : > { %p220_p1 = scmp.lt.s32.totalorder %s503_s21, 3 }
   0x4   : > { %p221_p2 = pnand %p452_p0, %p220_p1 }
   0x5   : > { %v265_v0 = vld [vmem:[%s594_s1] sm:$0xff] (!%p221_p2)  ;;  %v266_v1 = vld [vmem:[%s594_s1 + $0x8] sm:$0xff] (!%p221_p2)  ;;  %v267_v2 = vld [vmem:[%s594_s1 + $0x10] sm:$0xff] (!%p221_p2)  ;;  %v505_v3 = vmov (!%p221_p2), 0.0|0.0   ;;  %vm506_vm0 = vmmov (!%p221_p2), 0   ;;  %v507_v6 = vmov (!%p221_p2), 0.0  }
   0x6   : > { %224 = sbr.rel (%p221_p2) target bundleno = 547 (0x223), region = 44  ;;  %478 = vmatprep.subr.bf16.mxu0 (!%p221_p2), %v505_v3  ;;  %v479_v4 = vpack.c.bf16 (!%p221_p2), %v266_v1, %v265_v0  ;;  %v268_v5 = vld [vmem:[%s594_s1 + $0x18] sm:$0xff] (!%p221_p2)  ;;  %475 = vmatprep.mubr.msk.f32.mxu0 (!%p221_p2), %vm506_vm0, %v507_v6  ;;  %p252_p3 = scmp.lt.s32.totalorder (!%p221_p2), %s448_s22, 1  ;;  %vm276_vm1 = vcmask (!%p221_p2), 261120   ;;  %v456_v9 = vld [vmem:[%s595_s2] ss:$0 sm:$0xff] (!%p221_p2) }
   0x7   : > { %v482_v7 = vpack.c.bf16 (!%p221_p2), %v268_v5, %v267_v2  ;;  %v458_v25 = vld [vmem:[%s597_s4] ss:$0 sm:$0xff] (!%p221_p2) }
   0x8   : > { %480 = vmatpush3.bf16.msra.mxu0 (!%p221_p2), %v479_v4  ;;  %v459_v27 = vld [vmem:[%s598_s5] ss:$0 sm:$0xff] (!%p221_p2) }
   0x9   : > { %481 = vmatprep.subr.bf16.mxu0 (!%p221_p2), %v505_v3 }
   0xc   : > { %483 = vmatpush3.bf16.msra.mxu0 (!%p221_p2), %v482_v7 }
   0xd   : > { %s601_s22 = smov (!%p252_p3, %s448_s22), 1 }
   0xe   : > { %s563_s7 = sshll.u32 %s601_s22, 3 }
   0xf   : > { %s255_s10 = scalar_lea.vmem %s593_s0, %s563_s7  ;;  %s259_s13 = scalar_lea.vmem %s596_s3, %s563_s7 }
  0x10   : > { %v264_v8 = vld [vmem:[%s255_s10] sm:$0xff]  ;;  %s263_s23 = scalar_lea.vmem %s599_s6, %s563_s7 }
  0x11   : > { %476 = vmatmul.mubr.msk.f32.vlgmr.msra.gmra.mrb[0].mxu0 %vm276_vm1, %v264_v8  ;;  %v350_v11 = vld [vmem:[%s259_s13] sm:$0xff] }
  0xe4   : > { %v346_v10 = vpop.f32.mrb[0].mxu0 }
  0xe5   : > { %v347_v12 = vadd.f32 %v456_v9, %v346_v10  ;;  %v477_v13 = vpop.f32.mrb[1].mxu0 }
  0xe7   : > { %v351_v14 = vadd.f32 %v350_v11, %v347_v12 }
  0xe9   : > { %v352_v15 = vsel %vm276_vm1, %v351_v14, 0.0 }
  0xea   : > { %353 = vadd.xlane.f32.xlu0 %v352_v15 }
 0x177   : > { %v354_v16 = vpop.xlane.xlu0 %353 }
 0x178   : > { %v356_v17 = vmul.f32 0.03125, %v354_v16 }
 0x17a   : > { %v357_v18 = vsub.f32 %v351_v14, %v356_v17 }
 0x17c   : > { %v358_v19 = vmul.f32 %v357_v18, %v357_v18 }
 0x17e   : > { %v359_v20 = vsel %vm276_vm1, %v358_v19, 0.0 }
 0x17f   : > { %360 = vadd.xlane.f32.xlu0 %v359_v20 }
 0x20c   : > { %v361_v21 = vpop.xlane.xlu0 %360 }
 0x20d   : > { %v362_v22 = vmul.f32 0.03125, %v361_v21 }
 0x20f   : > { %v363_v23 = vadd.f32 1e-05, %v362_v22 }
 0x211   : > { %495 = vrsqrt.f32 %v363_v23 }
 0x21b   : > { %v496_v24 = vpop.eup %495 }
 0x21c   : > { %v365_v26 = vmul.f32 %v496_v24, %v357_v18 }
 0x21e   : > { %v373_v28 = vmul.f32 %v458_v25, %v365_v26 }
 0x220   : > { %v381_v29 = vadd.f32 %v459_v27, %v373_v28 }
 0x222   : > { %382 = vst.msk [vmem:[%s263_s23] sm:$0xff] %vm276_vm1, %v381_v29 }
 0x223 PF: > { %s16_s21 = sadd.s32 1, %s503_s21  }
 0x224   : > { %p13_p4 = scmp.ge.s32.totalorder %s16_s21, 4  }
 0x226   :  { %15 = sbr.rel (!%p13_p4) target bundleno = 1 (0x1), region = 77 }

// kernel: transformer_decoder_layer_forward.8
= control target key start
LH: loop header
LB: loop body
LE: loop exit
PB: predicated region body
PF: predicated region fallthrough
CT: control target
= control target key end

     0   :  { %15 = vsyncpa [#allocation3], 0  ;;  %s947_s30 = smov 0   ;;  %s1057_s0 = inlined_call_operand.vmem [shape: f32[16,32], index: 0, kind: input, shape index: {}]   ;;  %s1058_s1 = inlined_call_operand.vmem [shape: f32[32,32], index: 1, kind: input, shape index: {}]   ;;  %s1059_s2 = inlined_call_operand.vmem [shape: f32[1,32], index: 2, kind: input, shape index: {}]   ;;  %s1060_s3 = inlined_call_operand.hbm [shape: f32[32,32], index: 3, kind: input, shape index: {}]   ;;  %s1061_s4 = inlined_call_operand.vmem [shape: f32[1,32], index: 4, kind: input, shape index: {}]   ;;  %s1062_s5 = inlined_call_operand.vmem [shape: f32[32,32], index: 5, kind: input, shape index: {}]   ;;  %s1063_s6 = inlined_call_operand.vmem [shape: f32[1,32], index: 6, kind: input, shape index: {}]   ;;  %s1064_s7 = inlined_call_operand.vmem [shape: f32[16,32], index: 7, kind: output, shape index: {0}]   ;;  %s1065_s8 = inlined_call_operand.vmem [shape: f32[16,32], index: 8, kind: output, shape index: {1}]   ;;  %s1066_s9 = inlined_call_operand.vmem [shape: f32[16,32], index: 9, kind: output, shape index: {2}]  }
   0x1 LB: > { %s953_s10 = sadd.s32 4294967295, %s889_s30   ;;  %p744_p0 = scmp.ge.s32.totalorder %s889_s30, 1  ;;  %s889_s30 = sphi %s947_s30, %s21_s30  }
   0x2   : > { %p256_p1 = scmp.lt.s32.totalorder %s889_s30, 3  ;;  %s891_s11 = smov [#allocation2]  }
   0x3   : > { %s274_s12 = sshll.u32 %s891_s11, 4  ;;  %p1067_p3 = scmp.eq.s32.totalorder %s953_s10, 0  ;;  %s275_s12 = int_to_ptr.vmem [resolvable:$true] %s274_s12 }
   0x4   : > { %p957_p2 = pnand %p744_p0, %p256_p1  ;;  %s851_s17 = scalar_lea.hbm %s1060_s3, 512 }
   0x5   : > { %p852_p6 = scmp.ne.s32.totalorder %s1060_s3, %s851_s17  ;;  %p858_p10 = scmp.lt.u32.totalorder %s851_s17, %s1060_s3 }
   0x6   : > { %s1069_s13 = scalar_select %p957_p2, 1, 0 }
   0x7   : > { %p831_p4 = pneg %p957_p2 }
   0x9   : > { %p966_p5 = pnand %p1067_p3, %p831_p4 }
   0xb   : > { %p853_p7 = pneg %p966_p5 }
   0xd   : > { %p854_p8 = pnand %p853_p7, %p852_p6 }
   0xf   : > { %p855_p9 = pneg %p854_p8 }
  0x11   : > { %p860_p11 = pnand %p858_p10, %p855_p9 }
  0x13   : > { %863 = shalt.err (!%p860_p11)
}
  0x14   : > { %s864_s22 = scalar_lea.vmem %s275_s12, 512  ;;  %p872_p1 = scmp.lt.s32.totalorder %s275_s12, %s275_s12 }
  0x15   : > { %p865_p12 = scmp.ne.s32.totalorder %s275_s12, %s864_s22  ;;  %p873_p4 = scmp.lt.s32.totalorder %s864_s22, %s864_s22 }
  0x17   : > { %p867_p13 = pnand %p865_p12, %p853_p7  ;;  %p874_p3 = por %p873_p4, %p872_p1 }
  0x19   : > { %p868_p0 = pneg %p867_p13 }
  0x1b   : > { %p875_p2 = pnand %p874_p3, %p868_p0 }
  0x1d   : > { %878 = shalt.err (!%p875_p2)
}
  0x1e   : > { %s892_s23 = smov 128   ;;  %s893_s24 = smov 8  }
  0x1f   : > { %834 = dma.hbm_to_vmem [thread:$0]  (!%p966_p5), %s1060_s3, 512, %s275_s12, [#allocation3], %s892_s23, %s892_s23, %s893_s24  }
  0x20   : > { %p1071_p6 = scmp.ne.s32.totalorder %s1069_s13, 0 }
  0x21   : > { %p1072_p8 = scmp.eq.s32.totalorder (!%p1071_p6), %s953_s10, 0 }
  0x22   : > { %306 = sbr.rel (%p1071_p6) target bundleno = 275 (0x113), region = 48 }
  0x29   : > { %884 = dma.done.wait (%p1072_p8), [#allocation3], 512   ;;  %p1073_p7 = pmov %p1072_p8 }
  0x2a   : > { %p348_p2 = scmp.lt.s32.totalorder %s953_s10, 1  ;;  %v894_v0 = vmov 0.0|0.0   ;;  %vm895_vm0 = vmmov 0   ;;  %v896_v1 = vmov 0.0   ;;  %v365_v2 = vld [vmem:[%s1058_s1] sm:$0xff]  ;;  %v366_v3 = vld [vmem:[%s1058_s1 + $0x8] sm:$0xff] }
  0x2b   : > { %886 = vsyncadd (%p1073_p7), [#allocation3], 4294966784  ;;  %809 = vmatprep.subr.bf16.mxu0 %v894_v0  ;;  %784 = vmatprep.mubr.msk.f32.mxu0 %vm895_vm0, %v896_v1  ;;  %v367_v4 = vld [vmem:[%s1058_s1 + $0x10] sm:$0xff]  ;;  %v810_v5 = vpack.c.bf16 %v366_v3, %v365_v2  ;;  %v368_v6 = vld [vmem:[%s1058_s1 + $0x18] sm:$0xff]  ;;  %vm376_vm1 = vcmask 261120  }
  0x2c   : > { %815 = vmatprep.subr.bf16.mxu1 %v894_v0  ;;  %795 = vmatprep.mubr.msk.f32.mxu1 %vm895_vm0, %v896_v1  ;;  %s1075_s10 = smov (!%p348_p2, %s953_s10), 1  ;;  %v450_v7 = vld [vmem:[#allocation2] sm:$0xff]  ;;  %v451_v8 = vld [vmem:[#allocation2 + $0x8] sm:$0xff]  ;;  %v813_v9 = vpack.c.bf16 %v368_v6, %v367_v4  ;;  %v452_v11 = vld [vmem:[#allocation2 + $0x10] sm:$0xff] }
  0x2d   : > { %s1008_s16 = sshll.u32 %s1075_s10, 3  ;;  %811 = vmatpush3.bf16.msra.mxu0 %v810_v5  ;;  %v816_v10 = vpack.c.bf16 %v451_v8, %v450_v7  ;;  %v453_v12 = vld [vmem:[#allocation2 + $0x18] sm:$0xff]  ;;  %v531_v13 = vld [vmem:[%s1062_s5] sm:$0xff]  ;;  %v532_v14 = vld [vmem:[%s1062_s5 + $0x8] sm:$0xff] }
  0x2e   : > { %812 = vmatprep.subr.bf16.mxu0 %v894_v0  ;;  %s351_s19 = scalar_lea.vmem %s1057_s0, %s1008_s16  ;;  %v819_v15 = vpack.c.bf16 %v453_v12, %v452_v11  ;;  %v822_v17 = vpack.c.bf16 %v532_v14, %v531_v13  ;;  %v533_v18 = vld [vmem:[%s1062_s5 + $0x10] sm:$0xff]  ;;  %v534_v19 = vld [vmem:[%s1062_s5 + $0x18] sm:$0xff]  ;;  %v753_v21 = vld [vmem:[%s1059_s2] ss:$0 sm:$0xff]  ;;  %s355_s12 = scalar_lea.vmem %s1064_s7, %s1008_s16 }
  0x2f   : > { %817 = vmatpush3.bf16.msra.mxu1 %v816_v10  ;;  %v364_v16 = vld [vmem:[%s351_s19] sm:$0xff]  ;;  %v825_v20 = vpack.c.bf16 %v534_v19, %v533_v18  ;;  %s359_s18 = scalar_lea.vmem %s1065_s8, %s1008_s16  ;;  %s363_s10 = scalar_lea.vmem %s1066_s9, %s1008_s16 }
  0x30   : > { %818 = vmatprep.subr.bf16.mxu1 %v894_v0  ;;  %v755_v23 = vld [vmem:[%s1061_s4] ss:$0 sm:$0xff] }
  0x31   : > { %814 = vmatpush3.bf16.msra.mxu0 %v813_v9  ;;  %v757_v29 = vld [vmem:[%s1063_s6] ss:$0 sm:$0xff] }
  0x32   : > { %821 = vmatprep.subr.bf16.mxu0 %v894_v0 }
  0x33   : > { %820 = vmatpush3.bf16.msra.mxu1 %v819_v15 }
  0x34   : > { %785 = vmatmul.mubr.msk.f32.vlgmr.msra.gmra.mrb[0].mxu0 %vm376_vm1, %v364_v16 }
  0x35   : > { %823 = vmatpush3.bf16.msra.mxu0 %v822_v17  ;;  %806 = vmatprep.mubr.msk.f32.mxu0 %vm895_vm0, %v896_v1 }
  0x36   : > { %824 = vmatprep.subr.bf16.mxu0 %v894_v0  ;;  %796 = vmatmul.mubr.msk.f32.vlgmr.msra.gmra.mrb[0].mxu1 %vm376_vm1, %v364_v16 }
  0x39   : > { %826 = vmatpush3.bf16.msra.mxu0 %v825_v20 }
  0x3c   : > { %807 = vmatmul.mubr.msk.f32.vlgmr.msra.gmra.mrb[2].mxu0 %vm376_vm1, %v364_v16 }
 0x107   : > { %v446_v22 = vpop.f32.mrb[0].mxu0 }
 0x108   : > { %v447_v24 = vadd.f32 %v753_v21, %v446_v22  ;;  %v786_v25 = vpop.f32.mrb[1].mxu0 }
 0x109   : > { %v527_v26 = vpop.f32.mrb[0].mxu1 }
 0x10a   : > { %612 = vst.msk [vmem:[%s355_s12] sm:$0xff] %vm376_vm1, %v447_v24  ;;  %v528_v27 = vadd.f32 %v755_v23, %v527_v26  ;;  %v797_v28 = vpop.f32.mrb[1].mxu1 }
 0x10c   : > { %613 = vst.msk [vmem:[%s359_s18] sm:$0xff] %vm376_vm1, %v528_v27 }
 0x10f   : > { %v608_v30 = vpop.f32.mrb[2].mxu0 }
 0x110   : > { %v609_v31 = vadd.f32 %v757_v29, %v608_v30  ;;  %v808_v32 = vpop.f32.mrb[3].mxu0 }
 0x112   : > { %614 = vst.msk [vmem:[%s363_s10] sm:$0xff] %vm376_vm1, %v609_v31 }
 0x113 PF: > { %s21_s30 = sadd.s32 1, %s889_s30  }
 0x114   : > { %p18_p3 = scmp.ge.s32.totalorder %s21_s30, 4  }
 0x116   :  { %20 = sbr.rel (!%p18_p3) target bundleno = 1 (0x1), region = 107 }
 0x11d   :  { %662 = vsyncpa [#allocation3], 1 }
 0x11e   :  { %664 = vsyncpa [#allocation3 + $0x1], 1 }

// kernel: transformer_decoder_layer_forward.12
= control target key start
LH: loop header
LB: loop body
LE: loop exit
PB: predicated region body
PF: predicated region fallthrough
CT: control target
= control target key end

     0   :  { %s626_s21 = smov 0   ;;  %s676_s0 = inlined_call_operand.vmem [shape: f32[24,32], index: 0, kind: input, shape index: {}]   ;;  %s677_s1 = inlined_call_operand.vmem [shape: f32[32,32], index: 1, kind: input, shape index: {}]   ;;  %s678_s2 = inlined_call_operand.vmem [shape: f32[1,32], index: 2, kind: input, shape index: {}]   ;;  %s679_s3 = inlined_call_operand.vmem [shape: f32[32,32], index: 3, kind: input, shape index: {}]   ;;  %s680_s4 = inlined_call_operand.vmem [shape: f32[1,32], index: 4, kind: input, shape index: {}]   ;;  %s681_s5 = inlined_call_operand.vmem [shape: f32[24,32], index: 5, kind: output, shape index: {0}]   ;;  %s682_s6 = inlined_call_operand.vmem [shape: f32[24,32], index: 6, kind: output, shape index: {1}]  }
   0x1 LB: > { %s511_s22 = sadd.s32 4294967295, %s586_s21   ;;  %p515_p0 = scmp.ge.s32.totalorder %s586_s21, 1  ;;  %s586_s21 = sphi %s626_s21, %s17_s21  }
   0x2   : > { %p214_p1 = scmp.lt.s32.totalorder %s586_s21, 4 }
   0x4   : > { %p215_p2 = pnand %p515_p0, %p214_p1 }
   0x5   : > { %v259_v0 = vld [vmem:[%s677_s1] sm:$0xff] (!%p215_p2)  ;;  %v260_v1 = vld [vmem:[%s677_s1 + $0x8] sm:$0xff] (!%p215_p2)  ;;  %v588_v3 = vmov (!%p215_p2), 0.0|0.0   ;;  %v261_v6 = vld [vmem:[%s677_s1 + $0x10] sm:$0xff] (!%p215_p2)  ;;  %p246_p3 = scmp.lt.s32.totalorder (!%p215_p2), %s511_s22, 2  ;;  %vm589_vm0 = vmmov (!%p215_p2), 0  }
   0x6   : > { %218 = sbr.rel (%p215_p2) target bundleno = 232 (0xe8), region = 40  ;;  %v344_v2 = vld [vmem:[%s679_s3] sm:$0xff] (!%p215_p2)  ;;  %557 = vmatprep.subr.bf16.mxu0 (!%p215_p2), %v588_v3  ;;  %563 = vmatprep.subr.bf16.mxu1 (!%p215_p2), %v588_v3  ;;  %v558_v4 = vpack.c.bf16 (!%p215_p2), %v260_v1, %v259_v0  ;;  %v345_v5 = vld [vmem:[%s679_s3 + $0x8] sm:$0xff] (!%p215_p2)  ;;  %v262_v7 = vld [vmem:[%s677_s1 + $0x18] sm:$0xff] (!%p215_p2)  ;;  %v590_v11 = vmov (!%p215_p2), 0.0   ;;  %vm270_vm1 = vcmask (!%p215_p2), 261120  }
   0x7   : > { %v564_v8 = vpack.c.bf16 (!%p215_p2), %v345_v5, %v344_v2  ;;  %v346_v9 = vld [vmem:[%s679_s3 + $0x10] sm:$0xff] (!%p215_p2)  ;;  %v347_v10 = vld [vmem:[%s679_s3 + $0x18] sm:$0xff] (!%p215_p2)  ;;  %543 = vmatprep.mubr.msk.f32.mxu0 (!%p215_p2), %vm589_vm0, %v590_v11  ;;  %554 = vmatprep.mubr.msk.f32.mxu1 (!%p215_p2), %vm589_vm0, %v590_v11  ;;  %v561_v12 = vpack.c.bf16 (!%p215_p2), %v262_v7, %v261_v6  ;;  %v519_v15 = vld [vmem:[%s678_s2] ss:$0 sm:$0xff] (!%p215_p2) }
   0x8   : > { %559 = vmatpush3.bf16.msra.mxu0 (!%p215_p2), %v558_v4  ;;  %v567_v13 = vpack.c.bf16 (!%p215_p2), %v347_v10, %v346_v9  ;;  %v521_v16 = vld [vmem:[%s680_s4] ss:$0 sm:$0xff] (!%p215_p2) }
   0x9   : > { %565 = vmatpush3.bf16.msra.mxu1 (!%p215_p2), %v564_v8  ;;  %560 = vmatprep.subr.bf16.mxu0 (!%p215_p2), %v588_v3 }
   0xa   : > { %566 = vmatprep.subr.bf16.mxu1 (!%p215_p2), %v588_v3 }
   0xc   : > { %562 = vmatpush3.bf16.msra.mxu0 (!%p215_p2), %v561_v12 }
   0xd   : > { %s684_s22 = smov (!%p246_p3, %s511_s22), 2  ;;  %568 = vmatpush3.bf16.msra.mxu1 %v567_v13 }
   0xe   : > { %s516_s15 = sshll.u32 %s684_s22, 3 }
   0xf   : > { %s249_s18 = scalar_lea.vmem %s676_s0, %s516_s15  ;;  %s253_s26 = scalar_lea.vmem %s681_s5, %s516_s15 }
  0x10   : > { %v258_v14 = vld [vmem:[%s249_s18] sm:$0xff]  ;;  %s257_s29 = scalar_lea.vmem %s682_s6, %s516_s15 }
  0x11   : > { %544 = vmatmul.mubr.msk.f32.vlgmr.msra.gmra.mrb[0].mxu0 %vm270_vm1, %v258_v14  ;;  %555 = vmatmul.mubr.msk.f32.vlgmr.msra.gmra.mrb[0].mxu1 %vm270_vm1, %v258_v14 }
  0xe4   : > { %v340_v17 = vpop.f32.mrb[0].mxu0  ;;  %v421_v19 = vpop.f32.mrb[0].mxu1 }
  0xe5   : > { %v341_v18 = vadd.f32 %v519_v15, %v340_v17  ;;  %v545_v20 = vpop.f32.mrb[1].mxu0  ;;  %v422_v21 = vadd.f32 %v521_v16, %v421_v19  ;;  %v556_v22 = vpop.f32.mrb[1].mxu1 }
  0xe7   : > { %425 = vst.msk [vmem:[%s253_s26] sm:$0xff] %vm270_vm1, %v341_v18  ;;  %426 = vst.msk [vmem:[%s257_s29] sm:$0xff] %vm270_vm1, %v422_v21 }
  0xe8 PF: > { %s17_s21 = sadd.s32 1, %s586_s21  }
  0xe9   : > { %p14_p4 = scmp.ge.s32.totalorder %s17_s21, 5  }
  0xeb   :  { %16 = sbr.rel (!%p14_p4) target bundleno = 1 (0x1), region = 82 }

// kernel: transformer_decoder_layer_forward.9
= control target key start
LH: loop header
LB: loop body
LE: loop exit
PB: predicated region body
PF: predicated region fallthrough
CT: control target
= control target key end

     0   :  { %v1916_v0 = vmov 0.0   ;;  %vm50_vm0 = vcmask 1041409   ;;  %vm53_vm1 = vcmask 1042434   ;;  %vm56_vm2 = vcmask 1043459   ;;  %s2397_s0 = inlined_call_operand.vmem [shape: f32[8,2,32], index: 0, kind: input, shape index: {}]   ;;  %s2398_s1 = inlined_call_operand.vmem [shape: f32[8,2,32], index: 1, kind: input, shape index: {}]   ;;  %s2399_s2 = inlined_call_operand.vmem [shape: f32[8,2,32], index: 2, kind: input, shape index: {}]   ;;  %s2400_s3 = inlined_call_operand.vmem [shape: f32[8,2,32], index: 3, kind: output, shape index: {0}]   ;;  %s2401_s4 = inlined_call_operand.hbm [shape: f32[2,4,8,8], index: 4, kind: output, shape index: {1}]  }
   0x1   :  { %1769 = vmatprep.subr.mxu0 %v1916_v0  ;;  %v25_v1 = vld [vmem:[%s2398_s1] sm:$0x1]  ;;  %v26_v2 = vld [vmem:[%s2398_s1 + $0x2] sm:$0x1]  ;;  %v27_v3 = vld [vmem:[%s2398_s1 + $0x4] sm:$0x1]  ;;  %1774 = vmatprep.subr.mxu1 %v1916_v0 }
   0x2   :  { %v28_v4 = vld [vmem:[%s2398_s1 + $0x6] sm:$0x1]  ;;  %v29_v5 = vld [vmem:[%s2398_s1 + $0x8] sm:$0x1]  ;;  %v30_v6 = vld [vmem:[%s2398_s1 + $0xa] sm:$0x1] }
   0x3   :  { %v31_v7 = vld [vmem:[%s2398_s1 + $0xc] sm:$0x1]  ;;  %v32_v8 = vld [vmem:[%s2398_s1 + $0xe] sm:$0x1]  ;;  %vm59_vm3 = vcmask 1044484   ;;  %vm62_vm4 = vcmask 1045509  }
   0x4   :  { %v78_v9 = vrot.slane %v26_v2, 7  ;;  %v80_v10 = vrot.slane %v27_v3, 6  ;;  %v82_v11 = vrot.slane %v28_v4, 5  ;;  %v84_v12 = vrot.slane %v29_v5, 4  ;;  %v17_v13 = vld [vmem:[%s2397_s0] sm:$0x1] }
   0x5   :  { %v18_v14 = vld [vmem:[%s2397_s0 + $0x2] sm:$0x1]  ;;  %v19_v15 = vld [vmem:[%s2397_s0 + $0x4] sm:$0x1]  ;;  %vm65_vm5 = vcmask 1046534   ;;  %v86_v17 = vrot.slane %v30_v6, 3 }
   0x6   :  { %v79_v16 = vsel %vm50_vm0, %v78_v9, %v25_v1  ;;  %v20_v18 = vld [vmem:[%s2397_s0 + $0x6] sm:$0x1]  ;;  %v88_v20 = vrot.slane %v31_v7, 2  ;;  %v90_v21 = vrot.slane %v32_v8, 1  ;;  %vm1917_vm6 = vmmov 0  }
   0x7   :  { %v81_v19 = vsel %vm53_vm1, %v80_v10, %v79_v16  ;;  %1771 = vmatprep.mubr.msk.f32.mxu0 %vm1917_vm6, %v1916_v0  ;;  %v21_v22 = vld [vmem:[%s2397_s0 + $0x8] sm:$0x1]  ;;  %v22_v23 = vld [vmem:[%s2397_s0 + $0xa] sm:$0x1]  ;;  %1776 = vmatprep.mubr.msk.f32.mxu1 %vm1917_vm6, %v1916_v0  ;;  %v23_v25 = vld [vmem:[%s2397_s0 + $0xc] sm:$0x1] }
   0x8   :  { %v83_v24 = vsel %vm56_vm2, %v82_v11, %v81_v19  ;;  %v49_v26 = vrot.slane %v18_v14, 7  ;;  %v52_v27 = vrot.slane %v19_v15, 6  ;;  %v55_v28 = vrot.slane %v20_v18, 5  ;;  %v24_v30 = vld [vmem:[%s2397_s0 + $0xe] sm:$0x1] }
   0x9   :  { %vm68_vm7 = vcmask 1047559   ;;  %v85_v29 = vsel %vm59_vm3, %v84_v12, %v83_v24  ;;  %v58_v31 = vrot.slane %v21_v22, 4 }
   0xa   :  { %10 = vsyncpa [#allocation3], 0  ;;  %v87_v32 = vsel %vm62_vm4, %v86_v17, %v85_v29  ;;  %vm92_vm8 = vcmask 64512   ;;  %v51_v33 = vsel %vm50_vm0, %v49_v26, %v17_v13  ;;  %v61_v34 = vrot.slane %v22_v23, 3  ;;  %s1918_s21 = smov 120   ;;  %s1919_s22 = smov 112  }
   0xb   :  { %v89_v35 = vsel %vm65_vm5, %v88_v20, %v87_v32  ;;  %v54_v36 = vsel %vm53_vm1, %v52_v27, %v51_v33  ;;  %v64_v37 = vrot.slane %v23_v25, 2  ;;  %v67_v40 = vrot.slane %v24_v30, 1  ;;  %v869_v48 = vld [vmem:[%s2398_s1 + $0x3] sm:$0x1]  ;;  %s1920_s25 = smov 104  }
   0xc   :  { %v2015_v38 = vsel %vm68_vm7, %v90_v21, %v89_v35  ;;  %v57_v39 = vsel %vm56_vm2, %v55_v28, %v54_v36  ;;  %v870_v49 = vld [vmem:[%s2398_s1 + $0x5] sm:$0x1]  ;;  %v871_v50 = vld [vmem:[%s2398_s1 + $0x7] sm:$0x1]  ;;  %v872_v51 = vld [vmem:[%s2398_s1 + $0x9] sm:$0x1] }
   0xd   :  { %1770 = vmatpush3.xpose.msk.msra.mxu0 %vm92_vm8, %v2015_v38  ;;  %v60_v41 = vsel %vm59_vm3, %v58_v31, %v57_v39  ;;  %277 = vrot.lane.b32.xlu1 %v2015_v38, %s1918_s21  ;;  %v868_v52 = vld [vmem:[%s2398_s1 + $0x1] sm:$0x1]  ;;  %v873_v53 = vld [vmem:[%s2398_s1 + $0xb] sm:$0x1]  ;;  %v874_v54 = vld [vmem:[%s2398_s1 + $0xd] sm:$0x1] }
   0xe   :  { %v63_v42 = vsel %vm62_vm4, %v61_v34, %v60_v41  ;;  %1784 = vmatprep.subr.mxu0 %v1916_v0  ;;  %v875_v55 = vld [vmem:[%s2398_s1 + $0xf] sm:$0x1]  ;;  %v914_v56 = vrot.slane %v869_v48, 7  ;;  %v916_v57 = vrot.slane %v870_v49, 6  ;;  %v918_v58 = vrot.slane %v871_v50, 5 }
   0xf   :  { %v66_v43 = vsel %vm65_vm5, %v64_v37, %v63_v42  ;;  %v920_v59 = vrot.slane %v872_v51, 4  ;;  %v922_v60 = vrot.slane %v873_v53, 3  ;;  %v861_v61 = vld [vmem:[%s2397_s0 + $0x3] sm:$0x1]  ;;  %v862_v63 = vld [vmem:[%s2397_s0 + $0x5] sm:$0x1] }
  0x10   :  { %v69_v44 = vsel %vm68_vm7, %v67_v40, %v66_v43  ;;  %v915_v62 = vsel %vm50_vm0, %v914_v56, %v868_v52  ;;  %v863_v1 = vld [vmem:[%s2397_s0 + $0x7] sm:$0x1]  ;;  %v864_v2 = vld [vmem:[%s2397_s0 + $0x9] sm:$0x1]  ;;  %v924_v4 = vrot.slane %v874_v54, 2  ;;  %v926_v5 = vrot.slane %v875_v55, 1 }
  0x11   :  { %1772 = vmatmul.mubr.msk.f32.vlgmr.msra.gmra.mrb[0].mxu0 %vm92_vm8, %v69_v44  ;;  %275 = vrot.lane.b32.xlu1 %v69_v44, %s1918_s21  ;;  %v917_v3 = vsel %vm53_vm1, %v916_v57, %v915_v62  ;;  %v860_v6 = vld [vmem:[%s2397_s0 + $0x1] sm:$0x1]  ;;  %v865_v7 = vld [vmem:[%s2397_s0 + $0xb] sm:$0x1]  ;;  %v866_v9 = vld [vmem:[%s2397_s0 + $0xd] sm:$0x1] }
  0x12   :  { %1786 = vmatprep.mubr.msk.f32.mxu0 %vm1917_vm6, %v1916_v0  ;;  %v919_v8 = vsel %vm56_vm2, %v918_v58, %v917_v3  ;;  %v892_v10 = vrot.slane %v861_v61, 7  ;;  %v894_v11 = vrot.slane %v862_v63, 6  ;;  %v896_v12 = vrot.slane %v863_v1, 5  ;;  %v867_v14 = vld [vmem:[%s2397_s0 + $0xf] sm:$0x1] }
  0x13   :  { %v921_v13 = vsel %vm59_vm3, %v920_v59, %v919_v8  ;;  %v898_v15 = vrot.slane %v864_v2, 4  ;;  %v900_v18 = vrot.slane %v865_v7, 3  ;;  %v902_v21 = vrot.slane %v866_v9, 2  ;;  %v34_v34 = vld [vmem:[%s2399_s2 + $0x2] sm:$0x1] }
  0x14   :  { %v923_v16 = vsel %vm62_vm4, %v922_v60, %v921_v13  ;;  %v893_v17 = vsel %vm50_vm0, %v892_v10, %v860_v6  ;;  %v904_v24 = vrot.slane %v867_v14, 1  ;;  %v35_v35 = vld [vmem:[%s2399_s2 + $0x4] sm:$0x1]  ;;  %v187_v36 = vrot.slane %v34_v34, 7  ;;  %v33_v37 = vld [vmem:[%s2399_s2] sm:$0x1] }
  0x15   :  { %442 = vrot.lane.b32.xlu1 %v69_v44, %s1919_s22  ;;  %v925_v19 = vsel %vm65_vm5, %v924_v4, %v923_v16  ;;  %v895_v20 = vsel %vm53_vm1, %v894_v11, %v893_v17  ;;  %v36_v39 = vld [vmem:[%s2399_s2 + $0x6] sm:$0x1]  ;;  %v189_v40 = vrot.slane %v35_v35, 6  ;;  %v37_v41 = vld [vmem:[%s2399_s2 + $0x8] sm:$0x1] }
  0x16   :  { %v2093_v22 = vsel %vm68_vm7, %v926_v5, %v925_v19  ;;  %v897_v23 = vsel %vm56_vm2, %v896_v12, %v895_v20  ;;  %v188_v42 = vsel %vm50_vm0, %v187_v36, %v33_v37  ;;  %v191_v43 = vrot.slane %v36_v39, 5 }
  0x17   :  { %v899_v25 = vsel %vm59_vm3, %v898_v15, %v897_v23  ;;  %v193_v49 = vrot.slane %v37_v41, 4 }
  0x18   :  { %v901_v26 = vsel %vm62_vm4, %v900_v18, %v899_v25 }
  0x19   :  { %611 = vrot.lane.b32.xlu1 %v2015_v38, %s1920_s25  ;;  %v903_v27 = vsel %vm65_vm5, %v902_v21, %v901_v26 }
  0x1a   :  { %v2102_v28 = vsel %vm68_vm7, %v904_v24, %v903_v27 }
  0x1d   :  { %609 = vrot.lane.b32.xlu1 %v69_v44, %s1920_s25  ;;  %v38_v44 = vld [vmem:[%s2399_s2 + $0xa] sm:$0x1] }
  0x1e   :  { %v195_v50 = vrot.slane %v38_v44, 3 }
  0x21   :  { %1113 = vrot.lane.b32.xlu1 %v2093_v22, %s1918_s21 }
  0x25   :  { %1111 = vrot.lane.b32.xlu1 %v2102_v28, %s1918_s21 }
  0x29   :  { %1280 = vrot.lane.b32.xlu1 %v2093_v22, %s1919_s22 }
  0x2d   :  { %1447 = vrot.lane.b32.xlu1 %v2093_v22, %s1920_s25 }
  0x7f   :  { %v278_v57 = vpop.permute.xlu1 %277 }
  0x83   :  { %v276_v58 = vpop.permute.xlu1 %275 }
  0x87   :  { %v443_v60 = vpop.permute.xlu1 %442 }
  0x8b   :  { %v612_v61 = vpop.permute.xlu1 %611 }
  0x8f   :  { %v610_v1 = vpop.permute.xlu1 %609 }
  0x93   :  { %v1114_v2 = vpop.permute.xlu1 %1113 }
  0x97   :  { %v1112_v3 = vpop.permute.xlu1 %1111 }
  0x9b   :  { %v1281_v4 = vpop.permute.xlu1 %1280 }
  0x9f   :  { %v1448_v6 = vpop.permute.xlu1 %1447 }
  0xe4   :  { %v163_v45 = vpop.f32.mrb[0].mxu0 }
  0xe5   :  { %v1773_v46 = vpop.f32.mrb[1].mxu0  ;;  %v167_v47 = vsel %vm92_vm8, %v163_v45, -inf }
  0xe6   :  { %168 = vmax.xlane.f32.xlu0 %v167_v47  ;;  %v40_v46 = vld [vmem:[%s2399_s2 + $0xe] sm:$0x1]  ;;  %v190_v47 = vsel %vm53_vm1, %v189_v40, %v188_v42 }
  0xe7   :  { %v192_v48 = vsel %vm56_vm2, %v191_v43, %v190_v47  ;;  %v199_v52 = vrot.slane %v40_v46, 1 }
  0xe8   :  { %v194_v53 = vsel %vm59_vm3, %v193_v49, %v192_v48 }
  0xe9   :  { %v196_v54 = vsel %vm62_vm4, %v195_v50, %v194_v53 }
 0x173   :  { %v169_v29 = vpop.xlane.xlu0 %168 }
 0x174   :  { %v170_v30 = vsub.f32 %v163_v45, %v169_v29  ;;  %v39_v45 = vld [vmem:[%s2399_s2 + $0xc] sm:$0x1] }
 0x175   :  { %v197_v51 = vrot.slane %v39_v45, 2 }
 0x176   :  { %v171_v31 = vmul.f32 1.442695, %v170_v30 }
 0x177   :  { %v198_v55 = vsel %vm65_vm5, %v197_v51, %v196_v54 }
 0x178   :  { %1860 = vpow2.f32 %v171_v31  ;;  %v2142_v56 = vsel %vm68_vm7, %v199_v52, %v198_v55  ;;  %v877_v52 = vld [vmem:[%s2399_s2 + $0x3] sm:$0x1] }
 0x179   :  { %1775 = vmatpush3.msra.mxu1 %v2142_v56 }
 0x17a   :  { %1779 = vmatprep.subr.mxu1 %v1916_v0 }
 0x182   :  { %v1861_v32 = vpop.eup %1860 }
 0x183   :  { %v173_v33 = vsel %vm92_vm8, %v1861_v32, 0.0 }
 0x184   :  { %174 = vadd.xlane.f32.xlu0 %v173_v33 }
 0x19a   :  { %444 = vrot.lane.b32.xlu0 %v2015_v38, %s1919_s22 }
 0x19e   :  { %1278 = vrot.lane.b32.xlu0 %v2102_v28, %s1919_s22 }
 0x1a2   :  { %1445 = vrot.lane.b32.xlu0 %v2102_v28, %s1920_s25 }
 0x211   :  { %v175_v59 = vpop.xlane.xlu0 %174 }
 0x212   :  { %1862 = vrcp.f32 %v175_v59 }
 0x215   :  { %v445_v38 = vpop.permute.xlu0 %444 }
 0x219   :  { %v1279_v5 = vpop.permute.xlu0 %1278 }
 0x21c   :  { %v1863_v62 = vpop.eup %1862 }
 0x21d   :  { %v177_v63 = vmul.f32 %v1863_v62, %v1861_v32  ;;  %v1446_v7 = vpop.permute.xlu0 %1445 }
 0x21f   :  { %178 = vst.msk [vmem:[#allocation2] sm:$0xff] %vm92_vm8, %v177_v63  ;;  %1777 = vmatmul.mubr.msk.f32.vlgmr.msra.gmra.mrb[0].mxu1 %vm92_vm8, %v177_v63  ;;  %v879_v63 = vld [vmem:[%s2399_s2 + $0x7] sm:$0x1] }
 0x220   :  { %1780 = vmatpush3.xpose.msk.msra.mxu1 %vm92_vm8, %v278_v57  ;;  %1781 = vmatprep.mubr.msk.f32.mxu1 %vm1917_vm6, %v1916_v0  ;;  %v1023_v57 = vrot.slane %v877_v52, 7 }
 0x221   :  { %1789 = vmatprep.subr.mxu1 %v1916_v0 }
 0x223   :  { %1782 = vmatmul.mubr.msk.f32.vlgmr.msra.gmra.mrb[2].mxu1 %vm92_vm8, %v276_v58 }
 0x224   :  { %1790 = vmatpush3.xpose.msk.msra.mxu1 %vm92_vm8, %v445_v38  ;;  %1791 = vmatprep.mubr.msk.f32.mxu1 %vm1917_vm6, %v1916_v0 }
 0x225   :  { %1799 = vmatprep.subr.mxu1 %v1916_v0 }
 0x227   :  { %1792 = vmatmul.mubr.msk.f32.vlgmr.msra.gmra.mrb[4].mxu1 %vm92_vm8, %v443_v60  ;;  %v876_v60 = vld [vmem:[%s2399_s2 + $0x1] sm:$0x1] }
 0x228   :  { %1800 = vmatpush3.xpose.msk.msra.mxu1 %vm92_vm8, %v612_v61  ;;  %1801 = vmatprep.mubr.msk.f32.mxu1 %vm1917_vm6, %v1916_v0  ;;  %v1024_v38 = vsel %vm50_vm0, %v1023_v57, %v876_v60 }
 0x229   :  { %1809 = vmatprep.subr.mxu1 %v1916_v0 }
 0x22b   :  { %1802 = vmatmul.mubr.msk.f32.vlgmr.msra.gmra.mrb[6].mxu1 %vm92_vm8, %v610_v1 }
 0x22c   :  { %1810 = vmatpush3.xpose.msk.msra.mxu1 %vm92_vm8, %v2093_v22  ;;  %1811 = vmatprep.mubr.msk.f32.mxu1 %vm1917_vm6, %v1916_v0 }
 0x22d   :  { %1819 = vmatprep.subr.mxu1 %v1916_v0 }
 0x22f   :  { %1812 = vmatmul.mubr.msk.f32.vlgmr.msra.gmra.mrb[8].mxu1 %vm92_vm8, %v2102_v28 }
 0x230   :  { %1820 = vmatpush3.xpose.msk.msra.mxu1 %vm92_vm8, %v1114_v2  ;;  %1821 = vmatprep.mubr.msk.f32.mxu1 %vm1917_vm6, %v1916_v0 }
 0x231   :  { %1829 = vmatprep.subr.mxu1 %v1916_v0 }
 0x233   :  { %1822 = vmatmul.mubr.msk.f32.vlgmr.msra.gmra.mrb[10].mxu1 %vm92_vm8, %v1112_v3 }
 0x234   :  { %1830 = vmatpush3.xpose.msk.msra.mxu1 %vm92_vm8, %v1281_v4  ;;  %1831 = vmatprep.mubr.msk.f32.mxu1 %vm1917_vm6, %v1916_v0  ;;  %v880_v4 = vld [vmem:[%s2399_s2 + $0x9] sm:$0x1] }
 0x235   :  { %1839 = vmatprep.subr.mxu1 %v1916_v0 }
 0x237   :  { %1832 = vmatmul.mubr.msk.f32.vlgmr.msra.gmra.mrb[12].mxu1 %vm92_vm8, %v1279_v5  ;;  %v1027_v5 = vrot.slane %v879_v63, 5 }
 0x238   :  { %1840 = vmatpush3.xpose.msk.msra.mxu1 %vm92_vm8, %v1448_v6  ;;  %1841 = vmatprep.mubr.msk.f32.mxu1 %vm1917_vm6, %v1916_v0 }
 0x23b   :  { %1842 = vmatmul.mubr.msk.f32.vlgmr.msra.gmra.mrb[14].mxu1 %vm92_vm8, %v1446_v7  ;;  %v881_v7 = vld [vmem:[%s2399_s2 + $0xb] sm:$0x1] }
 0x2f2   :  { %v2190_v8 = vpop.f32.mrb[0].mxu1 }
 0x2f3   :  { %v1778_v9 = vpop.f32.mrb[1].mxu1 }
 0x2f4   :  { %v1029_v9 = vrot.slane %v880_v4, 4 }
 0x2f6   :  { %v349_v10 = vpop.f32.mrb[2].mxu1 }
 0x2f7   :  { %v1783_v11 = vpop.f32.mrb[3].mxu1  ;;  %v353_v12 = vsel %vm92_vm8, %v349_v10, -inf }
 0x2f8   :  { %354 = vmax.xlane.f32.xlu1 %v353_v12  ;;  %v882_v11 = vld [vmem:[%s2399_s2 + $0xd] sm:$0x1]  ;;  %v1031_v12 = vrot.slane %v881_v7, 3 }
 0x2fa   :  { %v516_v13 = vpop.f32.mrb[4].mxu1 }
 0x2fb   :  { %v1793_v14 = vpop.f32.mrb[5].mxu1  ;;  %v520_v15 = vsel %vm92_vm8, %v516_v13, -inf }
 0x2fc   :  { %521 = vmax.xlane.f32.xlu0 %v520_v15 }
 0x2fe   :  { %v683_v16 = vpop.f32.mrb[6].mxu1 }
 0x2ff   :  { %v1803_v17 = vpop.f32.mrb[7].mxu1  ;;  %v687_v18 = vsel %vm92_vm8, %v683_v16, -inf }
 0x300   :  { %688 = vmax.xlane.f32.xlu0 %v687_v18  ;;  %v1033_v17 = vrot.slane %v882_v11, 2 }
 0x302   :  { %v998_v19 = vpop.f32.mrb[8].mxu1 }
 0x303   :  { %v1813_v20 = vpop.f32.mrb[9].mxu1  ;;  %v1002_v21 = vsel %vm92_vm8, %v998_v19, -inf }
 0x304   :  { %1003 = vmax.xlane.f32.xlu1 %v1002_v21 }
 0x306   :  { %v1185_v22 = vpop.f32.mrb[10].mxu1 }
 0x307   :  { %v1189_v23 = vsel %vm92_vm8, %v1185_v22, -inf  ;;  %v1823_v24 = vpop.f32.mrb[11].mxu1 }
 0x308   :  { %1190 = vmax.xlane.f32.xlu0 %v1189_v23 }
 0x30a   :  { %v2197_v25 = vpop.f32.mrb[12].mxu1 }
 0x30b   :  { %v1356_v26 = vsel %vm92_vm8, %v2197_v25, -inf  ;;  %v1833_v27 = vpop.f32.mrb[13].mxu1 }
 0x30c   :  { %1357 = vmax.xlane.f32.xlu1 %v1356_v26 }
 0x30e   :  { %v1519_v28 = vpop.f32.mrb[14].mxu1 }
 0x30f   :  { %v1523_v29 = vsel %vm92_vm8, %v1519_v28, -inf  ;;  %v1843_v30 = vpop.f32.mrb[15].mxu1 }
 0x310   :  { %1524 = vmax.xlane.f32.xlu0 %v1523_v29 }
 0x31d   :  { %533 = vrot.lane.b32.xlu1 %v2142_v56, %s1919_s22 }
 0x321   :  { %700 = vrot.lane.b32.xlu1 %v2142_v56, %s1920_s25 }
 0x326   :  { %366 = vrot.lane.b32.xlu0 %v2142_v56, %s1918_s21  ;;  %v878_v56 = vld [vmem:[%s2399_s2 + $0x5] sm:$0x1] }
 0x327   :  { %v1025_v1 = vrot.slane %v878_v56, 6 }
 0x329   :  { %v1026_v6 = vsel %vm53_vm1, %v1025_v1, %v1024_v38 }
 0x385   :  { %v355_v31 = vpop.xlane.xlu1 %354 }
 0x386   :  { %v356_v32 = vsub.f32 %v349_v10, %v355_v31  ;;  %v1028_v10 = vsel %vm56_vm2, %v1027_v5, %v1026_v6 }
 0x387   :  { %v1030_v14 = vsel %vm59_vm3, %v1029_v9, %v1028_v10 }
 0x388   :  { %v357_v33 = vmul.f32 1.442695, %v356_v32  ;;  %v1032_v18 = vsel %vm62_vm4, %v1031_v12, %v1030_v14 }
 0x389   :  { %v522_v34 = vpop.xlane.xlu0 %521  ;;  %v1034_v20 = vsel %vm65_vm5, %v1033_v17, %v1032_v18 }
 0x38a   :  { %1864 = vpow2.f32 %v357_v33  ;;  %v523_v35 = vsub.f32 %v516_v13, %v522_v34 }
 0x38c   :  { %v524_v36 = vmul.f32 1.442695, %v523_v35 }
 0x38d   :  { %v689_v37 = vpop.xlane.xlu0 %688 }
 0x38e   :  { %1866 = vpow2.f32 %v524_v36  ;;  %v690_v39 = vsub.f32 %v683_v16, %v689_v37  ;;  %v883_v16 = vld [vmem:[%s2399_s2 + $0xf] sm:$0x1]  ;;  %s1921_s2 = smov 8  }
 0x390   :  { %v691_v40 = vmul.f32 1.442695, %v690_v39 }
 0x391   :  { %v1004_v41 = vpop.xlane.xlu1 %1003 }
 0x392   :  { %1868 = vpow2.f32 %v691_v40  ;;  %v1005_v42 = vsub.f32 %v998_v19, %v1004_v41  ;;  %v1035_v19 = vrot.slane %v883_v16, 1 }
 0x394   :  { %v2208_v43 = vpop.eup %1864  ;;  %v1006_v44 = vmul.f32 1.442695, %v1005_v42  ;;  %v1036_v21 = vsel %vm68_vm7, %v1035_v19, %v1034_v20 }
 0x395   :  { %v1191_v45 = vpop.xlane.xlu0 %1190  ;;  %v359_v46 = vsel %vm92_vm8, %v2208_v43, 0.0 }
 0x396   :  { %1870 = vpow2.f32 %v1006_v44  ;;  %v1192_v47 = vsub.f32 %v1185_v22, %v1191_v45  ;;  %360 = vadd.xlane.f32.xlu1 %v359_v46 }
 0x398   :  { %v2212_v48 = vpop.eup %1866  ;;  %v1193_v49 = vmul.f32 1.442695, %v1192_v47 }
 0x399   :  { %v526_v50 = vsel %vm92_vm8, %v2212_v48, 0.0  ;;  %v1358_v22 = vpop.xlane.xlu1 %1357 }
 0x39a   :  { %1872 = vpow2.f32 %v1193_v49  ;;  %527 = vadd.xlane.f32.xlu0 %v526_v50  ;;  %v1359_v23 = vsub.f32 %v2197_v25, %v1358_v22 }
 0x39c   :  { %v2216_v51 = vpop.eup %1868  ;;  %v1360_v24 = vmul.f32 1.442695, %v1359_v23 }
 0x39d   :  { %v1525_v53 = vpop.xlane.xlu0 %1524  ;;  %v693_v54 = vsel %vm92_vm8, %v2216_v51, 0.0 }
 0x39e   :  { %v1526_v55 = vsub.f32 %v1519_v28, %v1525_v53  ;;  %694 = vadd.xlane.f32.xlu1 %v693_v54  ;;  %v534_v28 = vpop.permute.xlu1 %533 }
 0x3a0   :  { %v2226_v58 = vpop.eup %1870  ;;  %v1527_v59 = vmul.f32 1.442695, %v1526_v55 }
 0x3a1   :  { %v1008_v61 = vsel %vm92_vm8, %v2226_v58, 0.0  ;;  %v367_v62 = vpop.permute.xlu0 %366 }
 0x3a2   :  { %1874 = vpow2.f32 %v1527_v59  ;;  %1009 = vadd.xlane.f32.xlu0 %v1008_v61  ;;  %1785 = vmatpush3.msra.mxu0 %v367_v62  ;;  %v701_v29 = vpop.permute.xlu1 %700 }
 0x3a3   :  { %1794 = vmatprep.subr.mxu0 %v1916_v0  ;;  %1876 = vpow2.f32 %v1360_v24 }
 0x3a4   :  { %v2238_v2 = vpop.eup %1872 }
 0x3a5   :  { %v1195_v3 = vsel %vm92_vm8, %v2238_v2, 0.0 }
 0x3a6   :  { %1196 = vadd.xlane.f32.xlu1 %v1195_v3 }
 0x3ac   :  { %v2253_v13 = vpop.eup %1874 }
 0x3ad   :  { %v1529_v15 = vsel %vm92_vm8, %v2253_v13, 0.0  ;;  %v1877_v26 = vpop.eup %1876 }
 0x3ae   :  { %1530 = vadd.xlane.f32.xlu1 %v1529_v15  ;;  %v1362_v27 = vsel %vm92_vm8, %v1877_v26, 0.0 }
 0x3b8   :  { %1202 = vrot.lane.b32.xlu0 %v1036_v21, %s1918_s21  ;;  %s1922_s21 = smov 16  }
 0x3bf   :  { %1369 = vrot.lane.b32.xlu1 %v1036_v21, %s1919_s22  ;;  %s1923_s22 = smov 24  }
 0x3d7   :  { %1363 = vadd.xlane.f32.xlu0 %v1362_v27 }
 0x3ed   :  { %1536 = vrot.lane.b32.xlu0 %v1036_v21, %s1920_s25  ;;  %s1924_s25 = smov [#allocation2]  }
 0x3ee   :  { %s1700_s12 = sshll.u32 %s1924_s25, 4  ;;  %s1701_s12 = int_to_ptr.vmem [resolvable:$true] %s1700_s12 }
 0x3ef   :  { %s1892_s13 = scalar_lea.vmem %s1701_s12, 1024  ;;  %p1897_p1 = scmp.lt.s32.totalorder %s1701_s12, %s1701_s12 }
 0x3f0   :  { %p1893_p0 = scmp.ne.s32.totalorder %s1701_s12, %s1892_s13  ;;  %p1898_p2 = scmp.lt.s32.totalorder %s1892_s13, %s1892_s13 }
 0x3f2   :  { %p1899_p3 = por %p1898_p2, %p1897_p1 }
 0x3f4   :  { %p1900_p4 = pnand %p1899_p3, %p1893_p0 }
 0x423   :  { %v361_v30 = vpop.xlane.xlu1 %360 }
 0x424   :  { %1878 = vrcp.f32 %v361_v30 }
 0x427   :  { %v528_v31 = vpop.xlane.xlu0 %527 }
 0x428   :  { %1880 = vrcp.f32 %v528_v31 }
 0x42b   :  { %v695_v32 = vpop.xlane.xlu1 %694 }
 0x42c   :  { %1882 = vrcp.f32 %v695_v32 }
 0x42e   :  { %v1879_v33 = vpop.eup %1878 }
 0x42f   :  { %v363_v34 = vmul.f32 %v1879_v33, %v2208_v43  ;;  %v1010_v25 = vpop.xlane.xlu0 %1009 }
 0x430   :  { %1884 = vrcp.f32 %v1010_v25 }
 0x431   :  { %365 = vst.msk [vmem:[#allocation2 + $0x8] sm:$0xff] %vm92_vm8, %v363_v34  ;;  %1787 = vmatmul.mubr.msk.f32.vlgmr.msra.gmra.mrb[2].mxu0 %vm92_vm8, %v363_v34 }
 0x432   :  { %v1881_v35 = vpop.eup %1880  ;;  %1795 = vmatpush3.msra.mxu0 %v534_v28  ;;  %1796 = vmatprep.mubr.msk.f32.mxu0 %vm1917_vm6, %v1916_v0 }
 0x433   :  { %v530_v36 = vmul.f32 %v1881_v35, %v2212_v48  ;;  %v1197_v37 = vpop.xlane.xlu1 %1196  ;;  %1804 = vmatprep.subr.mxu0 %v1916_v0  ;;  %v1203_v44 = vpop.permute.xlu0 %1202 }
 0x434   :  { %1886 = vrcp.f32 %v1197_v37 }
 0x435   :  { %532 = vst.msk [vmem:[#allocation2 + $0x10] sm:$0xff] %vm92_vm8, %v530_v36  ;;  %1797 = vmatmul.mubr.msk.f32.vlgmr.msra.gmra.mrb[4].mxu0 %vm92_vm8, %v530_v36 }
 0x436   :  { %v1883_v39 = vpop.eup %1882  ;;  %1805 = vmatpush3.msra.mxu0 %v701_v29  ;;  %1806 = vmatprep.mubr.msk.f32.mxu0 %vm1917_vm6, %v1916_v0 }
 0x437   :  { %v697_v40 = vmul.f32 %v1883_v39, %v2216_v51  ;;  %1814 = vmatprep.subr.mxu0 %v1916_v0 }
 0x439   :  { %699 = vst.msk [vmem:[#allocation2 + $0x18] sm:$0xff] %vm92_vm8, %v697_v40  ;;  %1807 = vmatmul.mubr.msk.f32.vlgmr.msra.gmra.mrb[6].mxu0 %vm92_vm8, %v697_v40 }
 0x43a   :  { %v1885_v41 = vpop.eup %1884  ;;  %1815 = vmatpush3.msra.mxu0 %v1036_v21  ;;  %1816 = vmatprep.mubr.msk.f32.mxu0 %vm1917_vm6, %v1916_v0 }
 0x43b   :  { %v1012_v42 = vmul.f32 %v1885_v41, %v2226_v58  ;;  %v1531_v43 = vpop.xlane.xlu1 %1530  ;;  %1824 = vmatprep.subr.mxu0 %v1916_v0 }
 0x43c   :  { %1888 = vrcp.f32 %v1531_v43 }
 0x43d   :  { %1014 = vst.msk [vmem:[#allocation2 + $0x20] sm:$0xff] %vm92_vm8, %v1012_v42  ;;  %1817 = vmatmul.mubr.msk.f32.vlgmr.msra.gmra.mrb[8].mxu0 %vm92_vm8, %v1012_v42 }
 0x43e   :  { %v1887_v45 = vpop.eup %1886  ;;  %1825 = vmatpush3.msra.mxu0 %v1203_v44  ;;  %1826 = vmatprep.mubr.msk.f32.mxu0 %vm1917_vm6, %v1916_v0 }
 0x43f   :  { %v1199_v46 = vmul.f32 %v1887_v45, %v2238_v2  ;;  %v1370_v47 = vpop.permute.xlu1 %1369  ;;  %1834 = vmatprep.subr.mxu0 %v1916_v0 }
 0x441   :  { %1201 = vst.msk [vmem:[#allocation2 + $0x28] sm:$0xff] %vm92_vm8, %v1199_v46  ;;  %1827 = vmatmul.mubr.msk.f32.vlgmr.msra.gmra.mrb[10].mxu0 %vm92_vm8, %v1199_v46 }
 0x442   :  { %1835 = vmatpush3.msra.mxu0 %v1370_v47  ;;  %1836 = vmatprep.mubr.msk.f32.mxu0 %vm1917_vm6, %v1916_v0 }
 0x443   :  { %1844 = vmatprep.subr.mxu0 %v1916_v0 }
 0x446   :  { %v1889_v48 = vpop.eup %1888 }
 0x447   :  { %v1533_v49 = vmul.f32 %v1889_v48, %v2253_v13 }
 0x449   :  { %1535 = vst.msk [vmem:[#allocation2 + $0x38] sm:$0xff] %vm92_vm8, %v1533_v49 }
 0x464   :  { %v1364_v50 = vpop.xlane.xlu0 %1363 }
 0x465   :  { %1890 = vrcp.f32 %v1364_v50 }
 0x468   :  { %v1537_v53 = vpop.permute.xlu0 %1536 }
 0x46f   :  { %v1891_v51 = vpop.eup %1890 }
 0x470   :  { %v1366_v52 = vmul.f32 %v1891_v51, %v1877_v26 }
 0x472   :  { %1368 = vst.msk [vmem:[#allocation2 + $0x30] sm:$0xff] %vm92_vm8, %v1366_v52  ;;  %1837 = vmatmul.mubr.msk.f32.vlgmr.msra.gmra.mrb[12].mxu0 %vm92_vm8, %v1366_v52 }
 0x473   :  { %1845 = vmatpush3.msra.mxu0 %v1537_v53  ;;  %1846 = vmatprep.mubr.msk.f32.mxu0 %vm1917_vm6, %v1916_v0 }
 0x476   :  { %1847 = vmatmul.mubr.msk.f32.vlgmr.msra.gmra.mrb[14].mxu0 %vm92_vm8, %v1533_v49 }
 0x504   :  { %v438_v54 = vpop.f32.mrb[2].mxu0 }
 0x505   :  { %777 = vrot.lane.b32.xlu1 %v438_v54, %s1921_s2  ;;  %v1788_v55 = vpop.f32.mrb[3].mxu0 }
 0x508   :  { %v605_v56 = vpop.f32.mrb[4].mxu0 }
 0x509   :  { %781 = vrot.lane.b32.xlu0 %v605_v56, %s1922_s21  ;;  %v1798_v57 = vpop.f32.mrb[5].mxu0 }
 0x50c   :  { %v772_v58 = vpop.f32.mrb[6].mxu0 }
 0x50d   :  { %785 = vrot.lane.b32.xlu1 %v772_v58, %s1923_s22  ;;  %v1808_v59 = vpop.f32.mrb[7].mxu0 }
 0x510   :  { %v2308_v60 = vpop.f32.mrb[8].mxu0 }
 0x511   :  { %v1818_v61 = vpop.f32.mrb[9].mxu0 }
 0x514   :  { %v1274_v0 = vpop.f32.mrb[10].mxu0 }
 0x515   :  { %1613 = vrot.lane.b32.xlu0 %v1274_v0, %s1921_s2  ;;  %v1828_v62 = vpop.f32.mrb[11].mxu0 }
 0x545   :  { %v1441_v63 = vpop.f32.mrb[12].mxu0 }
 0x546   :  { %1617 = vrot.lane.b32.xlu1 %v1441_v63, %s1922_s21  ;;  %v1838_v1 = vpop.f32.mrb[13].mxu0 }
 0x549   :  { %v1608_v38 = vpop.f32.mrb[14].mxu0 }
 0x54a   :  { %1903 = shalt.err (!%p1900_p4)
}
 0x54b   :  { %s1904_s16 = scalar_lea.hbm %s2401_s4, 1024 }
 0x54c   :  { %p1905_p5 = scmp.ne.s32.totalorder %s2401_s4, %s1904_s16  ;;  %p1908_p6 = scmp.lt.u32.totalorder %s1904_s16, %s2401_s4 }
 0x54e   :  { %p1910_p7 = pnand %p1908_p6, %p1905_p5 }
 0x550   :  { %1913 = shalt.err (!%p1910_p7)
}
 0x551   :  { %s1925_s20 = smov 128   ;;  %1621 = vrot.lane.b32.xlu0 %v1608_v38, %s1923_s22  ;;  %v1848_v2 = vpop.f32.mrb[15].mxu0  ;;  %v1926_v3 = vmov 1966171168   ;;  %v798_v5 = vlaneseq  ;;  %vm789_vm9 = vcmask 130048   ;;  %vm791_vm10 = vcmask 195584  }
 0x552   :  { %1706 = dma.vmem_to_hbm [thread:$0]  %s1701_s12, 1024, %s2401_s4, [#allocation3], %s1925_s20, %s1925_s20, %s1921_s2   ;;  %v796_v4 = vunpack.c.l.s4 %v1926_v3  ;;  %vm851_vm11 = vcmask 253952  }
 0x553   :  { %v799_v7 = vshrl.u32 %v798_v5, 7 }
 0x554   :  { %v797_v6 = vunpack.c.0.s8 %v796_v4 }
 0x556   :  { %v800_v11 = vsub.s32 %v797_v6, %v799_v7 }
 0x577   :  { %v778_v9 = vpop.permute.xlu1 %777 }
 0x578   :  { %v788_v12 = vsel %vm92_vm8, %v2190_v8, %v778_v9 }
 0x57b   :  { %v782_v10 = vpop.permute.xlu0 %781 }
 0x57c   :  { %v790_v13 = vsel %vm789_vm9, %v788_v12, %v782_v10 }
 0x57f   :  { %v786_v14 = vpop.permute.xlu1 %785 }
 0x580   :  { %v792_v15 = vsel %vm791_vm10, %v790_v13, %v786_v14 }
 0x581   :  { %v794_v16 = vcombine.high %v792_v15, %v792_v15  ;;  %v801_v17 = vrot.slane %v792_v15, %v800_v11 }
 0x583   :  { %v808_v18 = vrot.slane %v794_v16, %v800_v11  ;;  %v809_v19 = vcombine.high %v801_v17, %v801_v17  ;;  %v817_v20 = vrot.slane %v801_v17, %v800_v11 }
 0x585   :  { %v810_v21 = vcombine.high %v808_v18, %v808_v18  ;;  %v824_v22 = vrot.slane %v808_v18, %v800_v11  ;;  %v831_v23 = vrot.slane %v809_v19, %v800_v11  ;;  %v839_v24 = vcombine.high %v817_v20, %v817_v20  ;;  %852 = vst.msk [vmem:[%s2400_s3] sm:$0x1] %vm851_vm11, %v817_v20 }
 0x587   :  { %v838_v8 = vrot.slane %v810_v21, %v800_v11  ;;  %v840_v26 = vcombine.high %v824_v22, %v824_v22  ;;  %v841_v27 = vcombine.high %v831_v23, %v831_v23  ;;  %853 = vst.msk [vmem:[%s2400_s3 + $0x2] sm:$0x1] %vm851_vm11, %v831_v23  ;;  %854 = vst.msk [vmem:[%s2400_s3 + $0x4] sm:$0x1] %vm851_vm11, %v839_v24  ;;  %v1614_v29 = vpop.permute.xlu0 %1613 }
 0x588   :  { %856 = vst.msk [vmem:[%s2400_s3 + $0x8] sm:$0x1] %vm851_vm11, %v824_v22  ;;  %v1624_v31 = vsel %vm92_vm8, %v2308_v60, %v1614_v29 }
 0x589   :  { %v842_v28 = vcombine.high %v838_v8, %v838_v8  ;;  %855 = vst.msk [vmem:[%s2400_s3 + $0x6] sm:$0x1] %vm851_vm11, %v841_v27  ;;  %857 = vst.msk [vmem:[%s2400_s3 + $0xa] sm:$0x1] %vm851_vm11, %v838_v8 }
 0x58a   :  { %858 = vst.msk [vmem:[%s2400_s3 + $0xc] sm:$0x1] %vm851_vm11, %v840_v26 }
 0x58b   :  { %859 = vst.msk [vmem:[%s2400_s3 + $0xe] sm:$0x1] %vm851_vm11, %v842_v28 }
 0x5b8   :  { %v1618_v30 = vpop.permute.xlu1 %1617 }
 0x5b9   :  { %v1625_v32 = vsel %vm789_vm9, %v1624_v31, %v1618_v30 }
 0x5c3   :  { %v1622_v33 = vpop.permute.xlu0 %1621 }
 0x5c4   :  { %v1626_v34 = vsel %vm791_vm10, %v1625_v32, %v1622_v33 }
 0x5c5   :  { %v1628_v25 = vcombine.high %v1626_v34, %v1626_v34  ;;  %v1635_v35 = vrot.slane %v1626_v34, %v800_v11 }
 0x5c7   :  { %v1642_v36 = vrot.slane %v1628_v25, %v800_v11  ;;  %v1643_v37 = vcombine.high %v1635_v35, %v1635_v35  ;;  %v1651_v39 = vrot.slane %v1635_v35, %v800_v11 }
 0x5c9   :  { %v1644_v40 = vcombine.high %v1642_v36, %v1642_v36  ;;  %v1658_v41 = vrot.slane %v1642_v36, %v800_v11  ;;  %v1665_v42 = vrot.slane %v1643_v37, %v800_v11  ;;  %v1673_v43 = vcombine.high %v1651_v39, %v1651_v39  ;;  %1685 = vst.msk [vmem:[%s2400_s3 + $0x1] sm:$0x1] %vm851_vm11, %v1651_v39 }
 0x5cb   :  { %v1672_v44 = vrot.slane %v1644_v40, %v800_v11  ;;  %v1674_v45 = vcombine.high %v1658_v41, %v1658_v41  ;;  %v1675_v46 = vcombine.high %v1665_v42, %v1665_v42  ;;  %1686 = vst.msk [vmem:[%s2400_s3 + $0x3] sm:$0x1] %vm851_vm11, %v1665_v42  ;;  %1687 = vst.msk [vmem:[%s2400_s3 + $0x5] sm:$0x1] %vm851_vm11, %v1673_v43 }
 0x5cc   :  { %1689 = vst.msk [vmem:[%s2400_s3 + $0x9] sm:$0x1] %vm851_vm11, %v1658_v41 }
 0x5cd   :  { %v1676_v47 = vcombine.high %v1672_v44, %v1672_v44  ;;  %1688 = vst.msk [vmem:[%s2400_s3 + $0x7] sm:$0x1] %vm851_vm11, %v1675_v46  ;;  %1690 = vst.msk [vmem:[%s2400_s3 + $0xb] sm:$0x1] %vm851_vm11, %v1672_v44 }
 0x5ce   :  { %1691 = vst.msk [vmem:[%s2400_s3 + $0xd] sm:$0x1] %vm851_vm11, %v1674_v45 }
 0x5cf   :  { %1692 = vst.msk [vmem:[%s2400_s3 + $0xf] sm:$0x1] %vm851_vm11, %v1676_v47 }
 0x5d0   :  { %1914 = dma.done.wait [#allocation3], 1024  }
 0x5d1   :  { %1915 = vsyncadd [#allocation3], 4294966272 }
 0x5d2   :  { %1712 = vsyncpa [#allocation3], 1 }

// kernel: transformer_decoder_layer_forward.15
= control target key start
LH: loop header
LB: loop body
LE: loop exit
PB: predicated region body
PF: predicated region fallthrough
CT: control target
= control target key end

     0   :  { %12 = vsyncpa [#allocation4], 0  ;;  %s1116_s0 = inlined_call_operand.vmem [shape: f32[16,32], index: 0, kind: input, shape index: {}]   ;;  %s1117_s1 = inlined_call_operand.vmem [shape: f32[32,64], index: 1, kind: input, shape index: {}]   ;;  %s1118_s2 = inlined_call_operand.vmem [shape: f32[1,64], index: 2, kind: input, shape index: {}]   ;;  %s1119_s3 = inlined_call_operand.vmem [shape: f32[64,32], index: 3, kind: input, shape index: {}]   ;;  %s1120_s4 = inlined_call_operand.vmem [shape: f32[1,32], index: 4, kind: input, shape index: {}]   ;;  %s1121_s5 = inlined_call_operand.vmem [shape: f32[1,32], index: 5, kind: input, shape index: {}]   ;;  %s1122_s6 = inlined_call_operand.vmem [shape: f32[1,32], index: 6, kind: input, shape index: {}]   ;;  %s1123_s7 = inlined_call_operand.hbm [shape: f32[16,32], index: 7, kind: output, shape index: {}]  }
   0x1   :  { %14 = vsyncpa [#allocation4 + $0x1], 0  ;;  %s950_s24 = smov 0   ;;  %s952_s25 = smov 0  }
   0x2   :  { %s954_s26 = smov 0   ;;  %s956_s27 = smov 0  }
   0x3   :  { %s958_s28 = smov 0   ;;  %s960_s29 = smov 0  }
   0x4 LB: > { %s684_s30 = sadd.s32 4294967295, %s904_s29   ;;  %s685_s8 = sadd.s32 4294967294, %s904_s29   ;;  %s904_s29 = sphi %s960_s29, %s20_s29   ;;  %s900_s28 = sphi %s958_s28, %s1130_s28   ;;  %s896_s27 = sphi %s956_s27, %s1129_s27   ;;  %s892_s26 = sphi %s954_s26, %s1128_s26   ;;  %s888_s25 = sphi %s952_s25, %s1127_s25   ;;  %s884_s24 = sphi %s950_s24, %s1126_s24  }
   0x5   : > { %s32_s9 = sadd.s32 1, %s900_s28  ;;  %s206_s10 = sadd.s32 1, %s892_s26 }
   0x6   : > { %p34_p0 = scmp.ge.s32.totalorder %s32_s9, 2  ;;  %p216_p1 = scmp.ne.s32.totalorder %s892_s26, %s888_s25 }
   0x7   : > { %p217_p2 = scmp.eq.s32.totalorder %s684_s30, 1  ;;  %p222_p3 = scmp.ne.s32.totalorder %s888_s25, %s884_s24 }
   0x8   : > { %s1132_s9 = smov (%p34_p0, %s32_s9), 0  ;;  %p223_p5 = scmp.eq.s32.totalorder %s685_s8, 1 }
   0x9   : > { %p990_p4 = por %p217_p2, %p216_p1  ;;  %s203_s12 = ssub.s32 %s900_s28, %s1132_s9 }
   0xa   : > { %p691_p6 = scmp.ge.s32.totalorder %s904_s29, 1  ;;  %p204_p7 = scmp.eq.s32.totalorder %s203_s12, 0 }
   0xb   : > { %p997_p8 = por %p223_p5, %p222_p3  ;;  %p279_p9 = scmp.lt.s32.totalorder %s904_s29, 3 }
   0xc   : > { %s1003_s14 = scalar_select %p204_p7, %s892_s26, %s206_s10  }
   0xd   : > { %p280_p10 = pnand %p691_p6, %p279_p9 }
   0xe   : > { %v346_v0 = vld [vmem:[%s1117_s1] sm:$0xff] (!%p280_p10)  ;;  %v347_v1 = vld [vmem:[%s1117_s1 + $0x8] sm:$0xff] (!%p280_p10)  ;;  %v348_v2 = vld [vmem:[%s1117_s1 + $0x10] sm:$0xff] (!%p280_p10)  ;;  %vm343_vm0 = vcmask (!%p280_p10), 261120   ;;  %v906_v3 = vmov (!%p280_p10), 0.0|0.0   ;;  %v907_v6 = vmov (!%p280_p10), 0.0  }
   0xf   : > { %283 = sbr.rel (%p280_p10) target bundleno = 796 (0x31c), region = 48  ;;  %748 = vmatprep.subr.bf16.mxu0 (!%p280_p10), %v906_v3  ;;  %v749_v4 = vpack.c.bf16 (!%p280_p10), %v347_v1, %v346_v0  ;;  %v349_v5 = vld [vmem:[%s1117_s1 + $0x18] sm:$0xff] (!%p280_p10)  ;;  %344 = vst.msk [vmem:[#allocation2] sm:$0xff] (!%p280_p10), %vm343_vm0, %v907_v6  ;;  %p322_p11 = scmp.lt.s32.totalorder (!%p280_p10), %s896_s27, 1  ;;  %754 = vmatprep.subr.bf16.mxu1 (!%p280_p10), %v906_v3  ;;  %v433_v7 = vld [vmem:[%s1119_s3] sm:$0xff] (!%p280_p10)  ;;  %v434_v8 = vld [vmem:[%s1119_s3 + $0x8] sm:$0xff] (!%p280_p10) }
  0x10   : > { %vm908_vm1 = vmmov (!%p280_p10), 0   ;;  %v755_v9 = vpack.c.bf16 (!%p280_p10), %v434_v8, %v433_v7  ;;  %v435_v10 = vld [vmem:[%s1119_s3 + $0x10] sm:$0xff] (!%p280_p10)  ;;  %v436_v11 = vld [vmem:[%s1119_s3 + $0x18] sm:$0xff] (!%p280_p10)  ;;  %v752_v12 = vpack.c.bf16 (!%p280_p10), %v349_v5, %v348_v2  ;;  %v437_v14 = vld [vmem:[%s1119_s3 + $0x20] sm:$0xff] (!%p280_p10)  ;;  %vm441_vm2 = vcmask (!%p280_p10), 523264   ;;  %s319_s22 = sand.u32 (!%p280_p10), 1, %s888_s25  }
  0x11   : > { %726 = vmatprep.mubr.msk.f32.mxu0 (!%p280_p10), %vm908_vm1, %v907_v6  ;;  %745 = vmatprep.mubr.msk.f32.mxu1 (!%p280_p10), %vm908_vm1, %v907_v6  ;;  %v758_v13 = vpack.c.bf16 (!%p280_p10), %v436_v11, %v435_v10  ;;  %v438_v15 = vld [vmem:[%s1119_s3 + $0x28] sm:$0xff] (!%p280_p10)  ;;  %v439_v18 = vld [vmem:[%s1119_s3 + $0x30] sm:$0xff] (!%p280_p10)  ;;  %v440_v19 = vld [vmem:[%s1119_s3 + $0x38] sm:$0xff] (!%p280_p10)  ;;  %s692_s23 = sshll.u32 (!%p280_p10), %s319_s22, 3  ;;  %s701_s15 = sshll.u32 (!%p280_p10), %s896_s27, 7 }
  0x12   : > { %750 = vmatpush3.bf16.msra.mxu0 (!%p280_p10), %v749_v4  ;;  %756 = vmatpush3.bf16.msra.mxu1 (!%p280_p10), %v755_v9  ;;  %v761_v17 = vpack.c.bf16 (!%p280_p10), %v438_v15, %v437_v14  ;;  %v764_v20 = vpack.c.bf16 (!%p280_p10), %v440_v19, %v439_v18  ;;  %v694_v21 = vld [vmem:[%s1118_s2] ss:$0 sm:$0xff] (!%p280_p10)  ;;  %s321_s16 = scalar_lea.vmem (!%p280_p10), [#allocation3], %s692_s23  ;;  %s1068_s20 = scalar_lea.hbm (!%p280_p10), %s1123_s7, %s701_s15 }
  0x13   : > { %751 = vmatprep.subr.bf16.mxu0 (!%p280_p10), %v906_v3  ;;  %757 = vmatprep.subr.bf16.mxu1 (!%p280_p10), %v906_v3  ;;  %v697_v30 = vld [vmem:[%s1120_s4] ss:$0 sm:$0xff] (!%p280_p10)  ;;  %s575_s17 = sshll.u32 (!%p280_p10), %s321_s16, 4  ;;  %s562_s21 = scalar_lea.sflag (!%p280_p10), [#allocation4], %s319_s22  ;;  %s1070_s17 = int_to_ptr.vmem [resolvable:$true] %s575_s17 }
  0x14   : > { %v698_v44 = vld [vmem:[%s1121_s5] ss:$0 sm:$0xff] (!%p280_p10)  ;;  %s826_s30 = scalar_lea.vmem (!%p280_p10), %s1070_s17, 128 }
  0x15   : > { %v699_v46 = vld [vmem:[%s1122_s6] ss:$0 sm:$0xff] (!%p280_p10)  ;;  %p827_p12 = scmp.ne.s32.totalorder (!%p280_p10), %s1070_s17, %s826_s30 }
  0x16   : > { %s323_s18 = scalar_select %p322_p11, %s896_s27, 1  ;;  %753 = vmatpush3.bf16.msra.mxu0 %v752_v12  ;;  %759 = vmatpush3.bf16.msra.mxu1 %v758_v13  ;;  %v432_v26 = vld [vmem:[#allocation2] sm:$0xff] }
  0x17   : > { %760 = vmatprep.subr.bf16.mxu1 %v906_v3  ;;  %p828_p13 = pnand %p827_p12, %p990_p4  ;;  %s909_s27 = smov [#allocation3]  }
  0x18   : > { %s693_s19 = sshll.u32 %s323_s18, 3  ;;  %s830_s23 = sshll.u32 %s909_s27, 4  ;;  %s831_s23 = int_to_ptr.vmem [resolvable:$false] %s830_s23 }
  0x19   : > { %s325_s10 = scalar_lea.vmem %s1116_s0, %s693_s19  ;;  %p829_p0 = pneg %p828_p13 }
  0x1a   : > { %v345_v16 = vld [vmem:[%s325_s10] sm:$0xff]  ;;  %762 = vmatpush3.bf16.msra.mxu1 %v761_v17  ;;  %s832_s8 = scalar_lea.vmem %s831_s23, 256  ;;  %p833_p1 = scmp.lt.s32.totalorder %s1070_s17, %s831_s23 }
  0x1b   : > { %727 = vmatmul.mubr.msk.f32.vlgmr.msra.gmra.mrb[0].mxu0 %vm343_vm0, %v345_v16  ;;  %763 = vmatprep.subr.bf16.mxu1 %v906_v3  ;;  %p834_p2 = scmp.lt.s32.totalorder %s832_s8, %s826_s30 }
  0x1d   : > { %p835_p3 = por %p834_p2, %p833_p1 }
  0x1e   : > { %765 = vmatpush3.bf16.msra.mxu1 %v764_v20 }
  0x1f   : > { %p836_p5 = pnand %p835_p3, %p829_p0 }
  0xee   : > { %v427_v22 = vpop.f32.mrb[0].mxu0 }
  0xef   : > { %v428_v23 = vadd.f32 %v694_v21, %v427_v22  ;;  %v728_v24 = vpop.f32.mrb[1].mxu0 }
  0xf1   : > { %v431_v25 = vmax.f32 %v428_v23, 0.0 }
  0xf3   : > { %746 = vmatmul.mubr.msk.f32.vlgmr.msra.gmra.mrb[0].mxu1 %vm441_vm2, %v431_v25 }
 0x1c6   : > { %v511_v27 = vpop.f32.mrb[0].mxu1 }
 0x1c7   : > { %v515_v28 = vadd.f32 %v511_v27, %v432_v26  ;;  %v747_v29 = vpop.f32.mrb[1].mxu1 }
 0x1c9   : > { %516 = vst.msk [vmem:[#allocation2] sm:$0xff] %vm343_vm0, %v515_v28 }
 0x1d0   : > { %v520_v31 = vld [vmem:[#allocation2] sm:$0xff] }
 0x1d1   : > { %v528_v32 = vadd.f32 %v697_v30, %v520_v31 }
 0x1d3   : > { %v529_v33 = vadd.f32 %v528_v32, %v345_v16 }
 0x1d5   : > { %v530_v34 = vsel %vm343_vm0, %v529_v33, 0.0 }
 0x1d6   : > { %531 = vadd.xlane.f32.xlu0 %v530_v34 }
 0x263   : > { %v532_v35 = vpop.xlane.xlu0 %531 }
 0x264   : > { %v534_v36 = vmul.f32 0.03125, %v532_v35 }
 0x266   : > { %v535_v37 = vsub.f32 %v529_v33, %v534_v36 }
 0x268   : > { %v536_v38 = vmul.f32 %v535_v37, %v535_v37 }
 0x26a   : > { %v537_v39 = vsel %vm343_vm0, %v536_v38, 0.0 }
 0x26b   : > { %538 = vadd.xlane.f32.xlu0 %v537_v39 }
 0x2f8   : > { %v539_v40 = vpop.xlane.xlu0 %538 }
 0x2f9   : > { %v540_v41 = vmul.f32 0.03125, %v539_v40 }
 0x2fb   : > { %v541_v42 = vadd.f32 1e-05, %v540_v41 }
 0x2fd   : > { %824 = vrsqrt.f32 %v541_v42 }
 0x307   : > { %v825_v43 = vpop.eup %824 }
 0x308   : > { %v543_v45 = vmul.f32 %v825_v43, %v535_v37 }
 0x30a   : > { %v551_v47 = vmul.f32 %v698_v44, %v543_v45 }
 0x30c   : > { %v559_v48 = vadd.f32 %v699_v46, %v551_v47 }
 0x30e   : > { %560 = vst.msk [vmem:[%s321_s16] sm:$0xff] %vm343_vm0, %v559_v48 }
 0x30f   : > { %839 = shalt.err (!%p836_p5)
}
 0x310   : > { %s840_s22 = scalar_lea.hbm %s1068_s20, 128  ;;  %s844_s15 = scalar_lea.hbm %s1123_s7, 256 }
 0x311   : > { %p841_p6 = scmp.ne.s32.totalorder %s1068_s20, %s840_s22  ;;  %p845_p10 = scmp.lt.u32.totalorder %s1068_s20, %s1123_s7 }
 0x312   : > { %p846_p11 = scmp.lt.u32.totalorder %s844_s15, %s840_s22  ;;  %p848_p13 = scmp.lt.u32.totalorder %s840_s22, %s1068_s20 }
 0x313   : > { %p842_p7 = pnand %p841_p6, %p990_p4 }
 0x314   : > { %p847_p12 = por %p846_p11, %p845_p10 }
 0x315   : > { %p843_p9 = pneg %p842_p7 }
 0x316   : > { %p849_p0 = por %p848_p13, %p847_p12 }
 0x318   : > { %p850_p1 = pnand %p849_p0, %p843_p9 }
 0x31a   : > { %853 = shalt.err (!%p850_p1)
}
 0x31b   : > { %766 = dma.vmem_to_hbm [thread:$0]  (%p990_p4), %s1070_s17, 128, %s1068_s20, %s562_s21  }
 0x31c PF: > { %p772_p2 = scmp.ge.s32.totalorder %s904_s29, 2  ;;  %s587_s19 = sand.u32 1, %s884_s24  }
 0x31d   : > { %s588_s30 = scalar_lea.sflag [#allocation4], %s587_s19 }
 0x31e   : > { %p769_p3 = pnand %p772_p2, %p997_p8 }
 0x320   : > { %879 = dma.done.wait (!%p769_p3), %s588_s30, 128  }
 0x321   : > { %881 = vsyncadd (!%p769_p3), %s588_s30, 4294967168  ;;  %s20_s29 = sadd.s32 1, %s904_s29   ;;  %s1126_s24 = smov %s888_s25 }
 0x322   : > { %p17_p5 = scmp.ge.s32.totalorder %s20_s29, 4   ;;  %s1127_s25 = smov %s892_s26 }
 0x323   : > { %s1128_s26 = smov %s1003_s14  ;;  %s1129_s27 = smov %s900_s28 }
 0x324   : > { %s1130_s28 = smov %s1132_s9  ;;  %19 = sbr.rel (!%p17_p5) target bundleno = 4 (0x4), region = 100 }
 0x32b   :  { %593 = vsyncpa [#allocation4], 1 }
 0x32c   :  { %595 = vsyncpa [#allocation4 + $0x1], 1 }

// kernel: transformer_decoder_layer_forward.13
= control target key start
LH: loop header
LB: loop body
LE: loop exit
PB: predicated region body
PF: predicated region fallthrough
CT: control target
= control target key end

     0   :  { %v2216_v0 = vmov 0.0|0.0   ;;  %vm58_vm0 = vcmask 1041409   ;;  %vm61_vm1 = vcmask 1042434   ;;  %vm64_vm2 = vcmask 1043459   ;;  %s2807_s0 = inlined_call_operand.vmem [shape: f32[8,2,32], index: 0, kind: input, shape index: {}]   ;;  %s2808_s1 = inlined_call_operand.vmem [shape: f32[12,2,32], index: 1, kind: input, shape index: {}]   ;;  %s2809_s2 = inlined_call_operand.vmem [shape: f32[12,2,32], index: 2, kind: input, shape index: {}]   ;;  %s2810_s3 = inlined_call_operand.vmem [shape: f32[8,2,32], index: 3, kind: output, shape index: {0}]   ;;  %s2811_s4 = inlined_call_operand.hbm [shape: f32[2,8,12], index: 4, kind: output, shape index: {1}]  }
   0x1   :  { %2023 = vmatprep.subr.bf16.mxu0 %v2216_v0  ;;  %v26_v1 = vld [vmem:[%s2808_s1 + $0x2] sm:$0x1]  ;;  %v27_v2 = vld [vmem:[%s2808_s1 + $0x4] sm:$0x1]  ;;  %2027 = vmatprep.subr.bf16.mxu1 %v2216_v0  ;;  %v25_v3 = vld [vmem:[%s2808_s1] sm:$0x1] }
   0x2   :  { %v28_v4 = vld [vmem:[%s2808_s1 + $0x6] sm:$0x1]  ;;  %v29_v5 = vld [vmem:[%s2808_s1 + $0x8] sm:$0x1]  ;;  %v30_v6 = vld [vmem:[%s2808_s1 + $0xa] sm:$0x1] }
   0x3   :  { %v31_v7 = vld [vmem:[%s2808_s1 + $0xc] sm:$0x1]  ;;  %v32_v8 = vld [vmem:[%s2808_s1 + $0xe] sm:$0x1]  ;;  %v34_v9 = vld [vmem:[%s2808_s1 + $0x12] sm:$0x1] }
   0x4   :  { %v33_v10 = vld [vmem:[%s2808_s1 + $0x10] sm:$0x1]  ;;  %v35_v11 = vld [vmem:[%s2808_s1 + $0x14] sm:$0x1]  ;;  %vm67_vm3 = vcmask 1044484   ;;  %vm70_vm4 = vcmask 1045509  }
   0x5   :  { %v36_v12 = vld [vmem:[%s2808_s1 + $0x16] sm:$0x1]  ;;  %vm73_vm5 = vcmask 1046534   ;;  %vm76_vm6 = vcmask 1047559   ;;  %v90_v13 = vrot.slane %v26_v1, 7  ;;  %v92_v14 = vrot.slane %v27_v2, 6 }
   0x6   :  { %v94_v15 = vrot.slane %v28_v4, 5  ;;  %v96_v16 = vrot.slane %v29_v5, 4  ;;  %v98_v17 = vrot.slane %v30_v6, 3  ;;  %v100_v18 = vrot.slane %v31_v7, 2  ;;  %v17_v19 = vld [vmem:[%s2807_s0] sm:$0x1] }
   0x7   :  { %v18_v20 = vld [vmem:[%s2807_s0 + $0x2] sm:$0x1]  ;;  %v91_v21 = vsel %vm58_vm0, %v90_v13, %v25_v3  ;;  %v102_v22 = vrot.slane %v32_v8, 1  ;;  %v104_v23 = vrot.slane %v34_v9, 7  ;;  %v106_v24 = vrot.slane %v35_v11, 6 }
   0x8   :  { %v19_v25 = vld [vmem:[%s2807_s0 + $0x4] sm:$0x1]  ;;  %v93_v26 = vsel %vm61_vm1, %v92_v14, %v91_v21  ;;  %v108_v27 = vrot.slane %v36_v12, 5  ;;  %vm110_vm7 = vcmask 64512   ;;  %v20_v28 = vld [vmem:[%s2807_s0 + $0x6] sm:$0x1] }
   0x9   :  { %v95_v29 = vsel %vm64_vm2, %v94_v15, %v93_v26  ;;  %v105_v30 = vsel %vm58_vm0, %v104_v23, %v33_v10  ;;  %v21_v31 = vld [vmem:[%s2807_s0 + $0x8] sm:$0x1]  ;;  %v22_v32 = vld [vmem:[%s2807_s0 + $0xa] sm:$0x1]  ;;  %v57_v33 = vrot.slane %v18_v20, 7  ;;  %vm2217_vm8 = vmmov 0  }
   0xa   :  { %v97_v34 = vsel %vm67_vm3, %v96_v16, %v95_v29  ;;  %v107_v35 = vsel %vm61_vm1, %v106_v24, %v105_v30  ;;  %v2218_v36 = vmov 0.0   ;;  %v23_v37 = vld [vmem:[%s2807_s0 + $0xc] sm:$0x1]  ;;  %v60_v38 = vrot.slane %v19_v25, 6 }
   0xb   :  { %1915 = vmatprep.mubr.msk.f32.mxu0 %vm2217_vm8, %v2218_v36  ;;  %v63_v39 = vrot.slane %v20_v28, 5  ;;  %1922 = vmatprep.mubr.msk.f32.mxu1 %vm2217_vm8, %v2218_v36  ;;  %v99_v40 = vsel %vm70_vm4, %v98_v17, %v97_v34  ;;  %v109_v41 = vsel %vm64_vm2, %v108_v27, %v107_v35  ;;  %v59_v42 = vsel %vm58_vm0, %v57_v33, %v17_v19 }
   0xc   :  { %v66_v43 = vrot.slane %v21_v31, 4 }
   0xd   :  { %10 = vsyncpa [#allocation3], 0  ;;  %v101_v44 = vsel %vm73_vm5, %v100_v18, %v99_v40  ;;  %v62_v45 = vsel %vm61_vm1, %v60_v38, %v59_v42  ;;  %v69_v46 = vrot.slane %v22_v32, 3  ;;  %v24_v49 = vld [vmem:[%s2807_s0 + $0xe] sm:$0x1]  ;;  %v72_v51 = vrot.slane %v23_v37, 2 }
   0xe   :  { %v103_v47 = vsel %vm76_vm6, %v102_v22, %v101_v44  ;;  %vm2331_vm9 = vmpackc.low %vm110_vm7, %vm110_vm7  ;;  %v65_v50 = vsel %vm64_vm2, %v63_v39, %v62_v45  ;;  %v75_v55 = vrot.slane %v24_v49, 1  ;;  %vm187_vm10 = vcmask 97280   ;;  %s2219_s29 = smov 120   ;;  %v38_v4 = vld [vmem:[%s2809_s2 + $0x2] sm:$0x1]  ;;  %s2221_s28 = smov 112  }
   0xf   :  { %v2024_v52 = vpack.c.bf16 %v109_v41, %v103_v47  ;;  %v68_v53 = vsel %vm67_vm3, %v66_v43, %v65_v50  ;;  %v2353_v61 = vpack.i.bf16 %v109_v41, %v103_v47  ;;  %v39_v5 = vld [vmem:[%s2809_s2 + $0x4] sm:$0x1]  ;;  %v211_v6 = vrot.slane %v38_v4, 7  ;;  %v37_v7 = vld [vmem:[%s2809_s2] sm:$0x1]  ;;  %s2222_s30 = smov 104  }
  0x10   :  { %v71_v54 = vsel %vm70_vm4, %v69_v46, %v68_v53  ;;  %v40_v8 = vld [vmem:[%s2809_s2 + $0x6] sm:$0x1]  ;;  %v213_v9 = vrot.slane %v39_v5, 6  ;;  %v41_v10 = vld [vmem:[%s2809_s2 + $0x8] sm:$0x1]  ;;  %vm235_vm11 = vcmask 1043456  }
  0x11   :  { %2026 = vmatpush3.bf16.xpose.msk.msra.mxu0 %vm2331_vm9, %v2024_v52  ;;  %v74_v56 = vsel %vm73_vm5, %v72_v51, %v71_v54  ;;  %2101 = vrot.lane.b32.xlu1 %v2353_v61, %s2219_s29  ;;  %v212_v11 = vsel %vm58_vm0, %v211_v6, %v37_v7  ;;  %v215_v12 = vrot.slane %v40_v8, 5  ;;  %v42_v13 = vld [vmem:[%s2809_s2 + $0xa] sm:$0x1]  ;;  %v46_v14 = vld [vmem:[%s2809_s2 + $0x12] sm:$0x1]  ;;  %v217_v16 = vrot.slane %v41_v10, 4 }
  0x12   :  { %2035 = vmatprep.subr.bf16.mxu0 %v2216_v0  ;;  %v2346_v57 = vsel %vm76_vm6, %v75_v55, %v74_v56  ;;  %v214_v15 = vsel %vm61_vm1, %v213_v9, %v212_v11  ;;  %v43_v17 = vld [vmem:[%s2809_s2 + $0xc] sm:$0x1]  ;;  %v47_v18 = vld [vmem:[%s2809_s2 + $0x14] sm:$0x1]  ;;  %v219_v20 = vrot.slane %v42_v13, 3  ;;  %v225_v21 = vrot.slane %v46_v14, 7 }
  0x13   :  { %v216_v19 = vsel %vm64_vm2, %v215_v12, %v214_v15  ;;  %v44_v22 = vld [vmem:[%s2809_s2 + $0xe] sm:$0x1]  ;;  %v45_v23 = vld [vmem:[%s2809_s2 + $0x10] sm:$0x1]  ;;  %v48_v24 = vld [vmem:[%s2809_s2 + $0x16] sm:$0x1] }
  0x14   :  { %v218_v25 = vsel %vm67_vm3, %v217_v16, %v216_v19  ;;  %v221_v27 = vrot.slane %v43_v17, 2  ;;  %v223_v28 = vrot.slane %v44_v22, 1  ;;  %v226_v29 = vsel %vm58_vm0, %v225_v21, %v45_v23  ;;  %s2227_s11 = smov [#allocation2]  }
  0x15   :  { %308 = vrot.lane.b32.xlu1 %v2346_v57, %s2219_s29  ;;  %v220_v26 = vsel %vm70_vm4, %v219_v20, %v218_v25  ;;  %v227_v30 = vrot.slane %v47_v18, 6  ;;  %v229_v31 = vrot.slane %v48_v24, 5  ;;  %vm2220_vm12 = vmmov 1   ;;  %s1810_s12 = sshll.u32 %s2227_s11, 4  ;;  %s1811_s12 = int_to_ptr.vmem [resolvable:$true] %s1810_s12 }
  0x16   :  { %v222_v32 = vsel %vm73_vm5, %v221_v27, %v220_v26  ;;  %vm2406_vm13 = vmpackc.low %vm235_vm11, %vm2220_vm12  ;;  %vm843_vm14 = vcmask 130048   ;;  %vm845_vm15 = vcmask 195584   ;;  %s2192_s13 = scalar_lea.vmem %s1811_s12, 256  ;;  %p2197_p1 = scmp.lt.s32.totalorder %s1811_s12, %s1811_s12 }
  0x17   :  { %v224_v33 = vsel %vm76_vm6, %v223_v28, %v222_v32  ;;  %v228_v34 = vsel %vm61_vm1, %v227_v30, %v226_v29  ;;  %p2193_p0 = scmp.ne.s32.totalorder %s1811_s12, %s2192_s13  ;;  %p2198_p2 = scmp.lt.s32.totalorder %s2192_s13, %s2192_s13 }
  0x18   :  { %1916 = vmatmul.mubr.msk.f32.vlgmr.msra.gmra.mrb[0].mxu0 %vm110_vm7, %v2346_v57  ;;  %v230_v35 = vsel %vm64_vm2, %v229_v31, %v228_v34 }
  0x19   :  { %1936 = vmatprep.mubr.msk.f32.mxu0 %vm2217_vm8, %v2218_v36  ;;  %v2028_v38 = vpack.c.bf16 %v230_v35, %v224_v33  ;;  %v2428_v53 = vpack.i.bf16 %v230_v35, %v224_v33  ;;  %p2199_p3 = por %p2198_p2, %p2197_p1 }
  0x1b   :  { %2030 = vmatpush3.bf16.msk.msra.mxu1 %vm2406_vm13, %v2028_v38  ;;  %p2200_p4 = pnand %p2199_p3, %p2193_p0 }
  0x1c   :  { %2031 = vmatprep.subr.bf16.mxu1 %v2216_v0 }
  0x83   :  { %v2102_v40 = vpop.permute.xlu1 %2101 }
  0x84   :  { %v2104_v41 = vunpack.i.h.bf16 %v2102_v40  ;;  %v2103_v42 = vunpack.i.l.bf16 %v2102_v40 }
  0x86   :  { %v2032_v44 = vpack.c.bf16 %v2104_v41, %v2103_v42 }
  0x87   :  { %v309_v46 = vpop.permute.xlu1 %308 }
  0xeb   :  { %v183_v58 = vpop.f32.mrb[0].mxu0 }
  0xec   :  { %v1917_v59 = vpop.f32.mrb[1].mxu0  ;;  %v188_v60 = vsel %vm187_vm10, %v183_v58, -inf }
  0xed   :  { %189 = vmax.xlane.f32.xlu0 %v188_v60 }
 0x17a   :  { %v190_v62 = vpop.xlane.xlu0 %189 }
 0x17b   :  { %v191_v63 = vsub.f32 %v183_v58, %v190_v62 }
 0x17d   :  { %v192_v1 = vmul.f32 1.442695, %v191_v63 }
 0x17f   :  { %2160 = vpow2.f32 %v192_v1 }
 0x189   :  { %v2161_v2 = vpop.eup %2160 }
 0x18a   :  { %v194_v3 = vsel %vm187_vm10, %v2161_v2, 0.0 }
 0x18b   :  { %195 = vadd.xlane.f32.xlu0 %v194_v3 }
 0x218   :  { %v196_v39 = vpop.xlane.xlu0 %195 }
 0x219   :  { %2162 = vrcp.f32 %v196_v39 }
 0x223   :  { %v2163_v43 = vpop.eup %2162 }
 0x224   :  { %v2413_v45 = vmul.f32 %v2163_v43, %v2161_v2 }
 0x226   :  { %1923 = vmatmul.mubr.msk.f32.vlgmr.msra.gmra.mrb[0].mxu1 %vm187_vm10, %v2413_v45 }
 0x227   :  { %2034 = vmatpush3.bf16.xpose.msk.msra.mxu1 %vm2331_vm9, %v2032_v44  ;;  %1929 = vmatprep.mubr.msk.f32.mxu1 %vm2217_vm8, %v2218_v36 }
 0x228   :  { %2043 = vmatprep.subr.bf16.mxu1 %v2216_v0 }
 0x22e   :  { %1930 = vmatmul.mubr.msk.f32.vlgmr.msra.gmra.mrb[2].mxu1 %vm110_vm7, %v309_v46 }
 0x22f   :  { %1950 = vmatprep.mubr.msk.f32.mxu1 %vm2217_vm8, %v2218_v36 }
 0x2f9   :  { %v2425_v47 = vpop.f32.mrb[0].mxu1 }
 0x2fa   :  { %v1924_v49 = vpop.f32.mrb[1].mxu1 }
 0x301   :  { %v386_v50 = vpop.f32.mrb[2].mxu1 }
 0x302   :  { %v1931_v51 = vpop.f32.mrb[3].mxu1  ;;  %v390_v52 = vsel %vm187_vm10, %v386_v50, -inf }
 0x303   :  { %391 = vmax.xlane.f32.xlu0 %v390_v52  ;;  %v926_v51 = vld [vmem:[%s2808_s1 + $0x5] sm:$0x1] }
 0x319   :  { %2106 = vrot.lane.b32.xlu0 %v2428_v53, %s2219_s29 }
 0x31d   :  { %2111 = vrot.lane.b32.xlu0 %v2353_v61, %s2221_s28 }
 0x321   :  { %482 = vrot.lane.b32.xlu0 %v2346_v57, %s2221_s28 }
 0x390   :  { %v392_v54 = vpop.xlane.xlu0 %391 }
 0x391   :  { %v393_v55 = vsub.f32 %v386_v50, %v392_v54  ;;  %v925_v50 = vld [vmem:[%s2808_s1 + $0x3] sm:$0x1]  ;;  %v927_v54 = vld [vmem:[%s2808_s1 + $0x7] sm:$0x1] }
 0x392   :  { %v982_v52 = vrot.slane %v925_v50, 7 }
 0x393   :  { %v394_v56 = vmul.f32 1.442695, %v393_v55  ;;  %v984_v55 = vrot.slane %v926_v51, 6 }
 0x394   :  { %v2107_v60 = vpop.permute.xlu0 %2106 }
 0x395   :  { %2164 = vpow2.f32 %v394_v56  ;;  %v2109_v62 = vunpack.i.h.bf16 %v2107_v60  ;;  %v2108_v63 = vunpack.i.l.bf16 %v2107_v60 }
 0x397   :  { %v2036_v1 = vpack.c.bf16 %v2109_v62, %v2108_v63  ;;  %v917_v62 = vld [vmem:[%s2807_s0 + $0x3] sm:$0x1]  ;;  %v929_v63 = vld [vmem:[%s2808_s1 + $0xb] sm:$0x1] }
 0x398   :  { %v2112_v3 = vpop.permute.xlu0 %2111 }
 0x399   :  { %2038 = vmatpush3.bf16.msk.msra.mxu0 %vm2406_vm13, %v2036_v1  ;;  %v2114_v4 = vunpack.i.h.bf16 %v2112_v3  ;;  %v2113_v5 = vunpack.i.l.bf16 %v2112_v3  ;;  %v933_v1 = vld [vmem:[%s2808_s1 + $0x13] sm:$0x1] }
 0x39a   :  { %2039 = vmatprep.subr.bf16.mxu0 %v2216_v0 }
 0x39b   :  { %v2040_v7 = vpack.c.bf16 %v2114_v4, %v2113_v5  ;;  %v930_v4 = vld [vmem:[%s2808_s1 + $0xd] sm:$0x1]  ;;  %v918_v5 = vld [vmem:[%s2807_s0 + $0x5] sm:$0x1] }
 0x39c   :  { %v483_v9 = vpop.permute.xlu0 %482 }
 0x39f   :  { %v2165_v58 = vpop.eup %2164 }
 0x3a0   :  { %v396_v59 = vsel %vm187_vm10, %v2165_v58, 0.0 }
 0x3a1   :  { %397 = vadd.xlane.f32.xlu1 %v396_v59  ;;  %v986_v59 = vrot.slane %v927_v54, 5 }
 0x3b2   :  { %2116 = vrot.lane.b32.xlu1 %v2428_v53, %s2221_s28 }
 0x3b6   :  { %2121 = vrot.lane.b32.xlu1 %v2353_v61, %s2222_s30 }
 0x42e   :  { %v398_v2 = vpop.xlane.xlu1 %397 }
 0x42f   :  { %2166 = vrcp.f32 %v398_v2 }
 0x432   :  { %v2117_v15 = vpop.permute.xlu1 %2116 }
 0x433   :  { %v2119_v16 = vunpack.i.h.bf16 %v2117_v15  ;;  %v2118_v17 = vunpack.i.l.bf16 %v2117_v15  ;;  %v919_v15 = vld [vmem:[%s2807_s0 + $0x7] sm:$0x1] }
 0x435   :  { %v2044_v18 = vpack.c.bf16 %v2119_v16, %v2118_v17  ;;  %v958_v16 = vrot.slane %v918_v5, 6  ;;  %v931_v17 = vld [vmem:[%s2808_s1 + $0xf] sm:$0x1]  ;;  %v936_v5 = vld [vmem:[%s2809_s2 + $0x1] sm:$0x1] }
 0x436   :  { %v2122_v23 = vpop.permute.xlu1 %2121 }
 0x437   :  { %2046 = vmatpush3.bf16.msk.msra.mxu1 %vm2406_vm13, %v2044_v18  ;;  %v2124_v25 = vunpack.i.h.bf16 %v2122_v23  ;;  %v2123_v26 = vunpack.i.l.bf16 %v2122_v23  ;;  %v935_v18 = vld [vmem:[%s2808_s1 + $0x17] sm:$0x1]  ;;  %v920_v23 = vld [vmem:[%s2807_s0 + $0x9] sm:$0x1] }
 0x438   :  { %2047 = vmatprep.subr.bf16.mxu1 %v2216_v0 }
 0x439   :  { %v2167_v6 = vpop.eup %2166  ;;  %v2048_v30 = vpack.c.bf16 %v2124_v25, %v2123_v26  ;;  %v994_v25 = vrot.slane %v931_v17, 1  ;;  %v1000_v26 = vrot.slane %v935_v18, 5  ;;  %v946_v17 = vld [vmem:[%s2809_s2 + $0x15] sm:$0x1] }
 0x43a   :  { %v400_v8 = vmul.f32 %v2167_v6, %v2165_v58  ;;  %v928_v58 = vld [vmem:[%s2808_s1 + $0x9] sm:$0x1]  ;;  %v956_v6 = vrot.slane %v917_v62, 7 }
 0x43b   :  { %v988_v2 = vrot.slane %v928_v58, 4 }
 0x43c   :  { %1937 = vmatmul.mubr.msk.f32.vlgmr.msra.gmra.mrb[2].mxu0 %vm187_vm10, %v400_v8  ;;  %v401_v28 = vadd.f32 %v400_v8, %v2413_v45  ;;  %v990_v8 = vrot.slane %v929_v63, 3 }
 0x43d   :  { %2042 = vmatpush3.bf16.xpose.msk.msra.mxu0 %vm2331_vm9, %v2040_v7  ;;  %1943 = vmatprep.mubr.msk.f32.mxu0 %vm2217_vm8, %v2218_v36  ;;  %v934_v7 = vld [vmem:[%s2808_s1 + $0x15] sm:$0x1] }
 0x43e   :  { %2051 = vmatprep.subr.bf16.mxu0 %v2216_v0 }
 0x444   :  { %1944 = vmatmul.mubr.msk.f32.vlgmr.msra.gmra.mrb[4].mxu0 %vm110_vm7, %v483_v9  ;;  %v996_v9 = vrot.slane %v933_v1, 7 }
 0x445   :  { %1964 = vmatprep.mubr.msk.f32.mxu0 %vm2217_vm8, %v2218_v36 }
 0x50f   :  { %v2453_v10 = vpop.f32.mrb[2].mxu0 }
 0x510   :  { %v1938_v11 = vpop.f32.mrb[3].mxu0 }
 0x511   :  { %v916_v11 = vld [vmem:[%s2807_s0 + $0x1] sm:$0x1] }
 0x517   :  { %v560_v12 = vpop.f32.mrb[4].mxu0 }
 0x518   :  { %v1945_v13 = vpop.f32.mrb[5].mxu0  ;;  %v564_v14 = vsel %vm187_vm10, %v560_v12, -inf }
 0x519   :  { %565 = vmax.xlane.f32.xlu0 %v564_v14 }
 0x5a6   :  { %v566_v19 = vpop.xlane.xlu0 %565 }
 0x5a7   :  { %v567_v20 = vsub.f32 %v560_v12, %v566_v19  ;;  %v932_v12 = vld [vmem:[%s2808_s1 + $0x11] sm:$0x1]  ;;  %v992_v19 = vrot.slane %v930_v4, 2 }
 0x5a9   :  { %v568_v61 = vmul.f32 1.442695, %v567_v20  ;;  %v998_v20 = vrot.slane %v934_v7, 6 }
 0x5ab   :  { %2168 = vpow2.f32 %v568_v61  ;;  %v957_v61 = vsel %vm58_vm0, %v956_v6, %v916_v11  ;;  %v939_v6 = vld [vmem:[%s2809_s2 + $0x7] sm:$0x1] }
 0x5ac   :  { %v1105_v11 = vrot.slane %v939_v6, 5 }
 0x5b5   :  { %v2169_v21 = vpop.eup %2168 }
 0x5b6   :  { %v570_v22 = vsel %vm187_vm10, %v2169_v21, 0.0 }
 0x5b7   :  { %571 = vadd.xlane.f32.xlu1 %v570_v22  ;;  %v997_v22 = vsel %vm58_vm0, %v996_v9, %v932_v12  ;;  %v941_v12 = vld [vmem:[%s2809_s2 + $0xb] sm:$0x1] }
 0x5c8   :  { %656 = vrot.lane.b32.xlu1 %v2346_v57, %s2222_s30 }
 0x644   :  { %v572_v24 = vpop.xlane.xlu1 %571 }
 0x645   :  { %2170 = vrcp.f32 %v572_v24  ;;  %v960_v24 = vrot.slane %v919_v15, 5 }
 0x648   :  { %v657_v57 = vpop.permute.xlu1 %656 }
 0x64f   :  { %v2171_v27 = vpop.eup %2170 }
 0x650   :  { %v574_v29 = vmul.f32 %v2171_v27, %v2169_v21  ;;  %v959_v27 = vsel %vm61_vm1, %v958_v16, %v957_v61  ;;  %v942_v16 = vld [vmem:[%s2809_s2 + $0xd] sm:$0x1] }
 0x652   :  { %1951 = vmatmul.mubr.msk.f32.vlgmr.msra.gmra.mrb[4].mxu1 %vm187_vm10, %v574_v29  ;;  %v2464_v31 = vadd.f32 %v574_v29, %v401_v28  ;;  %v999_v29 = vsel %vm61_vm1, %v998_v20, %v997_v22  ;;  %v944_v22 = vld [vmem:[%s2809_s2 + $0x11] sm:$0x1] }
 0x653   :  { %2050 = vmatpush3.bf16.xpose.msk.msra.mxu1 %vm2331_vm9, %v2048_v30  ;;  %1957 = vmatprep.mubr.msk.f32.mxu1 %vm2217_vm8, %v2218_v36  ;;  %v921_v30 = vld [vmem:[%s2807_s0 + $0xb] sm:$0x1] }
 0x654   :  { %2059 = vmatprep.subr.bf16.mxu1 %v2216_v0 }
 0x65a   :  { %1958 = vmatmul.mubr.msk.f32.vlgmr.msra.gmra.mrb[6].mxu1 %vm110_vm7, %v657_v57  ;;  %v962_v57 = vrot.slane %v920_v23, 4  ;;  %v947_v23 = vld [vmem:[%s2809_s2 + $0x17] sm:$0x1] }
 0x65b   :  { %1978 = vmatprep.mubr.msk.f32.mxu1 %vm2217_vm8, %v2218_v36 }
 0x725   :  { %v2474_v32 = vpop.f32.mrb[4].mxu1 }
 0x726   :  { %v1952_v33 = vpop.f32.mrb[5].mxu1 }
 0x727   :  { %v961_v33 = vsel %vm64_vm2, %v960_v24, %v959_v27 }
 0x72d   :  { %v734_v34 = vpop.f32.mrb[6].mxu1 }
 0x72e   :  { %v1959_v35 = vpop.f32.mrb[7].mxu1  ;;  %v738_v38 = vsel %vm187_vm10, %v734_v34, -inf }
 0x72f   :  { %739 = vmax.xlane.f32.xlu0 %v738_v38  ;;  %v1001_v35 = vsel %vm64_vm2, %v1000_v26, %v999_v29  ;;  %v922_v38 = vld [vmem:[%s2807_s0 + $0xd] sm:$0x1]  ;;  %v1111_v26 = vrot.slane %v942_v16, 2  ;;  %v1117_v29 = vrot.slane %v946_v17, 6 }
 0x745   :  { %2126 = vrot.lane.b32.xlu0 %v2428_v53, %s2222_s30  ;;  %v924_v53 = vld [vmem:[%s2808_s1 + $0x1] sm:$0x1] }
 0x746   :  { %v983_v56 = vsel %vm58_vm0, %v982_v52, %v924_v53 }
 0x747   :  { %v985_v60 = vsel %vm61_vm1, %v984_v55, %v983_v56 }
 0x748   :  { %v987_v3 = vsel %vm64_vm2, %v986_v59, %v985_v60 }
 0x749   :  { %v989_v13 = vsel %vm67_vm3, %v988_v2, %v987_v3  ;;  %v937_v2 = vld [vmem:[%s2809_s2 + $0x3] sm:$0x1]  ;;  %v938_v3 = vld [vmem:[%s2809_s2 + $0x5] sm:$0x1] }
 0x74a   :  { %v991_v21 = vsel %vm70_vm4, %v990_v8, %v989_v13  ;;  %v1101_v4 = vrot.slane %v937_v2, 7  ;;  %v1103_v7 = vrot.slane %v938_v3, 6  ;;  %v940_v8 = vld [vmem:[%s2809_s2 + $0x9] sm:$0x1]  ;;  %v945_v13 = vld [vmem:[%s2809_s2 + $0x13] sm:$0x1] }
 0x74b   :  { %v993_v28 = vsel %vm73_vm5, %v992_v19, %v991_v21  ;;  %v1107_v15 = vrot.slane %v940_v8, 4  ;;  %v1109_v19 = vrot.slane %v941_v12, 3  ;;  %v1115_v20 = vrot.slane %v945_v13, 7  ;;  %v943_v21 = vld [vmem:[%s2809_s2 + $0xf] sm:$0x1]  ;;  %s2223_s2 = smov 8  }
 0x74c   :  { %v1102_v9 = vsel %vm58_vm0, %v1101_v4, %v936_v5  ;;  %v1113_v27 = vrot.slane %v943_v21, 1 }
 0x7bc   :  { %v740_v39 = vpop.xlane.xlu0 %739 }
 0x7bd   :  { %v741_v40 = vsub.f32 %v734_v34, %v740_v39  ;;  %v995_v34 = vsel %vm76_vm6, %v994_v25, %v993_v28  ;;  %v964_v39 = vrot.slane %v921_v30, 3  ;;  %v1116_v28 = vsel %vm58_vm0, %v1115_v20, %v944_v22 }
 0x7be   :  { %v2610_v61 = vpack.i.bf16 %v1001_v35, %v995_v34  ;;  %v1119_v30 = vrot.slane %v947_v23, 5  ;;  %vm905_vm0 = vcmask 253952  }
 0x7bf   :  { %v742_v41 = vmul.f32 1.442695, %v741_v40  ;;  %v963_v40 = vsel %vm67_vm3, %v962_v57, %v961_v33 }
 0x7c0   :  { %v2127_v44 = vpop.permute.xlu0 %2126 }
 0x7c1   :  { %2172 = vpow2.f32 %v742_v41  ;;  %v2129_v45 = vunpack.i.h.bf16 %v2127_v44  ;;  %v2128_v46 = vunpack.i.l.bf16 %v2127_v44 }
 0x7c3   :  { %v2052_v49 = vpack.c.bf16 %v2129_v45, %v2128_v46  ;;  %v923_v45 = vld [vmem:[%s2807_s0 + $0xf] sm:$0x1]  ;;  %v966_v46 = vrot.slane %v922_v38, 2 }
 0x7c4   :  { %v968_v51 = vrot.slane %v923_v45, 1 }
 0x7c5   :  { %2054 = vmatpush3.bf16.msk.msra.mxu0 %vm2406_vm13, %v2052_v49  ;;  %v965_v49 = vsel %vm70_vm4, %v964_v39, %v963_v40 }
 0x7c6   :  { %2055 = vmatprep.subr.bf16.mxu0 %v2216_v0 }
 0x7cb   :  { %v2173_v42 = vpop.eup %2172 }
 0x7cc   :  { %v744_v43 = vsel %vm187_vm10, %v2173_v42, 0.0 }
 0x7cd   :  { %745 = vadd.xlane.f32.xlu1 %v744_v43  ;;  %v2056_v43 = vpack.c.bf16 %v1001_v35, %v995_v34  ;;  %v1118_v34 = vsel %vm61_vm1, %v1117_v29, %v1116_v28 }
 0x7ce   :  { %v1120_v35 = vsel %vm64_vm2, %v1119_v30, %v1118_v34 }
 0x85a   :  { %v746_v14 = vpop.xlane.xlu1 %745 }
 0x85b   :  { %2174 = vrcp.f32 %v746_v14  ;;  %v1104_v14 = vsel %vm61_vm1, %v1103_v7, %v1102_v9 }
 0x85c   :  { %v1106_v18 = vsel %vm64_vm2, %v1105_v11, %v1104_v14 }
 0x85d   :  { %v1108_v24 = vsel %vm67_vm3, %v1107_v15, %v1106_v18 }
 0x85e   :  { %v1110_v25 = vsel %vm70_vm4, %v1109_v19, %v1108_v24 }
 0x85f   :  { %v1112_v57 = vsel %vm73_vm5, %v1111_v26, %v1110_v25 }
 0x860   :  { %v1114_v33 = vsel %vm76_vm6, %v1113_v27, %v1112_v57 }
 0x861   :  { %v2060_v38 = vpack.c.bf16 %v1120_v35, %v1114_v33 }
 0x863   :  { %2062 = vmatpush3.bf16.msk.msra.mxu1 %vm2406_vm13, %v2060_v38 }
 0x864   :  { %2063 = vmatprep.subr.bf16.mxu1 %v2216_v0 }
 0x865   :  { %v2175_v41 = vpop.eup %2174 }
 0x866   :  { %v748_v44 = vmul.f32 %v2175_v41, %v2173_v42  ;;  %v967_v42 = vsel %vm73_vm5, %v966_v46, %v965_v49 }
 0x867   :  { %v2568_v53 = vsel %vm76_vm6, %v968_v51, %v967_v42 }
 0x868   :  { %1965 = vmatmul.mubr.msk.f32.vlgmr.msra.gmra.mrb[6].mxu0 %vm187_vm10, %v748_v44  ;;  %v749_v50 = vadd.f32 %v748_v44, %v2464_v31 }
 0x869   :  { %2058 = vmatpush3.bf16.xpose.msk.msra.mxu0 %vm2331_vm9, %v2056_v43  ;;  %1971 = vmatprep.mubr.msk.f32.mxu0 %vm2217_vm8, %v2218_v36 }
 0x86a   :  { %2067 = vmatprep.subr.bf16.mxu0 %v2216_v0  ;;  %v914_v52 = vmul.f32 0.25, %v749_v50 }
 0x86c   :  { %915 = vst.msk [vmem:[#allocation2] sm:$0xff] %vm187_vm10, %v914_v52 }
 0x870   :  { %1972 = vmatmul.mubr.msk.f32.vlgmr.msra.gmra.mrb[8].mxu0 %vm110_vm7, %v2568_v53 }
 0x871   :  { %1992 = vmatprep.mubr.msk.f32.mxu0 %vm2217_vm8, %v2218_v36 }
 0x93b   :  { %v2574_v31 = vpop.f32.mrb[6].mxu0 }
 0x93c   :  { %v1966_v54 = vpop.f32.mrb[7].mxu0 }
 0x943   :  { %v1074_v55 = vpop.f32.mrb[8].mxu0 }
 0x944   :  { %v1973_v56 = vpop.f32.mrb[9].mxu0  ;;  %v1078_v58 = vsel %vm187_vm10, %v1074_v55, -inf }
 0x945   :  { %1079 = vmax.xlane.f32.xlu0 %v1078_v58 }
 0x95b   :  { %1197 = vrot.lane.b32.xlu0 %v2568_v53, %s2219_s29 }
 0x9d2   :  { %v1080_v59 = vpop.xlane.xlu0 %1079 }
 0x9d3   :  { %v1081_v60 = vsub.f32 %v1074_v55, %v1080_v59  ;;  %v2648_v55 = vpack.i.bf16 %v1120_v35, %v1114_v33 }
 0x9d5   :  { %v1082_v62 = vmul.f32 1.442695, %v1081_v60 }
 0x9d6   :  { %v1198_v49 = vpop.permute.xlu0 %1197 }
 0x9d7   :  { %2176 = vpow2.f32 %v1082_v62 }
 0x9e1   :  { %v2177_v63 = vpop.eup %2176 }
 0x9e2   :  { %v1084_v1 = vsel %vm187_vm10, %v2177_v63, 0.0 }
 0x9e3   :  { %1085 = vadd.xlane.f32.xlu1 %v1084_v1 }
 0x9f4   :  { %2131 = vrot.lane.b32.xlu1 %v2610_v61, %s2219_s29 }
 0xa70   :  { %v1086_v39 = vpop.xlane.xlu1 %1085 }
 0xa71   :  { %2178 = vrcp.f32 %v1086_v39 }
 0xa74   :  { %v2132_v40 = vpop.permute.xlu1 %2131 }
 0xa75   :  { %v2134_v41 = vunpack.i.h.bf16 %v2132_v40  ;;  %v2133_v43 = vunpack.i.l.bf16 %v2132_v40 }
 0xa77   :  { %v2064_v45 = vpack.c.bf16 %v2134_v41, %v2133_v43 }
 0xa7b   :  { %v2179_v44 = vpop.eup %2178 }
 0xa7c   :  { %v2633_v46 = vmul.f32 %v2179_v44, %v2177_v63 }
 0xa7e   :  { %1979 = vmatmul.mubr.msk.f32.vlgmr.msra.gmra.mrb[8].mxu1 %vm187_vm10, %v2633_v46 }
 0xa7f   :  { %2066 = vmatpush3.bf16.xpose.msk.msra.mxu1 %vm2331_vm9, %v2064_v45  ;;  %1985 = vmatprep.mubr.msk.f32.mxu1 %vm2217_vm8, %v2218_v36 }
 0xa80   :  { %2075 = vmatprep.subr.bf16.mxu1 %v2216_v0 }
 0xa86   :  { %1986 = vmatmul.mubr.msk.f32.vlgmr.msra.gmra.mrb[10].mxu1 %vm110_vm7, %v1198_v49 }
 0xa87   :  { %2006 = vmatprep.mubr.msk.f32.mxu1 %vm2217_vm8, %v2218_v36 }
 0xb51   :  { %v2645_v50 = vpop.f32.mrb[8].mxu1 }
 0xb52   :  { %v1980_v51 = vpop.f32.mrb[9].mxu1 }
 0xb59   :  { %v1275_v42 = vpop.f32.mrb[10].mxu1 }
 0xb5a   :  { %v1987_v52 = vpop.f32.mrb[11].mxu1  ;;  %v1279_v54 = vsel %vm187_vm10, %v1275_v42, -inf }
 0xb5b   :  { %1280 = vmax.xlane.f32.xlu1 %v1279_v54 }
 0xb6c   :  { %2136 = vrot.lane.b32.xlu1 %v2648_v55, %s2219_s29  ;;  %s2224_s29 = smov 16  }
 0xb70   :  { %1371 = vrot.lane.b32.xlu1 %v2568_v53, %s2221_s28 }
 0xbe8   :  { %v1281_v56 = vpop.xlane.xlu1 %1280 }
 0xbe9   :  { %v1282_v58 = vsub.f32 %v1275_v42, %v1281_v56  ;;  %v2226_v56 = vmov 1966171168  }
 0xbeb   :  { %v1283_v59 = vmul.f32 1.442695, %v1282_v58  ;;  %v850_v58 = vunpack.c.l.s4 %v2226_v56 }
 0xbec   :  { %v2137_v63 = vpop.permute.xlu1 %2136 }
 0xbed   :  { %2180 = vpow2.f32 %v1283_v59  ;;  %v2139_v1 = vunpack.i.h.bf16 %v2137_v63  ;;  %v2138_v2 = vunpack.i.l.bf16 %v2137_v63  ;;  %v852_v59 = vlaneseq }
 0xbef   :  { %v2068_v3 = vpack.c.bf16 %v2139_v1, %v2138_v2  ;;  %v853_v37 = vshrl.u32 %v852_v59, 7 }
 0xbf0   :  { %v1372_v12 = vpop.permute.xlu1 %1371 }
 0xbf1   :  { %2070 = vmatpush3.bf16.msk.msra.mxu0 %vm2406_vm13, %v2068_v3 }
 0xbf2   :  { %2071 = vmatprep.subr.bf16.mxu0 %v2216_v0 }
 0xbf7   :  { %v2181_v60 = vpop.eup %2180 }
 0xbf8   :  { %v1285_v62 = vsel %vm187_vm10, %v2181_v60, 0.0 }
 0xbf9   :  { %1286 = vadd.xlane.f32.xlu0 %v1285_v62 }
 0xc0f   :  { %2141 = vrot.lane.b32.xlu0 %v2610_v61, %s2221_s28 }
 0xc86   :  { %v1287_v4 = vpop.xlane.xlu0 %1286 }
 0xc87   :  { %2182 = vrcp.f32 %v1287_v4 }
 0xc8a   :  { %v2142_v5 = vpop.permute.xlu0 %2141 }
 0xc8b   :  { %v2144_v6 = vunpack.i.h.bf16 %v2142_v5  ;;  %v2143_v7 = vunpack.i.l.bf16 %v2142_v5 }
 0xc8d   :  { %v2072_v9 = vpack.c.bf16 %v2144_v6, %v2143_v7 }
 0xc91   :  { %v2183_v8 = vpop.eup %2182 }
 0xc92   :  { %v1289_v11 = vmul.f32 %v2183_v8, %v2181_v60  ;;  %v851_v60 = vunpack.c.0.s8 %v850_v58 }
 0xc94   :  { %1993 = vmatmul.mubr.msk.f32.vlgmr.msra.gmra.mrb[10].mxu0 %vm187_vm10, %v1289_v11  ;;  %v1290_v33 = vadd.f32 %v1289_v11, %v2633_v46  ;;  %v2706_v63 = vsub.s32 %v851_v60, %v853_v37 }
 0xc95   :  { %2074 = vmatpush3.bf16.xpose.msk.msra.mxu0 %vm2331_vm9, %v2072_v9  ;;  %1999 = vmatprep.mubr.msk.f32.mxu0 %vm2217_vm8, %v2218_v36 }
 0xc96   :  { %2083 = vmatprep.subr.bf16.mxu0 %v2216_v0 }
 0xc9c   :  { %2000 = vmatmul.mubr.msk.f32.vlgmr.msra.gmra.mrb[12].mxu0 %vm110_vm7, %v1372_v12 }
 0xc9d   :  { %2020 = vmatprep.mubr.msk.f32.mxu0 %vm2217_vm8, %v2218_v36 }
 0xd67   :  { %v1367_v13 = vpop.f32.mrb[10].mxu0 }
 0xd68   :  { %v1994_v14 = vpop.f32.mrb[11].mxu0 }
 0xd6f   :  { %v1449_v15 = vpop.f32.mrb[12].mxu0 }
 0xd70   :  { %v2001_v16 = vpop.f32.mrb[13].mxu0  ;;  %v1453_v17 = vsel %vm187_vm10, %v1449_v15, -inf }
 0xd71   :  { %1454 = vmax.xlane.f32.xlu1 %v1453_v17 }
 0xd82   :  { %2146 = vrot.lane.b32.xlu1 %v2648_v55, %s2221_s28  ;;  %s2225_s28 = smov 24  }
 0xd86   :  { %1545 = vrot.lane.b32.xlu1 %v2568_v53, %s2222_s30 }
 0xdfe   :  { %v1455_v18 = vpop.xlane.xlu1 %1454 }
 0xdff   :  { %v1456_v19 = vsub.f32 %v1449_v15, %v1455_v18 }
 0xe01   :  { %v1457_v20 = vmul.f32 1.442695, %v1456_v19 }
 0xe02   :  { %v2147_v23 = vpop.permute.xlu1 %2146 }
 0xe03   :  { %2184 = vpow2.f32 %v1457_v20  ;;  %v2149_v24 = vunpack.i.h.bf16 %v2147_v23  ;;  %v2148_v25 = vunpack.i.l.bf16 %v2147_v23 }
 0xe05   :  { %v2076_v26 = vpack.c.bf16 %v2149_v24, %v2148_v25 }
 0xe07   :  { %2078 = vmatpush3.bf16.msk.msra.mxu1 %vm2406_vm13, %v2076_v26 }
 0xe08   :  { %2079 = vmatprep.subr.bf16.mxu1 %v2216_v0  ;;  %v1546_v0 = vpop.permute.xlu1 %1545 }
 0xe0d   :  { %v2185_v21 = vpop.eup %2184 }
 0xe0e   :  { %v1459_v22 = vsel %vm187_vm10, %v2185_v21, 0.0 }
 0xe0f   :  { %1460 = vadd.xlane.f32.xlu0 %v1459_v22 }
 0xe25   :  { %2151 = vrot.lane.b32.xlu0 %v2610_v61, %s2222_s30 }
 0xe9c   :  { %v1461_v53 = vpop.xlane.xlu0 %1460 }
 0xe9d   :  { %2186 = vrcp.f32 %v1461_v53 }
 0xea0   :  { %v2152_v27 = vpop.permute.xlu0 %2151 }
 0xea1   :  { %v2154_v28 = vunpack.i.h.bf16 %v2152_v27  ;;  %v2153_v29 = vunpack.i.l.bf16 %v2152_v27 }
 0xea3   :  { %v2080_v57 = vpack.c.bf16 %v2154_v28, %v2153_v29 }
 0xea7   :  { %v2187_v30 = vpop.eup %2186 }
 0xea8   :  { %v1463_v34 = vmul.f32 %v2187_v30, %v2185_v21 }
 0xeaa   :  { %2007 = vmatmul.mubr.msk.f32.vlgmr.msra.gmra.mrb[12].mxu1 %vm187_vm10, %v1463_v34  ;;  %v2682_v35 = vadd.f32 %v1463_v34, %v1290_v33 }
 0xeab   :  { %2082 = vmatpush3.bf16.xpose.msk.msra.mxu1 %vm2331_vm9, %v2080_v57  ;;  %2013 = vmatprep.mubr.msk.f32.mxu1 %vm2217_vm8, %v2218_v36 }
 0xeb2   :  { %2014 = vmatmul.mubr.msk.f32.vlgmr.msra.gmra.mrb[14].mxu1 %vm110_vm7, %v1546_v0 }
 0xf7d   :  { %v1541_v61 = vpop.f32.mrb[12].mxu1 }
 0xf7e   :  { %v2008_v38 = vpop.f32.mrb[13].mxu1 }
 0xf85   :  { %v1623_v39 = vpop.f32.mrb[14].mxu1 }
 0xf86   :  { %v2015_v40 = vpop.f32.mrb[15].mxu1  ;;  %v1627_v41 = vsel %vm187_vm10, %v1623_v39, -inf }
 0xf87   :  { %1628 = vmax.xlane.f32.xlu1 %v1627_v41 }
 0xf98   :  { %2156 = vrot.lane.b32.xlu1 %v2648_v55, %s2222_s30 }
 0xf9c   :  { %1720 = vrot.lane.b32.xlu1 %v1367_v13, %s2223_s2 }
 0xfa0   :  { %835 = vrot.lane.b32.xlu1 %v2474_v32, %s2224_s29 }
 0xfa4   :  { %1724 = vrot.lane.b32.xlu1 %v1541_v61, %s2224_s29 }
 0xfa8   :  { %839 = vrot.lane.b32.xlu1 %v2574_v31, %s2225_s28 }
0x1014   :  { %v1629_v36 = vpop.xlane.xlu1 %1628 }
0x1015   :  { %v1630_v48 = vsub.f32 %v1623_v39, %v1629_v36 }
0x1017   :  { %v1631_v43 = vmul.f32 1.442695, %v1630_v48 }
0x1018   :  { %v2157_v44 = vpop.permute.xlu1 %2156 }
0x1019   :  { %2188 = vpow2.f32 %v1631_v43  ;;  %v2159_v45 = vunpack.i.h.bf16 %v2157_v44  ;;  %v2158_v46 = vunpack.i.l.bf16 %v2157_v44 }
0x101b   :  { %v2084_v49 = vpack.c.bf16 %v2159_v45, %v2158_v46 }
0x101c   :  { %v1721_v51 = vpop.permute.xlu1 %1720 }
0x101d   :  { %v1731_v42 = vsel %vm110_vm7, %v2645_v50, %v1721_v51  ;;  %2086 = vmatpush3.bf16.msk.msra.mxu0 %vm2406_vm13, %v2084_v49 }
0x1020   :  { %v836_v32 = vpop.permute.xlu1 %835 }
0x1023   :  { %v2189_v52 = vpop.eup %2188 }
0x1024   :  { %v1725_v54 = vpop.permute.xlu1 %1724  ;;  %v1633_v31 = vsel %vm187_vm10, %v2189_v52, 0.0 }
0x1025   :  { %v2702_v55 = vsel %vm843_vm14, %v1731_v42, %v1725_v54  ;;  %1634 = vadd.xlane.f32.xlu0 %v1633_v31 }
0x1028   :  { %v840_v2 = vpop.permute.xlu1 %839 }
0x103b   :  { %831 = vrot.lane.b32.xlu0 %v2453_v10, %s2223_s2 }
0x10b2   :  { %v1635_v50 = vpop.xlane.xlu0 %1634 }
0x10b3   :  { %2190 = vrcp.f32 %v1635_v50 }
0x10b6   :  { %v832_v62 = vpop.permute.xlu0 %831 }
0x10b7   :  { %v842_v1 = vsel %vm110_vm7, %v2425_v47, %v832_v62 }
0x10b8   :  { %v844_v3 = vsel %vm843_vm14, %v842_v1, %v836_v32 }
0x10b9   :  { %v846_v4 = vsel %vm845_vm15, %v844_v3, %v840_v2 }
0x10ba   :  { %v848_v10 = vcombine.high %v846_v4, %v846_v4  ;;  %v855_v5 = vrot.slane %v846_v4, %v2706_v63 }
0x10bc   :  { %v862_v6 = vrot.slane %v848_v10, %v2706_v63  ;;  %v863_v7 = vcombine.high %v855_v5, %v855_v5  ;;  %v871_v8 = vrot.slane %v855_v5, %v2706_v63 }
0x10bd   :  { %v2191_v9 = vpop.eup %2190 }
0x10be   :  { %v1637_v11 = vmul.f32 %v2191_v9, %v2189_v52  ;;  %v864_v12 = vcombine.high %v862_v6, %v862_v6  ;;  %v878_v13 = vrot.slane %v862_v6, %v2706_v63  ;;  %v885_v47 = vrot.slane %v863_v7, %v2706_v63  ;;  %906 = vst.msk [vmem:[%s2810_s3] sm:$0x1] %vm905_vm0, %v871_v8 }
0x10bf   :  { %v893_v14 = vcombine.high %v871_v8, %v871_v8 }
0x10c0   :  { %2021 = vmatmul.mubr.msk.f32.vlgmr.msra.gmra.mrb[14].mxu0 %vm187_vm10, %v1637_v11  ;;  %v892_v15 = vrot.slane %v864_v12, %v2706_v63  ;;  %v894_v16 = vcombine.high %v878_v13, %v878_v13  ;;  %v895_v17 = vcombine.high %v885_v47, %v885_v47  ;;  %907 = vst.msk [vmem:[%s2810_s3 + $0x2] sm:$0x1] %vm905_vm0, %v885_v47  ;;  %910 = vst.msk [vmem:[%s2810_s3 + $0x8] sm:$0x1] %vm905_vm0, %v878_v13 }
0x10c1   :  { %v1638_v18 = vadd.f32 %v1637_v11, %v2682_v35  ;;  %908 = vst.msk [vmem:[%s2810_s3 + $0x4] sm:$0x1] %vm905_vm0, %v893_v14 }
0x10c2   :  { %v896_v19 = vcombine.high %v892_v15, %v892_v15  ;;  %909 = vst.msk [vmem:[%s2810_s3 + $0x6] sm:$0x1] %vm905_vm0, %v895_v17  ;;  %911 = vst.msk [vmem:[%s2810_s3 + $0xa] sm:$0x1] %vm905_vm0, %v892_v15 }
0x10c3   :  { %912 = vst.msk [vmem:[%s2810_s3 + $0xc] sm:$0x1] %vm905_vm0, %v894_v16  ;;  %v1800_v20 = vmul.f32 0.25, %v1638_v18 }
0x10c4   :  { %913 = vst.msk [vmem:[%s2810_s3 + $0xe] sm:$0x1] %vm905_vm0, %v896_v19 }
0x10c5   :  { %1802 = vst.msk [vmem:[#allocation2 + $0x8] sm:$0xff] %vm187_vm10, %v1800_v20 }
0x1193   :  { %v1715_v21 = vpop.f32.mrb[14].mxu0 }
0x1194   :  { %2203 = shalt.err (!%p2200_p4)
}
0x1195   :  { %s2204_s1 = scalar_lea.hbm %s2811_s4, 256 }
0x1196   :  { %p2205_p5 = scmp.ne.s32.totalorder %s2811_s4, %s2204_s1  ;;  %p2208_p6 = scmp.lt.u32.totalorder %s2204_s1, %s2811_s4 }
0x1198   :  { %p2210_p7 = pnand %p2208_p6, %p2205_p5 }
0x119a   :  { %2213 = shalt.err (!%p2210_p7)
}
0x119b   :  { %s2228_s29 = smov 128   ;;  %1728 = vrot.lane.b32.xlu0 %v1715_v21, %s2225_s28  ;;  %v2022_v22 = vpop.f32.mrb[15].mxu0 }
0x119c   :  { %1816 = dma.vmem_to_hbm [thread:$0]  %s1811_s12, 256, %s2811_s4, [#allocation3], %s2228_s29, %s2228_s29, %s2223_s2  }
0x120d   :  { %v1729_v23 = vpop.permute.xlu0 %1728 }
0x120e   :  { %v1733_v24 = vsel %vm845_vm15, %v2702_v55, %v1729_v23 }
0x120f   :  { %v1735_v25 = vcombine.high %v1733_v24, %v1733_v24  ;;  %v1742_v26 = vrot.slane %v1733_v24, %v2706_v63 }
0x1211   :  { %v1749_v53 = vrot.slane %v1735_v25, %v2706_v63  ;;  %v1750_v27 = vcombine.high %v1742_v26, %v1742_v26  ;;  %v1758_v28 = vrot.slane %v1742_v26, %v2706_v63 }
0x1213   :  { %v1751_v29 = vcombine.high %v1749_v53, %v1749_v53  ;;  %v1765_v30 = vrot.slane %v1749_v53, %v2706_v63  ;;  %v1772_v57 = vrot.slane %v1750_v27, %v2706_v63  ;;  %v1780_v33 = vcombine.high %v1758_v28, %v1758_v28  ;;  %1792 = vst.msk [vmem:[%s2810_s3 + $0x1] sm:$0x1] %vm905_vm0, %v1758_v28 }
0x1215   :  { %v1779_v34 = vrot.slane %v1751_v29, %v2706_v63  ;;  %v1781_v35 = vcombine.high %v1765_v30, %v1765_v30  ;;  %v1782_v0 = vcombine.high %v1772_v57, %v1772_v57  ;;  %1793 = vst.msk [vmem:[%s2810_s3 + $0x3] sm:$0x1] %vm905_vm0, %v1772_v57  ;;  %1794 = vst.msk [vmem:[%s2810_s3 + $0x5] sm:$0x1] %vm905_vm0, %v1780_v33 }
0x1216   :  { %1796 = vst.msk [vmem:[%s2810_s3 + $0x9] sm:$0x1] %vm905_vm0, %v1765_v30 }
0x1217   :  { %v1783_v61 = vcombine.high %v1779_v34, %v1779_v34  ;;  %1795 = vst.msk [vmem:[%s2810_s3 + $0x7] sm:$0x1] %vm905_vm0, %v1782_v0  ;;  %1797 = vst.msk [vmem:[%s2810_s3 + $0xb] sm:$0x1] %vm905_vm0, %v1779_v34 }
0x1218   :  { %1798 = vst.msk [vmem:[%s2810_s3 + $0xd] sm:$0x1] %vm905_vm0, %v1781_v35 }
0x1219   :  { %1799 = vst.msk [vmem:[%s2810_s3 + $0xf] sm:$0x1] %vm905_vm0, %v1783_v61 }
0x121a   :  { %2214 = dma.done.wait [#allocation3], 256  }
0x121b   :  { %2215 = vsyncadd [#allocation3], 4294967040 }
0x121c   :  { %1822 = vsyncpa [#allocation3], 1 }

</bundles_post_ra>
